<compile_context>
chip_gen: v7x
topology: tpu7x:2x2x1
jax: 0.10.0
libtpu: 0.0.40
codegen_flags: <defaults>
</compile_context>

<pallas_src>
import functools

import jax
import jax.numpy as jnp
from jax import lax
from jax.experimental import pallas as pl
from jax.experimental.pallas import tpu as pltpu


# ------------------------------ in-kernel helpers --------------------------- #

def _layernorm(x, g, b):
    """LayerNorm over the last dim in f32 (eps = 1e-5, like torch.nn.LayerNorm)."""
    mean = jnp.mean(x, axis=-1, keepdims=True)
    var = jnp.mean((x - mean) ** 2, axis=-1, keepdims=True)
    return (x - mean) * lax.rsqrt(var + 1e-5) * g + b


def _split_heads(x_flat, B, T, H, hs):
    """(B*T, H*hs) f32 -> (H*B, T, hs) bf16.

    Static lane slices + leading-axis concat (cheap copies; no broadcasts,
    no MXU work).  Head-major batch ordering (index = h*B + b).
    """
    x = x_flat.reshape(B, T, H * hs)
    heads = [x[:, :, h * hs:(h + 1) * hs] for h in range(H)]
    return jnp.concatenate(heads, axis=0).astype(jnp.bfloat16)


def _merge_heads(o, B, T, H, hs):
    """(H*B, T, hs) f32 -> (B*T, H*hs) bf16 (concat heads along lanes)."""
    heads = [o[h * B:(h + 1) * B] for h in range(H)]
    return jnp.concatenate(heads, axis=-1).reshape(B * T, H * hs).astype(jnp.bfloat16)


def _attend(q, k, v, mask):
    """q:(HB,Tq,hs) k,v:(HB,Tk,hs) bf16; mask None or (1,Tq,Tk) bool -> (HB,Tq,hs) f32."""
    s = jnp.einsum('bqd,bkd->bqk', q, k, preferred_element_type=jnp.float32)
    if mask is not None:
        s = jnp.where(mask, s, -jnp.inf)
    s = s - jnp.max(s, axis=-1, keepdims=True)
    p = jnp.exp(s)
    p = p * pl.reciprocal(jnp.sum(p, axis=-1, keepdims=True), approx=True)
    return jnp.einsum('bqk,bkd->bqd', p.astype(jnp.bfloat16), v,
                      preferred_element_type=jnp.float32)


# ------------------------------- fused kernel -------------------------------- #

def decoder_kernel(x_ref, enc_ref,
                   s_lng_ref, s_lnb_ref, s_wqkv_ref, s_wo_ref, s_bo_ref,
                   c_ln1g_ref, c_ln1b_ref, c_wq_ref, c_wkv_ref, c_wo_ref, c_bo_ref,
                   c_ln2g_ref, c_ln2b_ref, c_w1_ref, c_b1_ref, c_w2_ref, c_b2_ref,
                   wout_ref, bout_ref, o_ref, *, n_layer, n_head):
    B, T, E = x_ref.shape
    Tk = enc_ref.shape[1]
    H = n_head
    hs = E // H

    # Residual stream kept flat (B*T, E) in f32; encoder slab cast to bf16 once.
    out = x_ref[...].reshape(B * T, E).astype(jnp.float32)
    enc_bf = enc_ref[...].reshape(B * Tk, E).astype(jnp.bfloat16)

    # Causal mask built once (hoisted out of the unrolled layer loop).
    row = lax.broadcasted_iota(jnp.int32, (1, T, T), 1)
    col = lax.broadcasted_iota(jnp.int32, (1, T, T), 2)
    causal = row >= col

    # --- self-attention stack: mask=True, no feedforward ---------------------
    for l in range(n_layer):
        h = _layernorm(out, s_lng_ref[l], s_lnb_ref[l]).astype(jnp.bfloat16)
        # Single fused QKV projection (scale already folded into the Q columns).
        qkv = jnp.dot(h, s_wqkv_ref[l], preferred_element_type=jnp.float32)  # (B*T, 3E)
        q = _split_heads(qkv[:, :E], B, T, H, hs)
        k = _split_heads(qkv[:, E:2 * E], B, T, H, hs)
        v = _split_heads(qkv[:, 2 * E:], B, T, H, hs)
        o = _attend(q, k, v, causal)                                        # (HB, T, hs)
        o_flat = _merge_heads(o, B, T, H, hs)                               # (B*T, E) bf16
        proj = jnp.dot(o_flat, s_wo_ref[l],
                       preferred_element_type=jnp.float32) + s_bo_ref[l]
        out = out + proj

    # --- cross-attention stack: mask=False, feedforward=True -----------------
    for l in range(n_layer):
        h = _layernorm(out, c_ln1g_ref[l], c_ln1b_ref[l]).astype(jnp.bfloat16)
        q = _split_heads(jnp.dot(h, c_wq_ref[l],
                                 preferred_element_type=jnp.float32), B, T, H, hs)
        kv = jnp.dot(enc_bf, c_wkv_ref[l],
                     preferred_element_type=jnp.float32)                    # (B*Tk, 2E)
        k = _split_heads(kv[:, :E], B, Tk, H, hs)
        v = _split_heads(kv[:, E:], B, Tk, H, hs)
        o = _attend(q, k, v, None)
        o_flat = _merge_heads(o, B, T, H, hs)
        proj = jnp.dot(o_flat, c_wo_ref[l],
                       preferred_element_type=jnp.float32) + c_bo_ref[l]
        out = out + proj

        # Feed-forward (Linear E->4E, ReLU, Linear 4E->E), flat slab matmuls.
        h2 = _layernorm(out, c_ln2g_ref[l], c_ln2b_ref[l]).astype(jnp.bfloat16)
        f = jnp.dot(h2, c_w1_ref[l], preferred_element_type=jnp.float32) + c_b1_ref[l]
        f = jnp.maximum(f, 0.0).astype(jnp.bfloat16)
        out = out + (jnp.dot(f, c_w2_ref[l],
                             preferred_element_type=jnp.float32) + c_b2_ref[l])

    # --- output projection: lane-dense padded vocab (Vp = multiple of 128) ---
    logits = jnp.dot(out.astype(jnp.bfloat16), wout_ref[...],
                     preferred_element_type=jnp.float32) + bout_ref[...]
    o_ref[...] = logits.reshape(B, T, -1).astype(o_ref.dtype)


# ------------------------------- params & glue ------------------------------- #

WEIGHT_ORDER = ["s_ln_g", "s_ln_b", "s_wqkv", "s_wo", "s_bo",
                "c_ln1_g", "c_ln1_b", "c_wq", "c_wkv", "c_wo", "c_bo",
                "c_ln2_g", "c_ln2_b", "c_w1", "c_b1", "c_w2", "c_b2",
                "w_out", "b_out"]


def init_params(key, *, n_layer, n_head, embed_size, output_size, max_length, pad_idx=0):
    E, H, L, V = embed_size, n_head, n_layer, output_size
    F = 4 * E
    Vp = ((V + 127) // 128) * 128           # lane-dense padded vocab width
    scale = float(E) ** -0.5
    keys = iter(jax.random.split(key, 64))
    bf = jnp.bfloat16

    def nrm(shape, std=0.02):
        return std * jax.random.normal(next(keys), shape, jnp.float32)

    word_emb = nrm((V, E)).at[pad_idx].set(0.0)       # padding_idx row zeroed
    pos_emb = nrm((max_length, E)).at[pad_idx].set(0.0)

    # Self-attn fused QKV weight, columns [q | k | v]; fold E**-0.5 into Wq.
    s_wqkv = nrm((L, E, 3 * E)).at[:, :, :E].multiply(scale)
    # Cross-attn: separate Q (scale folded) and fused KV (applied to encoder).
    c_wq = nrm((L, E, E)) * scale
    c_wkv = nrm((L, E, 2 * E))

    # Output projection zero-padded from V to Vp columns.
    w_out = jnp.zeros((E, Vp), jnp.float32).at[:, :V].set(nrm((E, V)))
    b_out = jnp.zeros((1, Vp), jnp.float32).at[:, :V].set(nrm((1, V)))

    return dict(
        word_emb=word_emb, pos_emb=pos_emb,
        s_ln_g=jnp.ones((L, 1, E), jnp.float32), s_ln_b=jnp.zeros((L, 1, E), jnp.float32),
        s_wqkv=s_wqkv.astype(bf),
        s_wo=nrm((L, E, E)).astype(bf), s_bo=nrm((L, 1, E)),
        c_ln1_g=jnp.ones((L, 1, E), jnp.float32), c_ln1_b=jnp.zeros((L, 1, E), jnp.float32),
        c_wq=c_wq.astype(bf), c_wkv=c_wkv.astype(bf),
        c_wo=nrm((L, E, E)).astype(bf), c_bo=nrm((L, 1, E)),
        c_ln2_g=jnp.ones((L, 1, E), jnp.float32), c_ln2_b=jnp.zeros((L, 1, E), jnp.float32),
        c_w1=nrm((L, E, F)).astype(bf), c_b1=nrm((L, 1, F)),
        c_w2=nrm((L, F, E)).astype(bf), c_b2=nrm((L, 1, E)),
        w_out=w_out.astype(bf), b_out=b_out,
    )


def decoder_forward(params, encoder_outputs, target_tensor, *, n_head, output_size):
    B, T = target_tensor.shape
    E = params["word_emb"].shape[1]
    Vp = params["w_out"].shape[1]
    Tk = encoder_outputs.shape[1]
    L = params["s_ln_g"].shape[0]

    # Embedding gathers (data-dependent) done in plain JAX; result feeds the kernel.
    embed = jnp.take(params["word_emb"], target_tensor, axis=0)     # (B,T,E)
    pos = params["pos_emb"][:T][None, :, :]                          # (1,T,E)
    x = (embed + pos).astype(jnp.float32)

    weights = [params[k] for k in WEIGHT_ORDER]

    def wspec(arr):
        # Whole-array block, constant block index -> weight stays VMEM-resident.
        return pl.BlockSpec(arr.shape, lambda i, _n=arr.ndim: (0,) * _n)

    kernel = functools.partial(decoder_kernel, n_layer=L, n_head=n_head)

    in_specs = [pl.BlockSpec((B, T, E), lambda i: (0, 0, 0)),
                pl.BlockSpec((B, Tk, E), lambda i: (0, 0, 0))] + \
               [wspec(w) for w in weights]

    logits_pad = pl.pallas_call(
        kernel,
        out_shape=jax.ShapeDtypeStruct((B, T, Vp), jnp.float32),
        grid=(1,),                              # batch folded into one step
        in_specs=in_specs,
        out_specs=pl.BlockSpec((B, T, Vp), lambda i: (0, 0, 0)),
        compiler_params=pltpu.CompilerParams(
            dimension_semantics=("arbitrary",),
            vmem_limit_bytes=32 * 1024 * 1024),
    )(x, encoder_outputs.astype(jnp.float32), *weights)

    return logits_pad[..., :output_size]        # drop zero-padded vocab columns


# ------------------------------------ main ----------------------------------- #

if __name__ == "__main__":
    B = 2            # batch
    T = 8            # decoder sequence length (== max_length)
    T_ENC = 8        # encoder sequence length
    E = 32           # embed_size == hidden_size
    V = 16           # output_size (vocab); pad index = 0
    N_HEAD = 4
    N_LAYER = 2

    key = jax.random.PRNGKey(0)
    kp, ke, kt = jax.random.split(key, 3)

    params = init_params(kp, n_layer=N_LAYER, n_head=N_HEAD, embed_size=E,
                         output_size=V, max_length=T, pad_idx=0)
    encoder_outputs = jax.random.normal(ke, (B, T_ENC, E), dtype=jnp.float32)
    target_tensor = jax.random.randint(kt, (B, T), 0, V, dtype=jnp.int32)

    fwd = jax.jit(functools.partial(decoder_forward, n_head=N_HEAD, output_size=V))
    logits = fwd(params, encoder_outputs, target_tensor)
    jax.block_until_ready(logits)
    assert logits.shape == (B, T, V)
    # TODO(synk): dropout layers are identity (inference); training-mode dropout
    # would need pltpu.prng_* inside the kernel.
    print("KERNEL_OK")
</pallas_src>

<mosaic_0001>
module attributes {stable_mosaic.version = 11 : i64} {
  func.func @decoder_kernel(%arg0: i32, %arg1: memref<2x8x32xf32, #tpu.memory_space<vmem>>, %arg2: memref<2x8x32xf32, #tpu.memory_space<vmem>>, %arg3: memref<2x1x32xf32, #tpu.memory_space<vmem>>, %arg4: memref<2x1x32xf32, #tpu.memory_space<vmem>>, %arg5: memref<2x32x96xbf16, #tpu.memory_space<vmem>>, %arg6: memref<2x32x32xbf16, #tpu.memory_space<vmem>>, %arg7: memref<2x1x32xf32, #tpu.memory_space<vmem>>, %arg8: memref<2x1x32xf32, #tpu.memory_space<vmem>>, %arg9: memref<2x1x32xf32, #tpu.memory_space<vmem>>, %arg10: memref<2x32x32xbf16, #tpu.memory_space<vmem>>, %arg11: memref<2x32x64xbf16, #tpu.memory_space<vmem>>, %arg12: memref<2x32x32xbf16, #tpu.memory_space<vmem>>, %arg13: memref<2x1x32xf32, #tpu.memory_space<vmem>>, %arg14: memref<2x1x32xf32, #tpu.memory_space<vmem>>, %arg15: memref<2x1x32xf32, #tpu.memory_space<vmem>>, %arg16: memref<2x32x128xbf16, #tpu.memory_space<vmem>>, %arg17: memref<2x1x128xf32, #tpu.memory_space<vmem>>, %arg18: memref<2x128x32xbf16, #tpu.memory_space<vmem>>, %arg19: memref<2x1x32xf32, #tpu.memory_space<vmem>>, %arg20: memref<32x128xbf16, #tpu.memory_space<vmem>>, %arg21: memref<1x128xf32, #tpu.memory_space<vmem>>, %arg22: memref<2x8x128xf32, #tpu.memory_space<vmem>>) attributes {dimension_semantics = [#tpu.dimension_semantics<arbitrary>], iteration_bounds = array<i64: 1>, scalar_prefetch = 0 : i64, scratch_operands = 0 : i64, tpu.core_type = #tpu.core_type<tc>, window_params = [{pipeline_mode = #tpu.pipeline_mode<synchronous>, transform_indices = @transform_0, window_bounds = array<i64: 2, 8, 32>}, {pipeline_mode = #tpu.pipeline_mode<synchronous>, transform_indices = @transform_1, window_bounds = array<i64: 2, 8, 32>}, {pipeline_mode = #tpu.pipeline_mode<synchronous>, transform_indices = @transform_2, window_bounds = array<i64: 2, 1, 32>}, {pipeline_mode = #tpu.pipeline_mode<synchronous>, transform_indices = @transform_3, window_bounds = array<i64: 2, 1, 32>}, {pipeline_mode = #tpu.pipeline_mode<synchronous>, transform_indices = @transform_4, window_bounds = array<i64: 2, 32, 96>}, {pipeline_mode = #tpu.pipeline_mode<synchronous>, transform_indices = @transform_5, window_bounds = array<i64: 2, 32, 32>}, {pipeline_mode = #tpu.pipeline_mode<synchronous>, transform_indices = @transform_6, window_bounds = array<i64: 2, 1, 32>}, {pipeline_mode = #tpu.pipeline_mode<synchronous>, transform_indices = @transform_7, window_bounds = array<i64: 2, 1, 32>}, {pipeline_mode = #tpu.pipeline_mode<synchronous>, transform_indices = @transform_8, window_bounds = array<i64: 2, 1, 32>}, {pipeline_mode = #tpu.pipeline_mode<synchronous>, transform_indices = @transform_9, window_bounds = array<i64: 2, 32, 32>}, {pipeline_mode = #tpu.pipeline_mode<synchronous>, transform_indices = @transform_10, window_bounds = array<i64: 2, 32, 64>}, {pipeline_mode = #tpu.pipeline_mode<synchronous>, transform_indices = @transform_11, window_bounds = array<i64: 2, 32, 32>}, {pipeline_mode = #tpu.pipeline_mode<synchronous>, transform_indices = @transform_12, window_bounds = array<i64: 2, 1, 32>}, {pipeline_mode = #tpu.pipeline_mode<synchronous>, transform_indices = @transform_13, window_bounds = array<i64: 2, 1, 32>}, {pipeline_mode = #tpu.pipeline_mode<synchronous>, transform_indices = @transform_14, window_bounds = array<i64: 2, 1, 32>}, {pipeline_mode = #tpu.pipeline_mode<synchronous>, transform_indices = @transform_15, window_bounds = array<i64: 2, 32, 128>}, {pipeline_mode = #tpu.pipeline_mode<synchronous>, transform_indices = @transform_16, window_bounds = array<i64: 2, 1, 128>}, {pipeline_mode = #tpu.pipeline_mode<synchronous>, transform_indices = @transform_17, window_bounds = array<i64: 2, 128, 32>}, {pipeline_mode = #tpu.pipeline_mode<synchronous>, transform_indices = @transform_18, window_bounds = array<i64: 2, 1, 32>}, {pipeline_mode = #tpu.pipeline_mode<synchronous>, transform_indices = @transform_19, window_bounds = array<i64: 32, 128>}, {pipeline_mode = #tpu.pipeline_mode<synchronous>, transform_indices = @transform_20, window_bounds = array<i64: 1, 128>}, {pipeline_mode = #tpu.pipeline_mode<synchronous>, transform_indices = @transform_21, window_bounds = array<i64: 2, 8, 128>}]} {
    %c0 = arith.constant 0 : index
    %c0_0 = arith.constant 0 : index
    %c0_1 = arith.constant 0 : index
    %0 = vector.load %arg1[%c0, %c0_0, %c0_1] : memref<2x8x32xf32, #tpu.memory_space<vmem>>, vector<2x8x32xf32>
    %1 = vector.shape_cast %0 : vector<2x8x32xf32> to vector<16x32xf32>
    %c0_2 = arith.constant 0 : index
    %c0_3 = arith.constant 0 : index
    %c0_4 = arith.constant 0 : index
    %2 = vector.load %arg2[%c0_2, %c0_3, %c0_4] : memref<2x8x32xf32, #tpu.memory_space<vmem>>, vector<2x8x32xf32>
    %3 = vector.shape_cast %2 : vector<2x8x32xf32> to vector<16x32xf32>
    %4 = arith.truncf %3 : vector<16x32xf32> to vector<16x32xbf16>
    %5 = tpu.iota {dimensions = array<i32: 1>} : vector<1x8x8xi32>
    %6 = tpu.iota {dimensions = array<i32: 2>} : vector<1x8x8xi32>
    %7 = arith.cmpi sge, %5, %6 : vector<1x8x8xi32>
    %c0_5 = arith.constant 0 : index
    %c0_6 = arith.constant 0 : index
    %c0_7 = arith.constant 0 : index
    %8 = vector.load %arg3[%c0_5, %c0_6, %c0_7] : memref<2x1x32xf32, #tpu.memory_space<vmem>>, vector<1x1x32xf32>
    %9 = vector.shape_cast %8 : vector<1x1x32xf32> to vector<1x32xf32>
    %c0_8 = arith.constant 0 : index
    %c0_9 = arith.constant 0 : index
    %c0_10 = arith.constant 0 : index
    %10 = vector.load %arg4[%c0_8, %c0_9, %c0_10] : memref<2x1x32xf32, #tpu.memory_space<vmem>>, vector<1x1x32xf32>
    %11 = vector.shape_cast %10 : vector<1x1x32xf32> to vector<1x32xf32>
    %cst = arith.constant dense<0.000000e+00> : vector<16xf32>
    %12 = vector.multi_reduction <add>, %1, %cst [1] : vector<16x32xf32> to vector<16xf32>
    %13 = vector.shape_cast %12 : vector<16xf32> to vector<16x1xf32>
    %cst_11 = arith.constant 3.200000e+01 : f32
    %14 = vector.broadcast %cst_11 : f32 to vector<16x1xf32>
    %15 = arith.divf %13, %14 : vector<16x1xf32>
    %16 = vector.broadcast %15 : vector<16x1xf32> to vector<16x32xf32>
    %17 = arith.subf %1, %16 : vector<16x32xf32>
    %18 = arith.mulf %17, %17 : vector<16x32xf32>
    %cst_12 = arith.constant dense<0.000000e+00> : vector<16xf32>
    %19 = vector.multi_reduction <add>, %18, %cst_12 [1] : vector<16x32xf32> to vector<16xf32>
    %20 = vector.shape_cast %19 : vector<16xf32> to vector<16x1xf32>
    %cst_13 = arith.constant 3.200000e+01 : f32
    %21 = vector.broadcast %cst_13 : f32 to vector<16x1xf32>
    %22 = arith.divf %20, %21 : vector<16x1xf32>
    %23 = vector.broadcast %15 : vector<16x1xf32> to vector<16x32xf32>
    %24 = arith.subf %1, %23 : vector<16x32xf32>
    %cst_14 = arith.constant 9.99999974E-6 : f32
    %25 = vector.broadcast %cst_14 : f32 to vector<16x1xf32>
    %26 = arith.addf %22, %25 : vector<16x1xf32>
    %27 = math.rsqrt %26 : vector<16x1xf32>
    %28 = vector.broadcast %27 : vector<16x1xf32> to vector<16x32xf32>
    %29 = arith.mulf %24, %28 : vector<16x32xf32>
    %30 = vector.broadcast %9 : vector<1x32xf32> to vector<16x32xf32>
    %31 = arith.mulf %29, %30 : vector<16x32xf32>
    %32 = vector.broadcast %11 : vector<1x32xf32> to vector<16x32xf32>
    %33 = arith.addf %31, %32 : vector<16x32xf32>
    %34 = arith.truncf %33 : vector<16x32xf32> to vector<16x32xbf16>
    %c0_15 = arith.constant 0 : index
    %c0_16 = arith.constant 0 : index
    %c0_17 = arith.constant 0 : index
    %35 = vector.load %arg5[%c0_15, %c0_16, %c0_17] : memref<2x32x96xbf16, #tpu.memory_space<vmem>>, vector<1x32x96xbf16>
    %36 = vector.shape_cast %35 : vector<1x32x96xbf16> to vector<32x96xbf16>
    %cst_18 = arith.constant dense<0.000000e+00> : vector<16x96xf32>
    %37 = tpu.matmul %34, %36, %cst_18 {dimension_numbers = #tpu.dot_dimension_numbers<[1], [0], [0], [1], [0, 0, 1, 1], [], []>} : vector<16x32xbf16>, vector<32x96xbf16>, vector<16x96xf32> -> vector<16x96xf32>
    %38 = vector.extract_strided_slice %37 {offsets = [0, 0], sizes = [16, 32], strides = [1, 1]} : vector<16x96xf32> to vector<16x32xf32>
    %39 = vector.shape_cast %38 : vector<16x32xf32> to vector<2x8x32xf32>
    %40 = vector.extract_strided_slice %39 {offsets = [0, 0, 0], sizes = [2, 8, 8], strides = [1, 1, 1]} : vector<2x8x32xf32> to vector<2x8x8xf32>
    %41 = vector.extract_strided_slice %39 {offsets = [0, 0, 8], sizes = [2, 8, 8], strides = [1, 1, 1]} : vector<2x8x32xf32> to vector<2x8x8xf32>
    %42 = vector.extract_strided_slice %39 {offsets = [0, 0, 16], sizes = [2, 8, 8], strides = [1, 1, 1]} : vector<2x8x32xf32> to vector<2x8x8xf32>
    %43 = vector.extract_strided_slice %39 {offsets = [0, 0, 24], sizes = [2, 8, 8], strides = [1, 1, 1]} : vector<2x8x32xf32> to vector<2x8x8xf32>
    %44 = tpu.concatenate %40, %41, %42, %43 in 0 : vector<2x8x8xf32>, vector<2x8x8xf32>, vector<2x8x8xf32>, vector<2x8x8xf32> -> vector<8x8x8xf32>
    %45 = arith.truncf %44 : vector<8x8x8xf32> to vector<8x8x8xbf16>
    %46 = vector.extract_strided_slice %37 {offsets = [0, 32], sizes = [16, 32], strides = [1, 1]} : vector<16x96xf32> to vector<16x32xf32>
    %47 = vector.shape_cast %46 : vector<16x32xf32> to vector<2x8x32xf32>
    %48 = vector.extract_strided_slice %47 {offsets = [0, 0, 0], sizes = [2, 8, 8], strides = [1, 1, 1]} : vector<2x8x32xf32> to vector<2x8x8xf32>
    %49 = vector.extract_strided_slice %47 {offsets = [0, 0, 8], sizes = [2, 8, 8], strides = [1, 1, 1]} : vector<2x8x32xf32> to vector<2x8x8xf32>
    %50 = vector.extract_strided_slice %47 {offsets = [0, 0, 16], sizes = [2, 8, 8], strides = [1, 1, 1]} : vector<2x8x32xf32> to vector<2x8x8xf32>
    %51 = vector.extract_strided_slice %47 {offsets = [0, 0, 24], sizes = [2, 8, 8], strides = [1, 1, 1]} : vector<2x8x32xf32> to vector<2x8x8xf32>
    %52 = tpu.concatenate %48, %49, %50, %51 in 0 : vector<2x8x8xf32>, vector<2x8x8xf32>, vector<2x8x8xf32>, vector<2x8x8xf32> -> vector<8x8x8xf32>
    %53 = arith.truncf %52 : vector<8x8x8xf32> to vector<8x8x8xbf16>
    %54 = vector.extract_strided_slice %37 {offsets = [0, 64], sizes = [16, 32], strides = [1, 1]} : vector<16x96xf32> to vector<16x32xf32>
    %55 = vector.shape_cast %54 : vector<16x32xf32> to vector<2x8x32xf32>
    %56 = vector.extract_strided_slice %55 {offsets = [0, 0, 0], sizes = [2, 8, 8], strides = [1, 1, 1]} : vector<2x8x32xf32> to vector<2x8x8xf32>
    %57 = vector.extract_strided_slice %55 {offsets = [0, 0, 8], sizes = [2, 8, 8], strides = [1, 1, 1]} : vector<2x8x32xf32> to vector<2x8x8xf32>
    %58 = vector.extract_strided_slice %55 {offsets = [0, 0, 16], sizes = [2, 8, 8], strides = [1, 1, 1]} : vector<2x8x32xf32> to vector<2x8x8xf32>
    %59 = vector.extract_strided_slice %55 {offsets = [0, 0, 24], sizes = [2, 8, 8], strides = [1, 1, 1]} : vector<2x8x32xf32> to vector<2x8x8xf32>
    %60 = tpu.concatenate %56, %57, %58, %59 in 0 : vector<2x8x8xf32>, vector<2x8x8xf32>, vector<2x8x8xf32>, vector<2x8x8xf32> -> vector<8x8x8xf32>
    %61 = arith.truncf %60 : vector<8x8x8xf32> to vector<8x8x8xbf16>
    "tpu.trace_start"() <{level = 10 : i32, message = "bqd,bkd->bqk"}> : () -> ()
    %cst_19 = arith.constant dense<0.000000e+00> : vector<8x8x8xf32>
    %62 = tpu.matmul %45, %53, %cst_19 {dimension_numbers = #tpu.dot_dimension_numbers<[2], [2], [1], [1], [0, 0, 0, 1, 1, 1], [0], [0]>} : vector<8x8x8xbf16>, vector<8x8x8xbf16>, vector<8x8x8xf32> -> vector<8x8x8xf32>
    %cst_20 = arith.constant 0xFF800000 : f32
    "tpu.trace_stop"() : () -> ()
    %63 = vector.shape_cast %7 : vector<1x8x8xi1> to vector<1x8x8xi1>
    %64 = vector.broadcast %63 : vector<1x8x8xi1> to vector<8x8x8xi1>
    %65 = vector.broadcast %cst_20 : f32 to vector<8x8x8xf32>
    %66 = arith.select %64, %62, %65 : vector<8x8x8xi1>, vector<8x8x8xf32>
    %cst_21 = arith.constant dense<0xFF800000> : vector<8x8xf32>
    %67 = vector.multi_reduction <maximumf>, %66, %cst_21 [2] : vector<8x8x8xf32> to vector<8x8xf32>
    %68 = vector.shape_cast %67 : vector<8x8xf32> to vector<8x8x1xf32>
    %69 = vector.broadcast %68 : vector<8x8x1xf32> to vector<8x8x8xf32>
    %70 = arith.subf %66, %69 : vector<8x8x8xf32>
    %71 = math.exp %70 : vector<8x8x8xf32>
    %cst_22 = arith.constant dense<0.000000e+00> : vector<8x8xf32>
    %72 = vector.multi_reduction <add>, %71, %cst_22 [2] : vector<8x8x8xf32> to vector<8x8xf32>
    %73 = vector.shape_cast %72 : vector<8x8xf32> to vector<8x8x1xf32>
    %74 = tpu.reciprocal %73 {approx = true} : vector<8x8x1xf32> -> vector<8x8x1xf32>
    %75 = vector.broadcast %74 : vector<8x8x1xf32> to vector<8x8x8xf32>
    %76 = arith.mulf %71, %75 : vector<8x8x8xf32>
    %77 = arith.truncf %76 : vector<8x8x8xf32> to vector<8x8x8xbf16>
    "tpu.trace_start"() <{level = 10 : i32, message = "bqk,bkd->bqd"}> : () -> ()
    %cst_23 = arith.constant dense<0.000000e+00> : vector<8x8x8xf32>
    %78 = tpu.matmul %77, %61, %cst_23 {dimension_numbers = #tpu.dot_dimension_numbers<[2], [1], [1], [2], [0, 0, 0, 1, 1, 2], [0], [0]>} : vector<8x8x8xbf16>, vector<8x8x8xbf16>, vector<8x8x8xf32> -> vector<8x8x8xf32>
    "tpu.trace_stop"() : () -> ()
    %79 = vector.extract_strided_slice %78 {offsets = [0, 0, 0], sizes = [2, 8, 8], strides = [1, 1, 1]} : vector<8x8x8xf32> to vector<2x8x8xf32>
    %80 = vector.extract_strided_slice %78 {offsets = [2, 0, 0], sizes = [2, 8, 8], strides = [1, 1, 1]} : vector<8x8x8xf32> to vector<2x8x8xf32>
    %81 = vector.extract_strided_slice %78 {offsets = [4, 0, 0], sizes = [2, 8, 8], strides = [1, 1, 1]} : vector<8x8x8xf32> to vector<2x8x8xf32>
    %82 = vector.extract_strided_slice %78 {offsets = [6, 0, 0], sizes = [2, 8, 8], strides = [1, 1, 1]} : vector<8x8x8xf32> to vector<2x8x8xf32>
    %83 = tpu.concatenate %79, %80, %81, %82 in 2 : vector<2x8x8xf32>, vector<2x8x8xf32>, vector<2x8x8xf32>, vector<2x8x8xf32> -> vector<2x8x32xf32>
    %84 = vector.shape_cast %83 : vector<2x8x32xf32> to vector<16x32xf32>
    %85 = arith.truncf %84 : vector<16x32xf32> to vector<16x32xbf16>
    %c0_24 = arith.constant 0 : index
    %c0_25 = arith.constant 0 : index
    %c0_26 = arith.constant 0 : index
    %86 = vector.load %arg6[%c0_24, %c0_25, %c0_26] : memref<2x32x32xbf16, #tpu.memory_space<vmem>>, vector<1x32x32xbf16>
    %87 = vector.shape_cast %86 : vector<1x32x32xbf16> to vector<32x32xbf16>
    %cst_27 = arith.constant dense<0.000000e+00> : vector<16x32xf32>
    %88 = tpu.matmul %85, %87, %cst_27 {dimension_numbers = #tpu.dot_dimension_numbers<[1], [0], [0], [1], [0, 0, 1, 1], [], []>} : vector<16x32xbf16>, vector<32x32xbf16>, vector<16x32xf32> -> vector<16x32xf32>
    %c0_28 = arith.constant 0 : index
    %c0_29 = arith.constant 0 : index
    %c0_30 = arith.constant 0 : index
    %89 = vector.load %arg7[%c0_28, %c0_29, %c0_30] : memref<2x1x32xf32, #tpu.memory_space<vmem>>, vector<1x1x32xf32>
    %90 = vector.shape_cast %89 : vector<1x1x32xf32> to vector<1x32xf32>
    %91 = vector.broadcast %90 : vector<1x32xf32> to vector<16x32xf32>
    %92 = arith.addf %88, %91 : vector<16x32xf32>
    %93 = arith.addf %1, %92 : vector<16x32xf32>
    %c1 = arith.constant 1 : index
    %c0_31 = arith.constant 0 : index
    %c0_32 = arith.constant 0 : index
    %94 = vector.load %arg3[%c1, %c0_31, %c0_32] : memref<2x1x32xf32, #tpu.memory_space<vmem>>, vector<1x1x32xf32>
    %95 = vector.shape_cast %94 : vector<1x1x32xf32> to vector<1x32xf32>
    %c1_33 = arith.constant 1 : index
    %c0_34 = arith.constant 0 : index
    %c0_35 = arith.constant 0 : index
    %96 = vector.load %arg4[%c1_33, %c0_34, %c0_35] : memref<2x1x32xf32, #tpu.memory_space<vmem>>, vector<1x1x32xf32>
    %97 = vector.shape_cast %96 : vector<1x1x32xf32> to vector<1x32xf32>
    %cst_36 = arith.constant dense<0.000000e+00> : vector<16xf32>
    %98 = vector.multi_reduction <add>, %93, %cst_36 [1] : vector<16x32xf32> to vector<16xf32>
    %99 = vector.shape_cast %98 : vector<16xf32> to vector<16x1xf32>
    %cst_37 = arith.constant 3.200000e+01 : f32
    %100 = vector.broadcast %cst_37 : f32 to vector<16x1xf32>
    %101 = arith.divf %99, %100 : vector<16x1xf32>
    %102 = vector.broadcast %101 : vector<16x1xf32> to vector<16x32xf32>
    %103 = arith.subf %93, %102 : vector<16x32xf32>
    %104 = arith.mulf %103, %103 : vector<16x32xf32>
    %cst_38 = arith.constant dense<0.000000e+00> : vector<16xf32>
    %105 = vector.multi_reduction <add>, %104, %cst_38 [1] : vector<16x32xf32> to vector<16xf32>
    %106 = vector.shape_cast %105 : vector<16xf32> to vector<16x1xf32>
    %cst_39 = arith.constant 3.200000e+01 : f32
    %107 = vector.broadcast %cst_39 : f32 to vector<16x1xf32>
    %108 = arith.divf %106, %107 : vector<16x1xf32>
    %109 = vector.broadcast %101 : vector<16x1xf32> to vector<16x32xf32>
    %110 = arith.subf %93, %109 : vector<16x32xf32>
    %cst_40 = arith.constant 9.99999974E-6 : f32
    %111 = vector.broadcast %cst_40 : f32 to vector<16x1xf32>
    %112 = arith.addf %108, %111 : vector<16x1xf32>
    %113 = math.rsqrt %112 : vector<16x1xf32>
    %114 = vector.broadcast %113 : vector<16x1xf32> to vector<16x32xf32>
    %115 = arith.mulf %110, %114 : vector<16x32xf32>
    %116 = vector.broadcast %95 : vector<1x32xf32> to vector<16x32xf32>
    %117 = arith.mulf %115, %116 : vector<16x32xf32>
    %118 = vector.broadcast %97 : vector<1x32xf32> to vector<16x32xf32>
    %119 = arith.addf %117, %118 : vector<16x32xf32>
    %120 = arith.truncf %119 : vector<16x32xf32> to vector<16x32xbf16>
    %c1_41 = arith.constant 1 : index
    %c0_42 = arith.constant 0 : index
    %c0_43 = arith.constant 0 : index
    %121 = vector.load %arg5[%c1_41, %c0_42, %c0_43] : memref<2x32x96xbf16, #tpu.memory_space<vmem>>, vector<1x32x96xbf16>
    %122 = vector.shape_cast %121 : vector<1x32x96xbf16> to vector<32x96xbf16>
    %cst_44 = arith.constant dense<0.000000e+00> : vector<16x96xf32>
    %123 = tpu.matmul %120, %122, %cst_44 {dimension_numbers = #tpu.dot_dimension_numbers<[1], [0], [0], [1], [0, 0, 1, 1], [], []>} : vector<16x32xbf16>, vector<32x96xbf16>, vector<16x96xf32> -> vector<16x96xf32>
    %124 = vector.extract_strided_slice %123 {offsets = [0, 0], sizes = [16, 32], strides = [1, 1]} : vector<16x96xf32> to vector<16x32xf32>
    %125 = vector.shape_cast %124 : vector<16x32xf32> to vector<2x8x32xf32>
    %126 = vector.extract_strided_slice %125 {offsets = [0, 0, 0], sizes = [2, 8, 8], strides = [1, 1, 1]} : vector<2x8x32xf32> to vector<2x8x8xf32>
    %127 = vector.extract_strided_slice %125 {offsets = [0, 0, 8], sizes = [2, 8, 8], strides = [1, 1, 1]} : vector<2x8x32xf32> to vector<2x8x8xf32>
    %128 = vector.extract_strided_slice %125 {offsets = [0, 0, 16], sizes = [2, 8, 8], strides = [1, 1, 1]} : vector<2x8x32xf32> to vector<2x8x8xf32>
    %129 = vector.extract_strided_slice %125 {offsets = [0, 0, 24], sizes = [2, 8, 8], strides = [1, 1, 1]} : vector<2x8x32xf32> to vector<2x8x8xf32>
    %130 = tpu.concatenate %126, %127, %128, %129 in 0 : vector<2x8x8xf32>, vector<2x8x8xf32>, vector<2x8x8xf32>, vector<2x8x8xf32> -> vector<8x8x8xf32>
    %131 = arith.truncf %130 : vector<8x8x8xf32> to vector<8x8x8xbf16>
    %132 = vector.extract_strided_slice %123 {offsets = [0, 32], sizes = [16, 32], strides = [1, 1]} : vector<16x96xf32> to vector<16x32xf32>
    %133 = vector.shape_cast %132 : vector<16x32xf32> to vector<2x8x32xf32>
    %134 = vector.extract_strided_slice %133 {offsets = [0, 0, 0], sizes = [2, 8, 8], strides = [1, 1, 1]} : vector<2x8x32xf32> to vector<2x8x8xf32>
    %135 = vector.extract_strided_slice %133 {offsets = [0, 0, 8], sizes = [2, 8, 8], strides = [1, 1, 1]} : vector<2x8x32xf32> to vector<2x8x8xf32>
    %136 = vector.extract_strided_slice %133 {offsets = [0, 0, 16], sizes = [2, 8, 8], strides = [1, 1, 1]} : vector<2x8x32xf32> to vector<2x8x8xf32>
    %137 = vector.extract_strided_slice %133 {offsets = [0, 0, 24], sizes = [2, 8, 8], strides = [1, 1, 1]} : vector<2x8x32xf32> to vector<2x8x8xf32>
    %138 = tpu.concatenate %134, %135, %136, %137 in 0 : vector<2x8x8xf32>, vector<2x8x8xf32>, vector<2x8x8xf32>, vector<2x8x8xf32> -> vector<8x8x8xf32>
    %139 = arith.truncf %138 : vector<8x8x8xf32> to vector<8x8x8xbf16>
    %140 = vector.extract_strided_slice %123 {offsets = [0, 64], sizes = [16, 32], strides = [1, 1]} : vector<16x96xf32> to vector<16x32xf32>
    %141 = vector.shape_cast %140 : vector<16x32xf32> to vector<2x8x32xf32>
    %142 = vector.extract_strided_slice %141 {offsets = [0, 0, 0], sizes = [2, 8, 8], strides = [1, 1, 1]} : vector<2x8x32xf32> to vector<2x8x8xf32>
    %143 = vector.extract_strided_slice %141 {offsets = [0, 0, 8], sizes = [2, 8, 8], strides = [1, 1, 1]} : vector<2x8x32xf32> to vector<2x8x8xf32>
    %144 = vector.extract_strided_slice %141 {offsets = [0, 0, 16], sizes = [2, 8, 8], strides = [1, 1, 1]} : vector<2x8x32xf32> to vector<2x8x8xf32>
    %145 = vector.extract_strided_slice %141 {offsets = [0, 0, 24], sizes = [2, 8, 8], strides = [1, 1, 1]} : vector<2x8x32xf32> to vector<2x8x8xf32>
    %146 = tpu.concatenate %142, %143, %144, %145 in 0 : vector<2x8x8xf32>, vector<2x8x8xf32>, vector<2x8x8xf32>, vector<2x8x8xf32> -> vector<8x8x8xf32>
    %147 = arith.truncf %146 : vector<8x8x8xf32> to vector<8x8x8xbf16>
    "tpu.trace_start"() <{level = 10 : i32, message = "bqd,bkd->bqk"}> : () -> ()
    %cst_45 = arith.constant dense<0.000000e+00> : vector<8x8x8xf32>
    %148 = tpu.matmul %131, %139, %cst_45 {dimension_numbers = #tpu.dot_dimension_numbers<[2], [2], [1], [1], [0, 0, 0, 1, 1, 1], [0], [0]>} : vector<8x8x8xbf16>, vector<8x8x8xbf16>, vector<8x8x8xf32> -> vector<8x8x8xf32>
    %cst_46 = arith.constant 0xFF800000 : f32
    "tpu.trace_stop"() : () -> ()
    %149 = vector.shape_cast %7 : vector<1x8x8xi1> to vector<1x8x8xi1>
    %150 = vector.broadcast %149 : vector<1x8x8xi1> to vector<8x8x8xi1>
    %151 = vector.broadcast %cst_46 : f32 to vector<8x8x8xf32>
    %152 = arith.select %150, %148, %151 : vector<8x8x8xi1>, vector<8x8x8xf32>
    %cst_47 = arith.constant dense<0xFF800000> : vector<8x8xf32>
    %153 = vector.multi_reduction <maximumf>, %152, %cst_47 [2] : vector<8x8x8xf32> to vector<8x8xf32>
    %154 = vector.shape_cast %153 : vector<8x8xf32> to vector<8x8x1xf32>
    %155 = vector.broadcast %154 : vector<8x8x1xf32> to vector<8x8x8xf32>
    %156 = arith.subf %152, %155 : vector<8x8x8xf32>
    %157 = math.exp %156 : vector<8x8x8xf32>
    %cst_48 = arith.constant dense<0.000000e+00> : vector<8x8xf32>
    %158 = vector.multi_reduction <add>, %157, %cst_48 [2] : vector<8x8x8xf32> to vector<8x8xf32>
    %159 = vector.shape_cast %158 : vector<8x8xf32> to vector<8x8x1xf32>
    %160 = tpu.reciprocal %159 {approx = true} : vector<8x8x1xf32> -> vector<8x8x1xf32>
    %161 = vector.broadcast %160 : vector<8x8x1xf32> to vector<8x8x8xf32>
    %162 = arith.mulf %157, %161 : vector<8x8x8xf32>
    %163 = arith.truncf %162 : vector<8x8x8xf32> to vector<8x8x8xbf16>
    "tpu.trace_start"() <{level = 10 : i32, message = "bqk,bkd->bqd"}> : () -> ()
    %cst_49 = arith.constant dense<0.000000e+00> : vector<8x8x8xf32>
    %164 = tpu.matmul %163, %147, %cst_49 {dimension_numbers = #tpu.dot_dimension_numbers<[2], [1], [1], [2], [0, 0, 0, 1, 1, 2], [0], [0]>} : vector<8x8x8xbf16>, vector<8x8x8xbf16>, vector<8x8x8xf32> -> vector<8x8x8xf32>
    "tpu.trace_stop"() : () -> ()
    %165 = vector.extract_strided_slice %164 {offsets = [0, 0, 0], sizes = [2, 8, 8], strides = [1, 1, 1]} : vector<8x8x8xf32> to vector<2x8x8xf32>
    %166 = vector.extract_strided_slice %164 {offsets = [2, 0, 0], sizes = [2, 8, 8], strides = [1, 1, 1]} : vector<8x8x8xf32> to vector<2x8x8xf32>
    %167 = vector.extract_strided_slice %164 {offsets = [4, 0, 0], sizes = [2, 8, 8], strides = [1, 1, 1]} : vector<8x8x8xf32> to vector<2x8x8xf32>
    %168 = vector.extract_strided_slice %164 {offsets = [6, 0, 0], sizes = [2, 8, 8], strides = [1, 1, 1]} : vector<8x8x8xf32> to vector<2x8x8xf32>
    %169 = tpu.concatenate %165, %166, %167, %168 in 2 : vector<2x8x8xf32>, vector<2x8x8xf32>, vector<2x8x8xf32>, vector<2x8x8xf32> -> vector<2x8x32xf32>
    %170 = vector.shape_cast %169 : vector<2x8x32xf32> to vector<16x32xf32>
    %171 = arith.truncf %170 : vector<16x32xf32> to vector<16x32xbf16>
    %c1_50 = arith.constant 1 : index
    %c0_51 = arith.constant 0 : index
    %c0_52 = arith.constant 0 : index
    %172 = vector.load %arg6[%c1_50, %c0_51, %c0_52] : memref<2x32x32xbf16, #tpu.memory_space<vmem>>, vector<1x32x32xbf16>
    %173 = vector.shape_cast %172 : vector<1x32x32xbf16> to vector<32x32xbf16>
    %cst_53 = arith.constant dense<0.000000e+00> : vector<16x32xf32>
    %174 = tpu.matmul %171, %173, %cst_53 {dimension_numbers = #tpu.dot_dimension_numbers<[1], [0], [0], [1], [0, 0, 1, 1], [], []>} : vector<16x32xbf16>, vector<32x32xbf16>, vector<16x32xf32> -> vector<16x32xf32>
    %c1_54 = arith.constant 1 : index
    %c0_55 = arith.constant 0 : index
    %c0_56 = arith.constant 0 : index
    %175 = vector.load %arg7[%c1_54, %c0_55, %c0_56] : memref<2x1x32xf32, #tpu.memory_space<vmem>>, vector<1x1x32xf32>
    %176 = vector.shape_cast %175 : vector<1x1x32xf32> to vector<1x32xf32>
    %177 = vector.broadcast %176 : vector<1x32xf32> to vector<16x32xf32>
    %178 = arith.addf %174, %177 : vector<16x32xf32>
    %179 = arith.addf %93, %178 : vector<16x32xf32>
    %c0_57 = arith.constant 0 : index
    %c0_58 = arith.constant 0 : index
    %c0_59 = arith.constant 0 : index
    %180 = vector.load %arg8[%c0_57, %c0_58, %c0_59] : memref<2x1x32xf32, #tpu.memory_space<vmem>>, vector<1x1x32xf32>
    %181 = vector.shape_cast %180 : vector<1x1x32xf32> to vector<1x32xf32>
    %c0_60 = arith.constant 0 : index
    %c0_61 = arith.constant 0 : index
    %c0_62 = arith.constant 0 : index
    %182 = vector.load %arg9[%c0_60, %c0_61, %c0_62] : memref<2x1x32xf32, #tpu.memory_space<vmem>>, vector<1x1x32xf32>
    %183 = vector.shape_cast %182 : vector<1x1x32xf32> to vector<1x32xf32>
    %cst_63 = arith.constant dense<0.000000e+00> : vector<16xf32>
    %184 = vector.multi_reduction <add>, %179, %cst_63 [1] : vector<16x32xf32> to vector<16xf32>
    %185 = vector.shape_cast %184 : vector<16xf32> to vector<16x1xf32>
    %cst_64 = arith.constant 3.200000e+01 : f32
    %186 = vector.broadcast %cst_64 : f32 to vector<16x1xf32>
    %187 = arith.divf %185, %186 : vector<16x1xf32>
    %188 = vector.broadcast %187 : vector<16x1xf32> to vector<16x32xf32>
    %189 = arith.subf %179, %188 : vector<16x32xf32>
    %190 = arith.mulf %189, %189 : vector<16x32xf32>
    %cst_65 = arith.constant dense<0.000000e+00> : vector<16xf32>
    %191 = vector.multi_reduction <add>, %190, %cst_65 [1] : vector<16x32xf32> to vector<16xf32>
    %192 = vector.shape_cast %191 : vector<16xf32> to vector<16x1xf32>
    %cst_66 = arith.constant 3.200000e+01 : f32
    %193 = vector.broadcast %cst_66 : f32 to vector<16x1xf32>
    %194 = arith.divf %192, %193 : vector<16x1xf32>
    %195 = vector.broadcast %187 : vector<16x1xf32> to vector<16x32xf32>
    %196 = arith.subf %179, %195 : vector<16x32xf32>
    %cst_67 = arith.constant 9.99999974E-6 : f32
    %197 = vector.broadcast %cst_67 : f32 to vector<16x1xf32>
    %198 = arith.addf %194, %197 : vector<16x1xf32>
    %199 = math.rsqrt %198 : vector<16x1xf32>
    %200 = vector.broadcast %199 : vector<16x1xf32> to vector<16x32xf32>
    %201 = arith.mulf %196, %200 : vector<16x32xf32>
    %202 = vector.broadcast %181 : vector<1x32xf32> to vector<16x32xf32>
    %203 = arith.mulf %201, %202 : vector<16x32xf32>
    %204 = vector.broadcast %183 : vector<1x32xf32> to vector<16x32xf32>
    %205 = arith.addf %203, %204 : vector<16x32xf32>
    %206 = arith.truncf %205 : vector<16x32xf32> to vector<16x32xbf16>
    %c0_68 = arith.constant 0 : index
    %c0_69 = arith.constant 0 : index
    %c0_70 = arith.constant 0 : index
    %207 = vector.load %arg10[%c0_68, %c0_69, %c0_70] : memref<2x32x32xbf16, #tpu.memory_space<vmem>>, vector<1x32x32xbf16>
    %208 = vector.shape_cast %207 : vector<1x32x32xbf16> to vector<32x32xbf16>
    %cst_71 = arith.constant dense<0.000000e+00> : vector<16x32xf32>
    %209 = tpu.matmul %206, %208, %cst_71 {dimension_numbers = #tpu.dot_dimension_numbers<[1], [0], [0], [1], [0, 0, 1, 1], [], []>} : vector<16x32xbf16>, vector<32x32xbf16>, vector<16x32xf32> -> vector<16x32xf32>
    %210 = vector.shape_cast %209 : vector<16x32xf32> to vector<2x8x32xf32>
    %211 = vector.extract_strided_slice %210 {offsets = [0, 0, 0], sizes = [2, 8, 8], strides = [1, 1, 1]} : vector<2x8x32xf32> to vector<2x8x8xf32>
    %212 = vector.extract_strided_slice %210 {offsets = [0, 0, 8], sizes = [2, 8, 8], strides = [1, 1, 1]} : vector<2x8x32xf32> to vector<2x8x8xf32>
    %213 = vector.extract_strided_slice %210 {offsets = [0, 0, 16], sizes = [2, 8, 8], strides = [1, 1, 1]} : vector<2x8x32xf32> to vector<2x8x8xf32>
    %214 = vector.extract_strided_slice %210 {offsets = [0, 0, 24], sizes = [2, 8, 8], strides = [1, 1, 1]} : vector<2x8x32xf32> to vector<2x8x8xf32>
    %215 = tpu.concatenate %211, %212, %213, %214 in 0 : vector<2x8x8xf32>, vector<2x8x8xf32>, vector<2x8x8xf32>, vector<2x8x8xf32> -> vector<8x8x8xf32>
    %216 = arith.truncf %215 : vector<8x8x8xf32> to vector<8x8x8xbf16>
    %c0_72 = arith.constant 0 : index
    %c0_73 = arith.constant 0 : index
    %c0_74 = arith.constant 0 : index
    %217 = vector.load %arg11[%c0_72, %c0_73, %c0_74] : memref<2x32x64xbf16, #tpu.memory_space<vmem>>, vector<1x32x64xbf16>
    %218 = vector.shape_cast %217 : vector<1x32x64xbf16> to vector<32x64xbf16>
    %cst_75 = arith.constant dense<0.000000e+00> : vector<16x64xf32>
    %219 = tpu.matmul %4, %218, %cst_75 {dimension_numbers = #tpu.dot_dimension_numbers<[1], [0], [0], [1], [0, 0, 1, 1], [], []>} : vector<16x32xbf16>, vector<32x64xbf16>, vector<16x64xf32> -> vector<16x64xf32>
    %220 = vector.extract_strided_slice %219 {offsets = [0, 0], sizes = [16, 32], strides = [1, 1]} : vector<16x64xf32> to vector<16x32xf32>
    %221 = vector.shape_cast %220 : vector<16x32xf32> to vector<2x8x32xf32>
    %222 = vector.extract_strided_slice %221 {offsets = [0, 0, 0], sizes = [2, 8, 8], strides = [1, 1, 1]} : vector<2x8x32xf32> to vector<2x8x8xf32>
    %223 = vector.extract_strided_slice %221 {offsets = [0, 0, 8], sizes = [2, 8, 8], strides = [1, 1, 1]} : vector<2x8x32xf32> to vector<2x8x8xf32>
    %224 = vector.extract_strided_slice %221 {offsets = [0, 0, 16], sizes = [2, 8, 8], strides = [1, 1, 1]} : vector<2x8x32xf32> to vector<2x8x8xf32>
    %225 = vector.extract_strided_slice %221 {offsets = [0, 0, 24], sizes = [2, 8, 8], strides = [1, 1, 1]} : vector<2x8x32xf32> to vector<2x8x8xf32>
    %226 = tpu.concatenate %222, %223, %224, %225 in 0 : vector<2x8x8xf32>, vector<2x8x8xf32>, vector<2x8x8xf32>, vector<2x8x8xf32> -> vector<8x8x8xf32>
    %227 = arith.truncf %226 : vector<8x8x8xf32> to vector<8x8x8xbf16>
    %228 = vector.extract_strided_slice %219 {offsets = [0, 32], sizes = [16, 32], strides = [1, 1]} : vector<16x64xf32> to vector<16x32xf32>
    %229 = vector.shape_cast %228 : vector<16x32xf32> to vector<2x8x32xf32>
    %230 = vector.extract_strided_slice %229 {offsets = [0, 0, 0], sizes = [2, 8, 8], strides = [1, 1, 1]} : vector<2x8x32xf32> to vector<2x8x8xf32>
    %231 = vector.extract_strided_slice %229 {offsets = [0, 0, 8], sizes = [2, 8, 8], strides = [1, 1, 1]} : vector<2x8x32xf32> to vector<2x8x8xf32>
    %232 = vector.extract_strided_slice %229 {offsets = [0, 0, 16], sizes = [2, 8, 8], strides = [1, 1, 1]} : vector<2x8x32xf32> to vector<2x8x8xf32>
    %233 = vector.extract_strided_slice %229 {offsets = [0, 0, 24], sizes = [2, 8, 8], strides = [1, 1, 1]} : vector<2x8x32xf32> to vector<2x8x8xf32>
    %234 = tpu.concatenate %230, %231, %232, %233 in 0 : vector<2x8x8xf32>, vector<2x8x8xf32>, vector<2x8x8xf32>, vector<2x8x8xf32> -> vector<8x8x8xf32>
    %235 = arith.truncf %234 : vector<8x8x8xf32> to vector<8x8x8xbf16>
    "tpu.trace_start"() <{level = 10 : i32, message = "bqd,bkd->bqk"}> : () -> ()
    %cst_76 = arith.constant dense<0.000000e+00> : vector<8x8x8xf32>
    %236 = tpu.matmul %216, %227, %cst_76 {dimension_numbers = #tpu.dot_dimension_numbers<[2], [2], [1], [1], [0, 0, 0, 1, 1, 1], [0], [0]>} : vector<8x8x8xbf16>, vector<8x8x8xbf16>, vector<8x8x8xf32> -> vector<8x8x8xf32>
    "tpu.trace_stop"() : () -> ()
    %cst_77 = arith.constant dense<0xFF800000> : vector<8x8xf32>
    %237 = vector.multi_reduction <maximumf>, %236, %cst_77 [2] : vector<8x8x8xf32> to vector<8x8xf32>
    %238 = vector.shape_cast %237 : vector<8x8xf32> to vector<8x8x1xf32>
    %239 = vector.broadcast %238 : vector<8x8x1xf32> to vector<8x8x8xf32>
    %240 = arith.subf %236, %239 : vector<8x8x8xf32>
    %241 = math.exp %240 : vector<8x8x8xf32>
    %cst_78 = arith.constant dense<0.000000e+00> : vector<8x8xf32>
    %242 = vector.multi_reduction <add>, %241, %cst_78 [2] : vector<8x8x8xf32> to vector<8x8xf32>
    %243 = vector.shape_cast %242 : vector<8x8xf32> to vector<8x8x1xf32>
    %244 = tpu.reciprocal %243 {approx = true} : vector<8x8x1xf32> -> vector<8x8x1xf32>
    %245 = vector.broadcast %244 : vector<8x8x1xf32> to vector<8x8x8xf32>
    %246 = arith.mulf %241, %245 : vector<8x8x8xf32>
    %247 = arith.truncf %246 : vector<8x8x8xf32> to vector<8x8x8xbf16>
    "tpu.trace_start"() <{level = 10 : i32, message = "bqk,bkd->bqd"}> : () -> ()
    %cst_79 = arith.constant dense<0.000000e+00> : vector<8x8x8xf32>
    %248 = tpu.matmul %247, %235, %cst_79 {dimension_numbers = #tpu.dot_dimension_numbers<[2], [1], [1], [2], [0, 0, 0, 1, 1, 2], [0], [0]>} : vector<8x8x8xbf16>, vector<8x8x8xbf16>, vector<8x8x8xf32> -> vector<8x8x8xf32>
    "tpu.trace_stop"() : () -> ()
    %249 = vector.extract_strided_slice %248 {offsets = [0, 0, 0], sizes = [2, 8, 8], strides = [1, 1, 1]} : vector<8x8x8xf32> to vector<2x8x8xf32>
    %250 = vector.extract_strided_slice %248 {offsets = [2, 0, 0], sizes = [2, 8, 8], strides = [1, 1, 1]} : vector<8x8x8xf32> to vector<2x8x8xf32>
    %251 = vector.extract_strided_slice %248 {offsets = [4, 0, 0], sizes = [2, 8, 8], strides = [1, 1, 1]} : vector<8x8x8xf32> to vector<2x8x8xf32>
    %252 = vector.extract_strided_slice %248 {offsets = [6, 0, 0], sizes = [2, 8, 8], strides = [1, 1, 1]} : vector<8x8x8xf32> to vector<2x8x8xf32>
    %253 = tpu.concatenate %249, %250, %251, %252 in 2 : vector<2x8x8xf32>, vector<2x8x8xf32>, vector<2x8x8xf32>, vector<2x8x8xf32> -> vector<2x8x32xf32>
    %254 = vector.shape_cast %253 : vector<2x8x32xf32> to vector<16x32xf32>
    %255 = arith.truncf %254 : vector<16x32xf32> to vector<16x32xbf16>
    %c0_80 = arith.constant 0 : index
    %c0_81 = arith.constant 0 : index
    %c0_82 = arith.constant 0 : index
    %256 = vector.load %arg12[%c0_80, %c0_81, %c0_82] : memref<2x32x32xbf16, #tpu.memory_space<vmem>>, vector<1x32x32xbf16>
    %257 = vector.shape_cast %256 : vector<1x32x32xbf16> to vector<32x32xbf16>
    %cst_83 = arith.constant dense<0.000000e+00> : vector<16x32xf32>
    %258 = tpu.matmul %255, %257, %cst_83 {dimension_numbers = #tpu.dot_dimension_numbers<[1], [0], [0], [1], [0, 0, 1, 1], [], []>} : vector<16x32xbf16>, vector<32x32xbf16>, vector<16x32xf32> -> vector<16x32xf32>
    %c0_84 = arith.constant 0 : index
    %c0_85 = arith.constant 0 : index
    %c0_86 = arith.constant 0 : index
    %259 = vector.load %arg13[%c0_84, %c0_85, %c0_86] : memref<2x1x32xf32, #tpu.memory_space<vmem>>, vector<1x1x32xf32>
    %260 = vector.shape_cast %259 : vector<1x1x32xf32> to vector<1x32xf32>
    %261 = vector.broadcast %260 : vector<1x32xf32> to vector<16x32xf32>
    %262 = arith.addf %258, %261 : vector<16x32xf32>
    %263 = arith.addf %179, %262 : vector<16x32xf32>
    %c0_87 = arith.constant 0 : index
    %c0_88 = arith.constant 0 : index
    %c0_89 = arith.constant 0 : index
    %264 = vector.load %arg14[%c0_87, %c0_88, %c0_89] : memref<2x1x32xf32, #tpu.memory_space<vmem>>, vector<1x1x32xf32>
    %265 = vector.shape_cast %264 : vector<1x1x32xf32> to vector<1x32xf32>
    %c0_90 = arith.constant 0 : index
    %c0_91 = arith.constant 0 : index
    %c0_92 = arith.constant 0 : index
    %266 = vector.load %arg15[%c0_90, %c0_91, %c0_92] : memref<2x1x32xf32, #tpu.memory_space<vmem>>, vector<1x1x32xf32>
    %267 = vector.shape_cast %266 : vector<1x1x32xf32> to vector<1x32xf32>
    %cst_93 = arith.constant dense<0.000000e+00> : vector<16xf32>
    %268 = vector.multi_reduction <add>, %263, %cst_93 [1] : vector<16x32xf32> to vector<16xf32>
    %269 = vector.shape_cast %268 : vector<16xf32> to vector<16x1xf32>
    %cst_94 = arith.constant 3.200000e+01 : f32
    %270 = vector.broadcast %cst_94 : f32 to vector<16x1xf32>
    %271 = arith.divf %269, %270 : vector<16x1xf32>
    %272 = vector.broadcast %271 : vector<16x1xf32> to vector<16x32xf32>
    %273 = arith.subf %263, %272 : vector<16x32xf32>
    %274 = arith.mulf %273, %273 : vector<16x32xf32>
    %cst_95 = arith.constant dense<0.000000e+00> : vector<16xf32>
    %275 = vector.multi_reduction <add>, %274, %cst_95 [1] : vector<16x32xf32> to vector<16xf32>
    %276 = vector.shape_cast %275 : vector<16xf32> to vector<16x1xf32>
    %cst_96 = arith.constant 3.200000e+01 : f32
    %277 = vector.broadcast %cst_96 : f32 to vector<16x1xf32>
    %278 = arith.divf %276, %277 : vector<16x1xf32>
    %279 = vector.broadcast %271 : vector<16x1xf32> to vector<16x32xf32>
    %280 = arith.subf %263, %279 : vector<16x32xf32>
    %cst_97 = arith.constant 9.99999974E-6 : f32
    %281 = vector.broadcast %cst_97 : f32 to vector<16x1xf32>
    %282 = arith.addf %278, %281 : vector<16x1xf32>
    %283 = math.rsqrt %282 : vector<16x1xf32>
    %284 = vector.broadcast %283 : vector<16x1xf32> to vector<16x32xf32>
    %285 = arith.mulf %280, %284 : vector<16x32xf32>
    %286 = vector.broadcast %265 : vector<1x32xf32> to vector<16x32xf32>
    %287 = arith.mulf %285, %286 : vector<16x32xf32>
    %288 = vector.broadcast %267 : vector<1x32xf32> to vector<16x32xf32>
    %289 = arith.addf %287, %288 : vector<16x32xf32>
    %290 = arith.truncf %289 : vector<16x32xf32> to vector<16x32xbf16>
    %c0_98 = arith.constant 0 : index
    %c0_99 = arith.constant 0 : index
    %c0_100 = arith.constant 0 : index
    %291 = vector.load %arg16[%c0_98, %c0_99, %c0_100] : memref<2x32x128xbf16, #tpu.memory_space<vmem>>, vector<1x32x128xbf16>
    %292 = vector.shape_cast %291 : vector<1x32x128xbf16> to vector<32x128xbf16>
    %cst_101 = arith.constant dense<0.000000e+00> : vector<16x128xf32>
    %293 = tpu.matmul %290, %292, %cst_101 {dimension_numbers = #tpu.dot_dimension_numbers<[1], [0], [0], [1], [0, 0, 1, 1], [], []>} : vector<16x32xbf16>, vector<32x128xbf16>, vector<16x128xf32> -> vector<16x128xf32>
    %c0_102 = arith.constant 0 : index
    %c0_103 = arith.constant 0 : index
    %c0_104 = arith.constant 0 : index
    %294 = vector.load %arg17[%c0_102, %c0_103, %c0_104] : memref<2x1x128xf32, #tpu.memory_space<vmem>>, vector<1x1x128xf32>
    %295 = vector.shape_cast %294 : vector<1x1x128xf32> to vector<1x128xf32>
    %296 = vector.broadcast %295 : vector<1x128xf32> to vector<16x128xf32>
    %297 = arith.addf %293, %296 : vector<16x128xf32>
    %cst_105 = arith.constant 0.000000e+00 : f32
    %298 = vector.broadcast %cst_105 : f32 to vector<16x128xf32>
    %299 = arith.maximumf %297, %298 : vector<16x128xf32>
    %300 = arith.truncf %299 : vector<16x128xf32> to vector<16x128xbf16>
    %c0_106 = arith.constant 0 : index
    %c0_107 = arith.constant 0 : index
    %c0_108 = arith.constant 0 : index
    %301 = vector.load %arg18[%c0_106, %c0_107, %c0_108] : memref<2x128x32xbf16, #tpu.memory_space<vmem>>, vector<1x128x32xbf16>
    %302 = vector.shape_cast %301 : vector<1x128x32xbf16> to vector<128x32xbf16>
    %cst_109 = arith.constant dense<0.000000e+00> : vector<16x32xf32>
    %303 = tpu.matmul %300, %302, %cst_109 {dimension_numbers = #tpu.dot_dimension_numbers<[1], [0], [0], [1], [0, 0, 1, 1], [], []>} : vector<16x128xbf16>, vector<128x32xbf16>, vector<16x32xf32> -> vector<16x32xf32>
    %c0_110 = arith.constant 0 : index
    %c0_111 = arith.constant 0 : index
    %c0_112 = arith.constant 0 : index
    %304 = vector.load %arg19[%c0_110, %c0_111, %c0_112] : memref<2x1x32xf32, #tpu.memory_space<vmem>>, vector<1x1x32xf32>
    %305 = vector.shape_cast %304 : vector<1x1x32xf32> to vector<1x32xf32>
    %306 = vector.broadcast %305 : vector<1x32xf32> to vector<16x32xf32>
    %307 = arith.addf %303, %306 : vector<16x32xf32>
    %308 = arith.addf %263, %307 : vector<16x32xf32>
    %c1_113 = arith.constant 1 : index
    %c0_114 = arith.constant 0 : index
    %c0_115 = arith.constant 0 : index
    %309 = vector.load %arg8[%c1_113, %c0_114, %c0_115] : memref<2x1x32xf32, #tpu.memory_space<vmem>>, vector<1x1x32xf32>
    %310 = vector.shape_cast %309 : vector<1x1x32xf32> to vector<1x32xf32>
    %c1_116 = arith.constant 1 : index
    %c0_117 = arith.constant 0 : index
    %c0_118 = arith.constant 0 : index
    %311 = vector.load %arg9[%c1_116, %c0_117, %c0_118] : memref<2x1x32xf32, #tpu.memory_space<vmem>>, vector<1x1x32xf32>
    %312 = vector.shape_cast %311 : vector<1x1x32xf32> to vector<1x32xf32>
    %cst_119 = arith.constant dense<0.000000e+00> : vector<16xf32>
    %313 = vector.multi_reduction <add>, %308, %cst_119 [1] : vector<16x32xf32> to vector<16xf32>
    %314 = vector.shape_cast %313 : vector<16xf32> to vector<16x1xf32>
    %cst_120 = arith.constant 3.200000e+01 : f32
    %315 = vector.broadcast %cst_120 : f32 to vector<16x1xf32>
    %316 = arith.divf %314, %315 : vector<16x1xf32>
    %317 = vector.broadcast %316 : vector<16x1xf32> to vector<16x32xf32>
    %318 = arith.subf %308, %317 : vector<16x32xf32>
    %319 = arith.mulf %318, %318 : vector<16x32xf32>
    %cst_121 = arith.constant dense<0.000000e+00> : vector<16xf32>
    %320 = vector.multi_reduction <add>, %319, %cst_121 [1] : vector<16x32xf32> to vector<16xf32>
    %321 = vector.shape_cast %320 : vector<16xf32> to vector<16x1xf32>
    %cst_122 = arith.constant 3.200000e+01 : f32
    %322 = vector.broadcast %cst_122 : f32 to vector<16x1xf32>
    %323 = arith.divf %321, %322 : vector<16x1xf32>
    %324 = vector.broadcast %316 : vector<16x1xf32> to vector<16x32xf32>
    %325 = arith.subf %308, %324 : vector<16x32xf32>
    %cst_123 = arith.constant 9.99999974E-6 : f32
    %326 = vector.broadcast %cst_123 : f32 to vector<16x1xf32>
    %327 = arith.addf %323, %326 : vector<16x1xf32>
    %328 = math.rsqrt %327 : vector<16x1xf32>
    %329 = vector.broadcast %328 : vector<16x1xf32> to vector<16x32xf32>
    %330 = arith.mulf %325, %329 : vector<16x32xf32>
    %331 = vector.broadcast %310 : vector<1x32xf32> to vector<16x32xf32>
    %332 = arith.mulf %330, %331 : vector<16x32xf32>
    %333 = vector.broadcast %312 : vector<1x32xf32> to vector<16x32xf32>
    %334 = arith.addf %332, %333 : vector<16x32xf32>
    %335 = arith.truncf %334 : vector<16x32xf32> to vector<16x32xbf16>
    %c1_124 = arith.constant 1 : index
    %c0_125 = arith.constant 0 : index
    %c0_126 = arith.constant 0 : index
    %336 = vector.load %arg10[%c1_124, %c0_125, %c0_126] : memref<2x32x32xbf16, #tpu.memory_space<vmem>>, vector<1x32x32xbf16>
    %337 = vector.shape_cast %336 : vector<1x32x32xbf16> to vector<32x32xbf16>
    %cst_127 = arith.constant dense<0.000000e+00> : vector<16x32xf32>
    %338 = tpu.matmul %335, %337, %cst_127 {dimension_numbers = #tpu.dot_dimension_numbers<[1], [0], [0], [1], [0, 0, 1, 1], [], []>} : vector<16x32xbf16>, vector<32x32xbf16>, vector<16x32xf32> -> vector<16x32xf32>
    %339 = vector.shape_cast %338 : vector<16x32xf32> to vector<2x8x32xf32>
    %340 = vector.extract_strided_slice %339 {offsets = [0, 0, 0], sizes = [2, 8, 8], strides = [1, 1, 1]} : vector<2x8x32xf32> to vector<2x8x8xf32>
    %341 = vector.extract_strided_slice %339 {offsets = [0, 0, 8], sizes = [2, 8, 8], strides = [1, 1, 1]} : vector<2x8x32xf32> to vector<2x8x8xf32>
    %342 = vector.extract_strided_slice %339 {offsets = [0, 0, 16], sizes = [2, 8, 8], strides = [1, 1, 1]} : vector<2x8x32xf32> to vector<2x8x8xf32>
    %343 = vector.extract_strided_slice %339 {offsets = [0, 0, 24], sizes = [2, 8, 8], strides = [1, 1, 1]} : vector<2x8x32xf32> to vector<2x8x8xf32>
    %344 = tpu.concatenate %340, %341, %342, %343 in 0 : vector<2x8x8xf32>, vector<2x8x8xf32>, vector<2x8x8xf32>, vector<2x8x8xf32> -> vector<8x8x8xf32>
    %345 = arith.truncf %344 : vector<8x8x8xf32> to vector<8x8x8xbf16>
    %c1_128 = arith.constant 1 : index
    %c0_129 = arith.constant 0 : index
    %c0_130 = arith.constant 0 : index
    %346 = vector.load %arg11[%c1_128, %c0_129, %c0_130] : memref<2x32x64xbf16, #tpu.memory_space<vmem>>, vector<1x32x64xbf16>
    %347 = vector.shape_cast %346 : vector<1x32x64xbf16> to vector<32x64xbf16>
    %cst_131 = arith.constant dense<0.000000e+00> : vector<16x64xf32>
    %348 = tpu.matmul %4, %347, %cst_131 {dimension_numbers = #tpu.dot_dimension_numbers<[1], [0], [0], [1], [0, 0, 1, 1], [], []>} : vector<16x32xbf16>, vector<32x64xbf16>, vector<16x64xf32> -> vector<16x64xf32>
    %349 = vector.extract_strided_slice %348 {offsets = [0, 0], sizes = [16, 32], strides = [1, 1]} : vector<16x64xf32> to vector<16x32xf32>
    %350 = vector.shape_cast %349 : vector<16x32xf32> to vector<2x8x32xf32>
    %351 = vector.extract_strided_slice %350 {offsets = [0, 0, 0], sizes = [2, 8, 8], strides = [1, 1, 1]} : vector<2x8x32xf32> to vector<2x8x8xf32>
    %352 = vector.extract_strided_slice %350 {offsets = [0, 0, 8], sizes = [2, 8, 8], strides = [1, 1, 1]} : vector<2x8x32xf32> to vector<2x8x8xf32>
    %353 = vector.extract_strided_slice %350 {offsets = [0, 0, 16], sizes = [2, 8, 8], strides = [1, 1, 1]} : vector<2x8x32xf32> to vector<2x8x8xf32>
    %354 = vector.extract_strided_slice %350 {offsets = [0, 0, 24], sizes = [2, 8, 8], strides = [1, 1, 1]} : vector<2x8x32xf32> to vector<2x8x8xf32>
    %355 = tpu.concatenate %351, %352, %353, %354 in 0 : vector<2x8x8xf32>, vector<2x8x8xf32>, vector<2x8x8xf32>, vector<2x8x8xf32> -> vector<8x8x8xf32>
    %356 = arith.truncf %355 : vector<8x8x8xf32> to vector<8x8x8xbf16>
    %357 = vector.extract_strided_slice %348 {offsets = [0, 32], sizes = [16, 32], strides = [1, 1]} : vector<16x64xf32> to vector<16x32xf32>
    %358 = vector.shape_cast %357 : vector<16x32xf32> to vector<2x8x32xf32>
    %359 = vector.extract_strided_slice %358 {offsets = [0, 0, 0], sizes = [2, 8, 8], strides = [1, 1, 1]} : vector<2x8x32xf32> to vector<2x8x8xf32>
    %360 = vector.extract_strided_slice %358 {offsets = [0, 0, 8], sizes = [2, 8, 8], strides = [1, 1, 1]} : vector<2x8x32xf32> to vector<2x8x8xf32>
    %361 = vector.extract_strided_slice %358 {offsets = [0, 0, 16], sizes = [2, 8, 8], strides = [1, 1, 1]} : vector<2x8x32xf32> to vector<2x8x8xf32>
    %362 = vector.extract_strided_slice %358 {offsets = [0, 0, 24], sizes = [2, 8, 8], strides = [1, 1, 1]} : vector<2x8x32xf32> to vector<2x8x8xf32>
    %363 = tpu.concatenate %359, %360, %361, %362 in 0 : vector<2x8x8xf32>, vector<2x8x8xf32>, vector<2x8x8xf32>, vector<2x8x8xf32> -> vector<8x8x8xf32>
    %364 = arith.truncf %363 : vector<8x8x8xf32> to vector<8x8x8xbf16>
    "tpu.trace_start"() <{level = 10 : i32, message = "bqd,bkd->bqk"}> : () -> ()
    %cst_132 = arith.constant dense<0.000000e+00> : vector<8x8x8xf32>
    %365 = tpu.matmul %345, %356, %cst_132 {dimension_numbers = #tpu.dot_dimension_numbers<[2], [2], [1], [1], [0, 0, 0, 1, 1, 1], [0], [0]>} : vector<8x8x8xbf16>, vector<8x8x8xbf16>, vector<8x8x8xf32> -> vector<8x8x8xf32>
    "tpu.trace_stop"() : () -> ()
    %cst_133 = arith.constant dense<0xFF800000> : vector<8x8xf32>
    %366 = vector.multi_reduction <maximumf>, %365, %cst_133 [2] : vector<8x8x8xf32> to vector<8x8xf32>
    %367 = vector.shape_cast %366 : vector<8x8xf32> to vector<8x8x1xf32>
    %368 = vector.broadcast %367 : vector<8x8x1xf32> to vector<8x8x8xf32>
    %369 = arith.subf %365, %368 : vector<8x8x8xf32>
    %370 = math.exp %369 : vector<8x8x8xf32>
    %cst_134 = arith.constant dense<0.000000e+00> : vector<8x8xf32>
    %371 = vector.multi_reduction <add>, %370, %cst_134 [2] : vector<8x8x8xf32> to vector<8x8xf32>
    %372 = vector.shape_cast %371 : vector<8x8xf32> to vector<8x8x1xf32>
    %373 = tpu.reciprocal %372 {approx = true} : vector<8x8x1xf32> -> vector<8x8x1xf32>
    %374 = vector.broadcast %373 : vector<8x8x1xf32> to vector<8x8x8xf32>
    %375 = arith.mulf %370, %374 : vector<8x8x8xf32>
    %376 = arith.truncf %375 : vector<8x8x8xf32> to vector<8x8x8xbf16>
    "tpu.trace_start"() <{level = 10 : i32, message = "bqk,bkd->bqd"}> : () -> ()
    %cst_135 = arith.constant dense<0.000000e+00> : vector<8x8x8xf32>
    %377 = tpu.matmul %376, %364, %cst_135 {dimension_numbers = #tpu.dot_dimension_numbers<[2], [1], [1], [2], [0, 0, 0, 1, 1, 2], [0], [0]>} : vector<8x8x8xbf16>, vector<8x8x8xbf16>, vector<8x8x8xf32> -> vector<8x8x8xf32>
    "tpu.trace_stop"() : () -> ()
    %378 = vector.extract_strided_slice %377 {offsets = [0, 0, 0], sizes = [2, 8, 8], strides = [1, 1, 1]} : vector<8x8x8xf32> to vector<2x8x8xf32>
    %379 = vector.extract_strided_slice %377 {offsets = [2, 0, 0], sizes = [2, 8, 8], strides = [1, 1, 1]} : vector<8x8x8xf32> to vector<2x8x8xf32>
    %380 = vector.extract_strided_slice %377 {offsets = [4, 0, 0], sizes = [2, 8, 8], strides = [1, 1, 1]} : vector<8x8x8xf32> to vector<2x8x8xf32>
    %381 = vector.extract_strided_slice %377 {offsets = [6, 0, 0], sizes = [2, 8, 8], strides = [1, 1, 1]} : vector<8x8x8xf32> to vector<2x8x8xf32>
    %382 = tpu.concatenate %378, %379, %380, %381 in 2 : vector<2x8x8xf32>, vector<2x8x8xf32>, vector<2x8x8xf32>, vector<2x8x8xf32> -> vector<2x8x32xf32>
    %383 = vector.shape_cast %382 : vector<2x8x32xf32> to vector<16x32xf32>
    %384 = arith.truncf %383 : vector<16x32xf32> to vector<16x32xbf16>
    %c1_136 = arith.constant 1 : index
    %c0_137 = arith.constant 0 : index
    %c0_138 = arith.constant 0 : index
    %385 = vector.load %arg12[%c1_136, %c0_137, %c0_138] : memref<2x32x32xbf16, #tpu.memory_space<vmem>>, vector<1x32x32xbf16>
    %386 = vector.shape_cast %385 : vector<1x32x32xbf16> to vector<32x32xbf16>
    %cst_139 = arith.constant dense<0.000000e+00> : vector<16x32xf32>
    %387 = tpu.matmul %384, %386, %cst_139 {dimension_numbers = #tpu.dot_dimension_numbers<[1], [0], [0], [1], [0, 0, 1, 1], [], []>} : vector<16x32xbf16>, vector<32x32xbf16>, vector<16x32xf32> -> vector<16x32xf32>
    %c1_140 = arith.constant 1 : index
    %c0_141 = arith.constant 0 : index
    %c0_142 = arith.constant 0 : index
    %388 = vector.load %arg13[%c1_140, %c0_141, %c0_142] : memref<2x1x32xf32, #tpu.memory_space<vmem>>, vector<1x1x32xf32>
    %389 = vector.shape_cast %388 : vector<1x1x32xf32> to vector<1x32xf32>
    %390 = vector.broadcast %389 : vector<1x32xf32> to vector<16x32xf32>
    %391 = arith.addf %387, %390 : vector<16x32xf32>
    %392 = arith.addf %308, %391 : vector<16x32xf32>
    %c1_143 = arith.constant 1 : index
    %c0_144 = arith.constant 0 : index
    %c0_145 = arith.constant 0 : index
    %393 = vector.load %arg14[%c1_143, %c0_144, %c0_145] : memref<2x1x32xf32, #tpu.memory_space<vmem>>, vector<1x1x32xf32>
    %394 = vector.shape_cast %393 : vector<1x1x32xf32> to vector<1x32xf32>
    %c1_146 = arith.constant 1 : index
    %c0_147 = arith.constant 0 : index
    %c0_148 = arith.constant 0 : index
    %395 = vector.load %arg15[%c1_146, %c0_147, %c0_148] : memref<2x1x32xf32, #tpu.memory_space<vmem>>, vector<1x1x32xf32>
    %396 = vector.shape_cast %395 : vector<1x1x32xf32> to vector<1x32xf32>
    %cst_149 = arith.constant dense<0.000000e+00> : vector<16xf32>
    %397 = vector.multi_reduction <add>, %392, %cst_149 [1] : vector<16x32xf32> to vector<16xf32>
    %398 = vector.shape_cast %397 : vector<16xf32> to vector<16x1xf32>
    %cst_150 = arith.constant 3.200000e+01 : f32
    %399 = vector.broadcast %cst_150 : f32 to vector<16x1xf32>
    %400 = arith.divf %398, %399 : vector<16x1xf32>
    %401 = vector.broadcast %400 : vector<16x1xf32> to vector<16x32xf32>
    %402 = arith.subf %392, %401 : vector<16x32xf32>
    %403 = arith.mulf %402, %402 : vector<16x32xf32>
    %cst_151 = arith.constant dense<0.000000e+00> : vector<16xf32>
    %404 = vector.multi_reduction <add>, %403, %cst_151 [1] : vector<16x32xf32> to vector<16xf32>
    %405 = vector.shape_cast %404 : vector<16xf32> to vector<16x1xf32>
    %cst_152 = arith.constant 3.200000e+01 : f32
    %406 = vector.broadcast %cst_152 : f32 to vector<16x1xf32>
    %407 = arith.divf %405, %406 : vector<16x1xf32>
    %408 = vector.broadcast %400 : vector<16x1xf32> to vector<16x32xf32>
    %409 = arith.subf %392, %408 : vector<16x32xf32>
    %cst_153 = arith.constant 9.99999974E-6 : f32
    %410 = vector.broadcast %cst_153 : f32 to vector<16x1xf32>
    %411 = arith.addf %407, %410 : vector<16x1xf32>
    %412 = math.rsqrt %411 : vector<16x1xf32>
    %413 = vector.broadcast %412 : vector<16x1xf32> to vector<16x32xf32>
    %414 = arith.mulf %409, %413 : vector<16x32xf32>
    %415 = vector.broadcast %394 : vector<1x32xf32> to vector<16x32xf32>
    %416 = arith.mulf %414, %415 : vector<16x32xf32>
    %417 = vector.broadcast %396 : vector<1x32xf32> to vector<16x32xf32>
    %418 = arith.addf %416, %417 : vector<16x32xf32>
    %419 = arith.truncf %418 : vector<16x32xf32> to vector<16x32xbf16>
    %c1_154 = arith.constant 1 : index
    %c0_155 = arith.constant 0 : index
    %c0_156 = arith.constant 0 : index
    %420 = vector.load %arg16[%c1_154, %c0_155, %c0_156] : memref<2x32x128xbf16, #tpu.memory_space<vmem>>, vector<1x32x128xbf16>
    %421 = vector.shape_cast %420 : vector<1x32x128xbf16> to vector<32x128xbf16>
    %cst_157 = arith.constant dense<0.000000e+00> : vector<16x128xf32>
    %422 = tpu.matmul %419, %421, %cst_157 {dimension_numbers = #tpu.dot_dimension_numbers<[1], [0], [0], [1], [0, 0, 1, 1], [], []>} : vector<16x32xbf16>, vector<32x128xbf16>, vector<16x128xf32> -> vector<16x128xf32>
    %c1_158 = arith.constant 1 : index
    %c0_159 = arith.constant 0 : index
    %c0_160 = arith.constant 0 : index
    %423 = vector.load %arg17[%c1_158, %c0_159, %c0_160] : memref<2x1x128xf32, #tpu.memory_space<vmem>>, vector<1x1x128xf32>
    %424 = vector.shape_cast %423 : vector<1x1x128xf32> to vector<1x128xf32>
    %425 = vector.broadcast %424 : vector<1x128xf32> to vector<16x128xf32>
    %426 = arith.addf %422, %425 : vector<16x128xf32>
    %cst_161 = arith.constant 0.000000e+00 : f32
    %427 = vector.broadcast %cst_161 : f32 to vector<16x128xf32>
    %428 = arith.maximumf %426, %427 : vector<16x128xf32>
    %429 = arith.truncf %428 : vector<16x128xf32> to vector<16x128xbf16>
    %c1_162 = arith.constant 1 : index
    %c0_163 = arith.constant 0 : index
    %c0_164 = arith.constant 0 : index
    %430 = vector.load %arg18[%c1_162, %c0_163, %c0_164] : memref<2x128x32xbf16, #tpu.memory_space<vmem>>, vector<1x128x32xbf16>
    %431 = vector.shape_cast %430 : vector<1x128x32xbf16> to vector<128x32xbf16>
    %cst_165 = arith.constant dense<0.000000e+00> : vector<16x32xf32>
    %432 = tpu.matmul %429, %431, %cst_165 {dimension_numbers = #tpu.dot_dimension_numbers<[1], [0], [0], [1], [0, 0, 1, 1], [], []>} : vector<16x128xbf16>, vector<128x32xbf16>, vector<16x32xf32> -> vector<16x32xf32>
    %c1_166 = arith.constant 1 : index
    %c0_167 = arith.constant 0 : index
    %c0_168 = arith.constant 0 : index
    %433 = vector.load %arg19[%c1_166, %c0_167, %c0_168] : memref<2x1x32xf32, #tpu.memory_space<vmem>>, vector<1x1x32xf32>
    %434 = vector.shape_cast %433 : vector<1x1x32xf32> to vector<1x32xf32>
    %435 = vector.broadcast %434 : vector<1x32xf32> to vector<16x32xf32>
    %436 = arith.addf %432, %435 : vector<16x32xf32>
    %437 = arith.addf %392, %436 : vector<16x32xf32>
    %438 = arith.truncf %437 : vector<16x32xf32> to vector<16x32xbf16>
    %c0_169 = arith.constant 0 : index
    %c0_170 = arith.constant 0 : index
    %439 = vector.load %arg20[%c0_169, %c0_170] : memref<32x128xbf16, #tpu.memory_space<vmem>>, vector<32x128xbf16>
    %cst_171 = arith.constant dense<0.000000e+00> : vector<16x128xf32>
    %440 = tpu.matmul %438, %439, %cst_171 {dimension_numbers = #tpu.dot_dimension_numbers<[1], [0], [0], [1], [0, 0, 1, 1], [], []>} : vector<16x32xbf16>, vector<32x128xbf16>, vector<16x128xf32> -> vector<16x128xf32>
    %c0_172 = arith.constant 0 : index
    %c0_173 = arith.constant 0 : index
    %441 = vector.load %arg21[%c0_172, %c0_173] : memref<1x128xf32, #tpu.memory_space<vmem>>, vector<1x128xf32>
    %442 = vector.broadcast %441 : vector<1x128xf32> to vector<16x128xf32>
    %443 = arith.addf %440, %442 : vector<16x128xf32>
    %444 = vector.shape_cast %443 : vector<16x128xf32> to vector<2x8x128xf32>
    %c0_174 = arith.constant 0 : index
    %c0_175 = arith.constant 0 : index
    %c0_176 = arith.constant 0 : index
    %445 = vector.load %arg22[%c0_174, %c0_175, %c0_176] : memref<2x8x128xf32, #tpu.memory_space<vmem>>, vector<2x8x128xf32>
    tpu.vector_store %arg22[%c0_174, %c0_175, %c0_176], %444 {strides = array<i32>} : memref<2x8x128xf32, #tpu.memory_space<vmem>>, vector<2x8x128xf32>,
    return
  }
  func.func @transform_0(%arg0: i32) -> (i32, i32, i32) {
    %c0_i32 = arith.constant 0 : i32
    %c0_i32_0 = arith.constant 0 : i32
    %c0_i32_1 = arith.constant 0 : i32
    %c0_i32_2 = arith.constant 0 : i32
    return %c0_i32, %c0_i32_0, %c0_i32_1 : i32, i32, i32
  }
  func.func @transform_1(%arg0: i32) -> (i32, i32, i32) {
    %c0_i32 = arith.constant 0 : i32
    %c0_i32_0 = arith.constant 0 : i32
    %c0_i32_1 = arith.constant 0 : i32
    %c0_i32_2 = arith.constant 0 : i32
    return %c0_i32, %c0_i32_0, %c0_i32_1 : i32, i32, i32
  }
  func.func @transform_2(%arg0: i32) -> (i32, i32, i32) {
    %c0_i32 = arith.constant 0 : i32
    %c0_i32_0 = arith.constant 0 : i32
    %c0_i32_1 = arith.constant 0 : i32
    %c0_i32_2 = arith.constant 0 : i32
    return %c0_i32, %c0_i32_0, %c0_i32_1 : i32, i32, i32
  }
  func.func @transform_3(%arg0: i32) -> (i32, i32, i32) {
    %c0_i32 = arith.constant 0 : i32
    %c0_i32_0 = arith.constant 0 : i32
    %c0_i32_1 = arith.constant 0 : i32
    %c0_i32_2 = arith.constant 0 : i32
    return %c0_i32, %c0_i32_0, %c0_i32_1 : i32, i32, i32
  }
  func.func @transform_4(%arg0: i32) -> (i32, i32, i32) {
    %c0_i32 = arith.constant 0 : i32
    %c0_i32_0 = arith.constant 0 : i32
    %c0_i32_1 = arith.constant 0 : i32
    %c0_i32_2 = arith.constant 0 : i32
    return %c0_i32, %c0_i32_0, %c0_i32_1 : i32, i32, i32
  }
  func.func @transform_5(%arg0: i32) -> (i32, i32, i32) {
    %c0_i32 = arith.constant 0 : i32
    %c0_i32_0 = arith.constant 0 : i32
    %c0_i32_1 = arith.constant 0 : i32
    %c0_i32_2 = arith.constant 0 : i32
    return %c0_i32, %c0_i32_0, %c0_i32_1 : i32, i32, i32
  }
  func.func @transform_6(%arg0: i32) -> (i32, i32, i32) {
    %c0_i32 = arith.constant 0 : i32
    %c0_i32_0 = arith.constant 0 : i32
    %c0_i32_1 = arith.constant 0 : i32
    %c0_i32_2 = arith.constant 0 : i32
    return %c0_i32, %c0_i32_0, %c0_i32_1 : i32, i32, i32
  }
  func.func @transform_7(%arg0: i32) -> (i32, i32, i32) {
    %c0_i32 = arith.constant 0 : i32
    %c0_i32_0 = arith.constant 0 : i32
    %c0_i32_1 = arith.constant 0 : i32
    %c0_i32_2 = arith.constant 0 : i32
    return %c0_i32, %c0_i32_0, %c0_i32_1 : i32, i32, i32
  }
  func.func @transform_8(%arg0: i32) -> (i32, i32, i32) {
    %c0_i32 = arith.constant 0 : i32
    %c0_i32_0 = arith.constant 0 : i32
    %c0_i32_1 = arith.constant 0 : i32
    %c0_i32_2 = arith.constant 0 : i32
    return %c0_i32, %c0_i32_0, %c0_i32_1 : i32, i32, i32
  }
  func.func @transform_9(%arg0: i32) -> (i32, i32, i32) {
    %c0_i32 = arith.constant 0 : i32
    %c0_i32_0 = arith.constant 0 : i32
    %c0_i32_1 = arith.constant 0 : i32
    %c0_i32_2 = arith.constant 0 : i32
    return %c0_i32, %c0_i32_0, %c0_i32_1 : i32, i32, i32
  }
  func.func @transform_10(%arg0: i32) -> (i32, i32, i32) {
    %c0_i32 = arith.constant 0 : i32
    %c0_i32_0 = arith.constant 0 : i32
    %c0_i32_1 = arith.constant 0 : i32
    %c0_i32_2 = arith.constant 0 : i32
    return %c0_i32, %c0_i32_0, %c0_i32_1 : i32, i32, i32
  }
  func.func @transform_11(%arg0: i32) -> (i32, i32, i32) {
    %c0_i32 = arith.constant 0 : i32
    %c0_i32_0 = arith.constant 0 : i32
    %c0_i32_1 = arith.constant 0 : i32
    %c0_i32_2 = arith.constant 0 : i32
    return %c0_i32, %c0_i32_0, %c0_i32_1 : i32, i32, i32
  }
  func.func @transform_12(%arg0: i32) -> (i32, i32, i32) {
    %c0_i32 = arith.constant 0 : i32
    %c0_i32_0 = arith.constant 0 : i32
    %c0_i32_1 = arith.constant 0 : i32
    %c0_i32_2 = arith.constant 0 : i32
    return %c0_i32, %c0_i32_0, %c0_i32_1 : i32, i32, i32
  }
  func.func @transform_13(%arg0: i32) -> (i32, i32, i32) {
    %c0_i32 = arith.constant 0 : i32
    %c0_i32_0 = arith.constant 0 : i32
    %c0_i32_1 = arith.constant 0 : i32
    %c0_i32_2 = arith.constant 0 : i32
    return %c0_i32, %c0_i32_0, %c0_i32_1 : i32, i32, i32
  }
  func.func @transform_14(%arg0: i32) -> (i32, i32, i32) {
    %c0_i32 = arith.constant 0 : i32
    %c0_i32_0 = arith.constant 0 : i32
    %c0_i32_1 = arith.constant 0 : i32
    %c0_i32_2 = arith.constant 0 : i32
    return %c0_i32, %c0_i32_0, %c0_i32_1 : i32, i32, i32
  }
  func.func @transform_15(%arg0: i32) -> (i32, i32, i32) {
    %c0_i32 = arith.constant 0 : i32
    %c0_i32_0 = arith.constant 0 : i32
    %c0_i32_1 = arith.constant 0 : i32
    %c0_i32_2 = arith.constant 0 : i32
    return %c0_i32, %c0_i32_0, %c0_i32_1 : i32, i32, i32
  }
  func.func @transform_16(%arg0: i32) -> (i32, i32, i32) {
    %c0_i32 = arith.constant 0 : i32
    %c0_i32_0 = arith.constant 0 : i32
    %c0_i32_1 = arith.constant 0 : i32
    %c0_i32_2 = arith.constant 0 : i32
    return %c0_i32, %c0_i32_0, %c0_i32_1 : i32, i32, i32
  }
  func.func @transform_17(%arg0: i32) -> (i32, i32, i32) {
    %c0_i32 = arith.constant 0 : i32
    %c0_i32_0 = arith.constant 0 : i32
    %c0_i32_1 = arith.constant 0 : i32
    %c0_i32_2 = arith.constant 0 : i32
    return %c0_i32, %c0_i32_0, %c0_i32_1 : i32, i32, i32
  }
  func.func @transform_18(%arg0: i32) -> (i32, i32, i32) {
    %c0_i32 = arith.constant 0 : i32
    %c0_i32_0 = arith.constant 0 : i32
    %c0_i32_1 = arith.constant 0 : i32
    %c0_i32_2 = arith.constant 0 : i32
    return %c0_i32, %c0_i32_0, %c0_i32_1 : i32, i32, i32
  }
  func.func @transform_19(%arg0: i32) -> (i32, i32) {
    %c0_i32 = arith.constant 0 : i32
    %c0_i32_0 = arith.constant 0 : i32
    %c0_i32_1 = arith.constant 0 : i32
    return %c0_i32, %c0_i32_0 : i32, i32
  }
  func.func @transform_20(%arg0: i32) -> (i32, i32) {
    %c0_i32 = arith.constant 0 : i32
    %c0_i32_0 = arith.constant 0 : i32
    %c0_i32_1 = arith.constant 0 : i32
    return %c0_i32, %c0_i32_0 : i32, i32
  }
  func.func @transform_21(%arg0: i32) -> (i32, i32, i32) {
    %c0_i32 = arith.constant 0 : i32
    %c0_i32_0 = arith.constant 0 : i32
    %c0_i32_1 = arith.constant 0 : i32
    %c0_i32_2 = arith.constant 0 : i32
    return %c0_i32, %c0_i32_0, %c0_i32_1 : i32, i32, i32
  }
}

</mosaic_0001>

<bundles_post_ra>
// kernel: decoder_forward.1
= control target key start
LH: loop header
LB: loop body
LE: loop exit
PB: predicated region body
PF: predicated region fallthrough
CT: control target
= control target key end

     0   :  { %s7821_s0 = inlined_call_operand.vmem [shape: f32[2,8,32], index: 0, kind: input, shape index: {}]   ;;  %s7822_s1 = inlined_call_operand.vmem [shape: f32[2,8,32], index: 1, kind: input, shape index: {}]   ;;  %s7823_s2 = inlined_call_operand.vmem [shape: f32[2,1,32], index: 2, kind: input, shape index: {}]   ;;  %s7824_s3 = inlined_call_operand.vmem [shape: f32[2,1,32], index: 3, kind: input, shape index: {}]   ;;  %s7825_s4 = inlined_call_operand.vmem [shape: bf16[2,32,96], index: 4, kind: input, shape index: {}]   ;;  %s7826_s5 = inlined_call_operand.vmem [shape: bf16[2,32,32], index: 5, kind: input, shape index: {}]   ;;  %s7827_s6 = inlined_call_operand.vmem [shape: f32[2,1,32], index: 6, kind: input, shape index: {}]   ;;  %s7828_s7 = inlined_call_operand.vmem [shape: f32[2,1,32], index: 7, kind: input, shape index: {}]   ;;  %s7829_s8 = inlined_call_operand.vmem [shape: f32[2,1,32], index: 8, kind: input, shape index: {}]   ;;  %s7830_s9 = inlined_call_operand.vmem [shape: bf16[2,32,32], index: 9, kind: input, shape index: {}]   ;;  %s7831_s10 = inlined_call_operand.vmem [shape: bf16[2,32,64], index: 10, kind: input, shape index: {}]   ;;  %s7832_s11 = inlined_call_operand.vmem [shape: bf16[2,32,32], index: 11, kind: input, shape index: {}]   ;;  %s7833_s12 = inlined_call_operand.vmem [shape: f32[2,1,32], index: 12, kind: input, shape index: {}]   ;;  %s7834_s13 = inlined_call_operand.vmem [shape: f32[2,1,32], index: 13, kind: input, shape index: {}]   ;;  %s7835_s14 = inlined_call_operand.vmem [shape: f32[2,1,32], index: 14, kind: input, shape index: {}]   ;;  %s7836_s15 = inlined_call_operand.vmem [shape: bf16[2,32,128], index: 15, kind: input, shape index: {}]   ;;  %s7837_s16 = inlined_call_operand.vmem [shape: f32[2,1,128], index: 16, kind: input, shape index: {}]   ;;  %s7838_s17 = inlined_call_operand.vmem [shape: bf16[2,128,32], index: 17, kind: input, shape index: {}]   ;;  %s7839_s18 = inlined_call_operand.vmem [shape: f32[2,1,32], index: 18, kind: input, shape index: {}]   ;;  %s7840_s19 = inlined_call_operand.vmem [shape: bf16[32,128], index: 19, kind: input, shape index: {}]   ;;  %s7841_s20 = inlined_call_operand.vmem [shape: f32[1,128], index: 20, kind: input, shape index: {}]   ;;  %s7842_s21 = inlined_call_operand.hbm [shape: f32[2,8,128], index: 21, kind: output, shape index: {}]  }
   0x1   :  { %7853 = sst [smem:[#allocation5_spill]] %s7821_s0 }
   0x2   :  { %7854 = sst [smem:[#allocation6_spill]] %s7822_s1 }
   0x3   :  { %7855 = sst [smem:[#allocation7_spill]] %s7823_s2 }
   0x4   :  { %7856 = sst [smem:[#allocation8_spill]] %s7824_s3 }
   0x5   :  { %7857 = sst [smem:[#allocation9_spill]] %s7825_s4 }
   0x6   :  { %7858 = sst [smem:[#allocation10_spill]] %s7826_s5 }
   0x7   :  { %s7859_s26 = sld [smem:[#allocation5_spill]]  ;;  %vm82_vm0 = vcmask 261120  }
   0xd   :  { %v6635_v0 = vld [vmem:[%s7859_s26] sm:$0xff]  ;;  %v71_v1 = vld [vmem:[%s7859_s26 + $0x8] sm:$0xff] }
   0xe   :  { %v83_v2 = vsel %vm82_vm0, %v6635_v0, 0.0  ;;  %v86_v3 = vsel %vm82_vm0, %v71_v1, 0.0 }
   0xf   :  { %84 = vadd.xlane.f32.xlu0 %v83_v2 }
  0x13   :  { %87 = vadd.xlane.f32.xlu0 %v86_v3 }
  0x14   :  { %26 = vsyncpa [#allocation3], 0  ;;  %s7860_s0 = sld [smem:[#allocation9_spill]]  ;;  %v6510_v15 = vmov 0.0   ;;  %vm6511_vm1 = vmmov 0   ;;  %s7861_s23 = sld [smem:[#allocation7_spill]] }
  0x15   :  { %5601 = vmatprep.subr.bf16.mxu1 %v6510_v15  ;;  %5605 = vmatprep.mubr.msk.bf16.mxu1 %vm6511_vm1, %v6510_v15  ;;  %s7862_s2 = sld [smem:[#allocation8_spill]]  ;;  %s6512_s25 = smov 112   ;;  %vm218_vm2 = vcmask 64512   ;;  %vm719_vm3 = vcmask 1043456   ;;  %vm1125_vm5 = vcmask 130048   ;;  %vm1128_vm6 = vcmask 195584  }
  0x16   :  { %5615 = vmatprep.subr.bf16.mxu0 %v6510_v15  ;;  %5617 = vmatprep.mubr.msk.bf16.mxu0 %vm6511_vm1, %v6510_v15  ;;  %s6513_s27 = smov 120   ;;  %s6514_s3 = smov 104  }
  0x17   :  { %s6515_s28 = smov 96   ;;  %s6516_s29 = smov 64  }
  0x18   :  { %s7849_s4 = smov 8   ;;  %s7865_s22 = sld [smem:[#allocation10_spill]] }
  0x19   :  { %s7851_s30 = smov 24   ;;  %s7867_s24 = smov 24  }
  0x1a   :  { %v6291_v14 = vld [vmem:[%s7860_s0] sm:$0xff]   ;;  %v6292_v16 = vld [vmem:[%s7860_s0 + $0x8] sm:$0xff]   ;;  %s7868_s1 = sld [smem:[#allocation6_spill]] }
  0x1b   :  { %5602 = vmatpush3.bf16.msra.mxu1 %v6291_v14  ;;  %v5226_v25 = vld [vmem:[%s7861_s23] ss:$0 sm:$0xff] }
  0x1c   :  { %5603 = vmatprep.subr.bf16.mxu1 %v6510_v15  ;;  %v5227_v29 = vld [vmem:[%s7862_s2] ss:$0 sm:$0xff] }
  0x1f   :  { %5604 = vmatpush3.bf16.msra.mxu1 %v6292_v16 }
  0x20   :  { %5609 = vmatprep.subr.bf16.mxu1 %v6510_v15 }
  0x9c   :  { %v85_v4 = vpop.xlane.xlu0 %84 }
  0x9d   :  { %v90_v5 = vmul.f32 0.03125, %v85_v4 }
  0x9f   :  { %v92_v6 = vsub.f32 %v6635_v0, %v90_v5 }
  0xa0   :  { %v88_v7 = vpop.xlane.xlu0 %87 }
  0xa1   :  { %v91_v8 = vmul.f32 0.03125, %v88_v7  ;;  %v94_v9 = vmul.f32 %v92_v6, %v92_v6 }
  0xa3   :  { %v93_v10 = vsub.f32 %v71_v1, %v91_v8  ;;  %v96_v11 = vsel %vm82_vm0, %v94_v9, 0.0 }
  0xa4   :  { %97 = vadd.xlane.f32.xlu1 %v96_v11  ;;  %v75_v11 = vlaneseq }
  0xa5   :  { %v95_v12 = vmul.f32 %v93_v10, %v93_v10 }
  0xa7   :  { %v99_v13 = vsel %vm82_vm0, %v95_v12, 0.0  ;;  %v76_v12 = vshrl.u32 %v75_v11, 7 }
  0xa8   :  { %100 = vadd.xlane.f32.xlu1 %v99_v13  ;;  %v78_v13 = vand.u32 127, %v75_v11 }
  0xaa   :  { %vm6751_vm4 = vcmp.ge.s32.totalorder %v76_v12, %v78_v13 }
 0x131   :  { %v98_v17 = vpop.xlane.xlu1 %97 }
 0x132   :  { %v102_v18 = vmul.f32 0.03125, %v98_v17 }
 0x134   :  { %v104_v19 = vadd.f32 1e-05, %v102_v18 }
 0x135   :  { %v101_v20 = vpop.xlane.xlu1 %100 }
 0x136   :  { %6333 = vrsqrt.f32 %v104_v19  ;;  %v103_v21 = vmul.f32 0.03125, %v101_v20 }
 0x138   :  { %v105_v22 = vadd.f32 1e-05, %v103_v21 }
 0x13a   :  { %6335 = vrsqrt.f32 %v105_v22 }
 0x140   :  { %v6334_v23 = vpop.eup %6333 }
 0x141   :  { %v108_v24 = vmul.f32 %v6334_v23, %v92_v6 }
 0x143   :  { %v116_v28 = vmul.f32 %v5226_v25, %v108_v24 }
 0x144   :  { %v6336_v26 = vpop.eup %6335 }
 0x145   :  { %v109_v27 = vmul.f32 %v6336_v26, %v93_v10  ;;  %v124_v31 = vadd.f32 %v5227_v29, %v116_v28 }
 0x147   :  { %v117_v30 = vmul.f32 %v5226_v25, %v109_v27 }
 0x149   :  { %v125_v32 = vadd.f32 %v5227_v29, %v117_v30 }
 0x14b   :  { %v126_v33 = vpack.c.bf16 %v125_v32, %v124_v31 }
 0x14d   :  { %5606 = vmatmul.mubr.msk.bf16.vlgmr.msra.gmra.mrb[0].mxu1 %vm82_vm0, %v126_v33 }
 0x14e   :  { %5611 = vmatprep.mubr.msk.bf16.mxu1 %vm6511_vm1, %v6510_v15 }
 0x220   :  { %v180_v34 = vpop.f32.mrb[0].mxu1 }
 0x221   :  { %v5607_v35 = vpop.f32.mrb[1].mxu1  ;;  %v207_v40 = vpack.c.bf16 %v180_v34, %v180_v34 }
 0x222   :  { %v183_v36 = vpop.f32.mrb[2].mxu1 }
 0x223   :  { %v5608_v37 = vpop.f32.mrb[3].mxu1  ;;  %v6146_v38 = vpack.i.bf16 %v183_v36, %v180_v34  ;;  %v6671_v39 = vpack.c.bf16 %v183_v36, %v183_v36 }
 0x225   :  { %6147 = vrot.lane.b32.xlu1 %v6146_v38, %s6512_s25  ;;  %6142 = vrot.lane.b32.xlu0 %v6146_v38, %s6513_s27 }
 0x229   :  { %6152 = vrot.lane.b32.xlu1 %v6146_v38, %s6514_s3  ;;  %266 = vrot.lane.b32.xlu0 %v6671_v39, %s6515_s28 }
 0x22d   :  { %216 = vrot.lane.b32.xlu1 %v207_v40, %s6515_s28 }
 0x297   :  { %v6148_v41 = vpop.permute.xlu1 %6147  ;;  %v6143_v42 = vpop.permute.xlu0 %6142 }
 0x298   :  { %v6145_v43 = vunpack.i.h.bf16 %v6143_v42  ;;  %v6144_v44 = vunpack.i.l.bf16 %v6143_v42  ;;  %v6150_v45 = vunpack.i.h.bf16 %v6148_v41  ;;  %v6149_v46 = vunpack.i.l.bf16 %v6148_v41 }
 0x29a   :  { %v6677_v47 = vpack.c.bf16 %v6144_v44, %v6144_v44  ;;  %v6679_v48 = vpack.c.bf16 %v6145_v43, %v6145_v43  ;;  %v6686_v54 = vpack.c.bf16 %v6149_v46, %v6149_v46  ;;  %v6688_v55 = vpack.c.bf16 %v6150_v45, %v6150_v45 }
 0x29b   :  { %v6153_v49 = vpop.permute.xlu1 %6152  ;;  %v267_v50 = vpop.permute.xlu0 %266 }
 0x29c   :  { %315 = vrot.lane.b32.xlu1 %v6677_v47, %s6515_s28  ;;  %364 = vrot.lane.b32.xlu0 %v6679_v48, %s6515_s28  ;;  %v272_v51 = vsel %vm218_vm2, %v267_v50, 0  ;;  %v6155_v52 = vunpack.i.h.bf16 %v6153_v49  ;;  %v6154_v53 = vunpack.i.l.bf16 %v6153_v49 }
 0x29d   :  { %5616 = vmatpush3.bf16.xpose.msra.mxu0 %v272_v51 }
 0x29e   :  { %5627 = vmatprep.subr.bf16.mxu0 %v6510_v15  ;;  %v6696_v58 = vpack.c.bf16 %v6154_v53, %v6154_v53  ;;  %v6698_v59 = vpack.c.bf16 %v6155_v52, %v6155_v52 }
 0x29f   :  { %v217_v56 = vpop.permute.xlu1 %216 }
 0x2a0   :  { %v223_v57 = vsel %vm218_vm2, %v217_v56, 0  ;;  %413 = vrot.lane.b32.xlu1 %v6686_v54, %s6515_s28  ;;  %462 = vrot.lane.b32.xlu0 %v6688_v55, %s6515_s28 }
 0x2a1   :  { %5610 = vmatpush3.bf16.xpose.msra.mxu1 %v223_v57 }
 0x2a2   :  { %5621 = vmatprep.subr.bf16.mxu1 %v6510_v15 }
 0x2a4   :  { %511 = vrot.lane.b32.xlu1 %v6696_v58, %s6515_s28  ;;  %560 = vrot.lane.b32.xlu0 %v6698_v59, %s6515_s28 }
 0x2a5   :  { %5618 = vmatmul.mubr.msk.bf16.vlgmr.msra.gmra.mrb[0].mxu0 %vm218_vm2, %v6671_v39 }
 0x2a6   :  { %5629 = vmatprep.mubr.msk.bf16.mxu0 %vm6511_vm1, %v6510_v15 }
 0x2a8   :  { %5612 = vmatmul.mubr.msk.bf16.vlgmr.msra.gmra.mrb[4].mxu1 %vm218_vm2, %v207_v40  ;;  %714 = vrot.lane.b32.xlu1 %v207_v40, %s6516_s29 }
 0x2a9   :  { %5623 = vmatprep.mubr.msk.bf16.mxu1 %vm6511_vm1, %v6510_v15 }
 0x30e   :  { %v316_v60 = vpop.permute.xlu1 %315  ;;  %v365_v61 = vpop.permute.xlu0 %364 }
 0x30f   :  { %v321_v62 = vsel %vm218_vm2, %v316_v60, 0  ;;  %v370_v63 = vsel %vm218_vm2, %v365_v61, 0 }
 0x310   :  { %5622 = vmatpush3.bf16.xpose.msra.mxu1 %v321_v62  ;;  %5628 = vmatpush3.bf16.xpose.msra.mxu0 %v370_v63 }
 0x311   :  { %5633 = vmatprep.subr.bf16.mxu1 %v6510_v15  ;;  %5639 = vmatprep.subr.bf16.mxu0 %v6510_v15 }
 0x312   :  { %v414_v1 = vpop.permute.xlu1 %413  ;;  %v463_v2 = vpop.permute.xlu0 %462 }
 0x313   :  { %v419_v3 = vsel %vm218_vm2, %v414_v1, 0  ;;  %v468_v4 = vsel %vm218_vm2, %v463_v2, 0 }
 0x316   :  { %v512_v5 = vpop.permute.xlu1 %511  ;;  %v561_v6 = vpop.permute.xlu0 %560 }
 0x317   :  { %5624 = vmatmul.mubr.msk.bf16.vlgmr.msra.gmra.mrb[8].mxu1 %vm218_vm2, %v6677_v47  ;;  %5630 = vmatmul.mubr.msk.bf16.vlgmr.msra.gmra.mrb[4].mxu0 %vm218_vm2, %v6679_v48  ;;  %v517_v7 = vsel %vm218_vm2, %v512_v5, 0  ;;  %v566_v8 = vsel %vm218_vm2, %v561_v6, 0 }
 0x318   :  { %5634 = vmatpush3.bf16.xpose.msra.mxu1 %v419_v3  ;;  %5640 = vmatpush3.bf16.xpose.msra.mxu0 %v468_v4 }
 0x319   :  { %5635 = vmatprep.mubr.msk.bf16.mxu1 %vm6511_vm1, %v6510_v15  ;;  %5641 = vmatprep.mubr.msk.bf16.mxu0 %vm6511_vm1, %v6510_v15 }
 0x31a   :  { %5645 = vmatprep.subr.bf16.mxu1 %v6510_v15  ;;  %5651 = vmatprep.subr.bf16.mxu0 %v6510_v15  ;;  %v715_v9 = vpop.permute.xlu1 %714 }
 0x31b   :  { %v721_v10 = vsel %vm719_vm3, %v715_v9, 0 }
 0x31f   :  { %5636 = vmatmul.mubr.msk.bf16.vlgmr.msra.gmra.mrb[12].mxu1 %vm218_vm2, %v6686_v54  ;;  %5642 = vmatmul.mubr.msk.bf16.vlgmr.msra.gmra.mrb[8].mxu0 %vm218_vm2, %v6688_v55 }
 0x320   :  { %5646 = vmatpush3.bf16.xpose.msra.mxu1 %v517_v7  ;;  %5652 = vmatpush3.bf16.xpose.msra.mxu0 %v566_v8 }
 0x321   :  { %5647 = vmatprep.mubr.msk.bf16.mxu1 %vm6511_vm1, %v6510_v15  ;;  %5653 = vmatprep.mubr.msk.bf16.mxu0 %vm6511_vm1, %v6510_v15 }
 0x322   :  { %5657 = vmatprep.subr.bf16.mxu1 %v6510_v15  ;;  %5663 = vmatprep.subr.bf16.mxu0 %v6510_v15 }
 0x327   :  { %5648 = vmatmul.mubr.msk.bf16.vlgmr.msra.gmra.mrb[16].mxu1 %vm218_vm2, %v6696_v58  ;;  %5654 = vmatmul.mubr.msk.bf16.vlgmr.msra.gmra.mrb[12].mxu0 %vm218_vm2, %v6698_v59 }
 0x328   :  { %5658 = vmatpush3.bf16.msra.mxu1 %v721_v10  ;;  %5665 = vmatprep.mubr.msk.bf16.mxu0 %vm6511_vm1, %v6510_v15 }
 0x329   :  { %5659 = vmatprep.mubr.msk.bf16.mxu1 %vm6511_vm1, %v6510_v15  ;;  %5669 = vmatprep.subr.bf16.mxu1 %v6510_v15 }
 0x378   :  { %v308_v16 = vpop.f32.mrb[0].mxu0 }
 0x379   :  { %v611_v17 = vsel %vm6751_vm4, %v308_v16, -inf  ;;  %v5619_v18 = vpop.f32.mrb[1].mxu0 }
 0x37a   :  { %v311_v19 = vpop.f32.mrb[2].mxu0  ;;  %v621_v20 = vsel %vm218_vm2, %v611_v17, -inf }
 0x37b   :  { %622 = vmax.xlane.f32.xlu0 %v621_v20  ;;  %v5620_v21 = vpop.f32.mrb[3].mxu0  ;;  %v259_v22 = vpop.f32.mrb[4].mxu1 }
 0x37c   :  { %v610_v23 = vsel %vm6751_vm4, %v259_v22, -inf  ;;  %v5613_v24 = vpop.f32.mrb[5].mxu1 }
 0x37d   :  { %v262_v25 = vpop.f32.mrb[6].mxu1  ;;  %v618_v26 = vsel %vm218_vm2, %v610_v23, -inf }
 0x37e   :  { %619 = vmax.xlane.f32.xlu1 %v618_v26  ;;  %v5614_v27 = vpop.f32.mrb[7].mxu1 }
 0x3ea   :  { %v357_v28 = vpop.f32.mrb[8].mxu1  ;;  %v406_v29 = vpop.f32.mrb[4].mxu0 }
 0x3eb   :  { %v612_v30 = vsel %vm6751_vm4, %v357_v28, -inf  ;;  %v5625_v31 = vpop.f32.mrb[9].mxu1  ;;  %v5631_v32 = vpop.f32.mrb[5].mxu0  ;;  %v613_v36 = vsel %vm6751_vm4, %v406_v29, -inf }
 0x3ec   :  { %v360_v33 = vpop.f32.mrb[10].mxu1  ;;  %v409_v34 = vpop.f32.mrb[6].mxu0  ;;  %v624_v35 = vsel %vm218_vm2, %v612_v30, -inf  ;;  %v627_v40 = vsel %vm218_vm2, %v613_v36, -inf }
 0x3ed   :  { %v5632_v37 = vpop.f32.mrb[7].mxu0  ;;  %625 = vmax.xlane.f32.xlu0 %v624_v35  ;;  %v5626_v38 = vpop.f32.mrb[11].mxu1 }
 0x3f1   :  { %628 = vmax.xlane.f32.xlu0 %v627_v40 }
 0x3f2   :  { %v455_v41 = vpop.f32.mrb[12].mxu1  ;;  %v504_v42 = vpop.f32.mrb[8].mxu0 }
 0x3f3   :  { %v614_v43 = vsel %vm6751_vm4, %v455_v41, -inf  ;;  %v6771_v44 = vsel %vm6751_vm4, %v504_v42, -inf  ;;  %v5637_v45 = vpop.f32.mrb[13].mxu1  ;;  %v5643_v46 = vpop.f32.mrb[9].mxu0 }
 0x3f4   :  { %v458_v49 = vpop.f32.mrb[14].mxu1  ;;  %v507_v50 = vpop.f32.mrb[10].mxu0  ;;  %v633_v51 = vsel %vm218_vm2, %v6771_v44, -inf  ;;  %v630_v52 = vsel %vm218_vm2, %v614_v43, -inf }
 0x3f5   :  { %v5644_v53 = vpop.f32.mrb[11].mxu0  ;;  %634 = vmax.xlane.f32.xlu0 %v633_v51  ;;  %631 = vmax.xlane.f32.xlu1 %v630_v52  ;;  %v5638_v56 = vpop.f32.mrb[15].mxu1 }
 0x3fa   :  { %v553_v57 = vpop.f32.mrb[16].mxu1  ;;  %v602_v60 = vpop.f32.mrb[12].mxu0 }
 0x3fb   :  { %v616_v61 = vsel %vm6751_vm4, %v553_v57, -inf  ;;  %v6780_v62 = vsel %vm6751_vm4, %v602_v60, -inf  ;;  %v5649_v63 = vpop.f32.mrb[17].mxu1  ;;  %v5655_v1 = vpop.f32.mrb[13].mxu0 }
 0x3fc   :  { %v556_v2 = vpop.f32.mrb[18].mxu1  ;;  %v605_v3 = vpop.f32.mrb[14].mxu0  ;;  %v639_v4 = vsel %vm218_vm2, %v6780_v62, -inf  ;;  %v636_v5 = vsel %vm218_vm2, %v616_v61, -inf }
 0x3fd   :  { %v5656_v6 = vpop.f32.mrb[15].mxu0  ;;  %640 = vmax.xlane.f32.xlu0 %v639_v4  ;;  %637 = vmax.xlane.f32.xlu1 %v636_v5  ;;  %v5650_v7 = vpop.f32.mrb[19].mxu1 }
 0x408   :  { %v623_v8 = vpop.xlane.xlu0 %622 }
 0x409   :  { %v643_v9 = vsub.f32 %v611_v17, %v623_v8 }
 0x40b   :  { %v620_v10 = vpop.xlane.xlu1 %619  ;;  %v652_v11 = vmul.f32 1.442695, %v643_v9 }
 0x40c   :  { %v642_v12 = vsub.f32 %v610_v23, %v620_v10 }
 0x40d   :  { %6337 = vpow2.f32 %v652_v11 }
 0x40e   :  { %811 = vrot.lane.b32.xlu1 %v6677_v47, %s6516_s29  ;;  %v650_v13 = vmul.f32 1.442695, %v642_v12 }
 0x410   :  { %6339 = vpow2.f32 %v650_v13 }
 0x412   :  { %859 = vrot.lane.b32.xlu1 %v6679_v48, %s6516_s29 }
 0x413   :  { %763 = vrot.lane.b32.xlu0 %v6671_v39, %s6516_s29 }
 0x417   :  { %v6338_v16 = vpop.eup %6337 }
 0x418   :  { %v669_v18 = vsel %vm218_vm2, %v6338_v16, 0.0 }
 0x41a   :  { %v6792_v19 = vpop.eup %6339 }
 0x41b   :  { %v666_v47 = vsel %vm218_vm2, %v6792_v19, 0.0 }
 0x432   :  { %670 = vadd.xlane.f32.xlu0 %v669_v18 }
 0x436   :  { %667 = vadd.xlane.f32.xlu1 %v666_v47 }
 0x447   :  { %907 = vrot.lane.b32.xlu1 %v6686_v54, %s6516_s29 }
 0x47a   :  { %v626_v39 = vpop.xlane.xlu0 %625 }
 0x47b   :  { %v644_v48 = vsub.f32 %v612_v30, %v626_v39 }
 0x47d   :  { %v654_v17 = vmul.f32 1.442695, %v644_v48 }
 0x47e   :  { %v629_v20 = vpop.xlane.xlu0 %628 }
 0x47f   :  { %6341 = vpow2.f32 %v654_v17  ;;  %v645_v21 = vsub.f32 %v613_v36, %v629_v20 }
 0x481   :  { %v656_v22 = vmul.f32 1.442695, %v645_v21 }
 0x482   :  { %v632_v23 = vpop.xlane.xlu1 %631  ;;  %v635_v26 = vpop.xlane.xlu0 %634 }
 0x483   :  { %6343 = vpow2.f32 %v656_v22  ;;  %v646_v24 = vsub.f32 %v614_v43, %v632_v23  ;;  %v647_v41 = vsub.f32 %v6771_v44, %v635_v26 }
 0x485   :  { %v658_v25 = vmul.f32 1.442695, %v646_v24  ;;  %v660_v42 = vmul.f32 1.442695, %v647_v41 }
 0x487   :  { %6345 = vpow2.f32 %v658_v25 }
 0x489   :  { %v6798_v27 = vpop.eup %6341 }
 0x48a   :  { %v641_v28 = vpop.xlane.xlu0 %640  ;;  %v638_v29 = vpop.xlane.xlu1 %637  ;;  %v672_v54 = vsel %vm218_vm2, %v6798_v27, 0.0 }
 0x48b   :  { %v648_v31 = vsub.f32 %v616_v61, %v638_v29  ;;  %673 = vadd.xlane.f32.xlu1 %v672_v54  ;;  %v649_v43 = vsub.f32 %v6780_v62, %v641_v28 }
 0x48d   :  { %v6802_v30 = vpop.eup %6343  ;;  %v662_v32 = vmul.f32 1.442695, %v648_v31  ;;  %v664_v45 = vmul.f32 1.442695, %v649_v43 }
 0x48e   :  { %v764_v33 = vpop.permute.xlu0 %763  ;;  %v675_v34 = vsel %vm218_vm2, %v6802_v30, 0.0  ;;  %v812_v46 = vpop.permute.xlu1 %811 }
 0x48f   :  { %v769_v35 = vsel %vm719_vm3, %v764_v33, 0  ;;  %676 = vadd.xlane.f32.xlu0 %v675_v34  ;;  %6347 = vpow2.f32 %v662_v32  ;;  %v817_v1 = vsel %vm719_vm3, %v812_v46, 0 }
 0x490   :  { %5664 = vmatpush3.bf16.msra.mxu0 %v769_v35  ;;  %6349 = vpow2.f32 %v660_v42 }
 0x491   :  { %5675 = vmatprep.subr.bf16.mxu0 %v6510_v15  ;;  %v6808_v36 = vpop.eup %6345  ;;  %6351 = vpow2.f32 %v664_v45 }
 0x492   :  { %v678_v37 = vsel %vm218_vm2, %v6808_v36, 0.0  ;;  %v860_v49 = vpop.permute.xlu1 %859 }
 0x493   :  { %679 = vadd.xlane.f32.xlu1 %v678_v37  ;;  %v865_v61 = vsel %vm719_vm3, %v860_v49, 0 }
 0x499   :  { %v6812_v38 = vpop.eup %6347 }
 0x49a   :  { %v684_v40 = vsel %vm218_vm2, %v6812_v38, 0.0  ;;  %v6822_v51 = vpop.eup %6349 }
 0x49b   :  { %685 = vadd.xlane.f32.xlu1 %v684_v40  ;;  %v6826_v53 = vpop.eup %6351 }
 0x4a5   :  { %955 = vrot.lane.b32.xlu0 %v6688_v55, %s6516_s29  ;;  %v681_v55 = vsel %vm218_vm2, %v6822_v51, 0.0 }
 0x4ac   :  { %1003 = vrot.lane.b32.xlu1 %v6696_v58, %s6516_s29  ;;  %v687_v58 = vsel %vm218_vm2, %v6826_v53, 0.0 }
 0x4bf   :  { %v671_v50 = vpop.xlane.xlu0 %670 }
 0x4c0   :  { %6353 = vrcp.f32 %v671_v50 }
 0x4c3   :  { %v668_v52 = vpop.xlane.xlu1 %667 }
 0x4c4   :  { %6355 = vrcp.f32 %v668_v52  ;;  %682 = vadd.xlane.f32.xlu0 %v681_v55 }
 0x4c7   :  { %v908_v2 = vpop.permute.xlu1 %907 }
 0x4c8   :  { %688 = vadd.xlane.f32.xlu0 %v687_v58  ;;  %v913_v10 = vsel %vm719_vm3, %v908_v2, 0 }
 0x4ca   :  { %v6354_v44 = vpop.eup %6353 }
 0x4cb   :  { %v699_v56 = vmul.f32 %v6354_v44, %v6338_v16 }
 0x4cd   :  { %v707_v57 = vpack.c.bf16 %v699_v56, %v699_v56 }
 0x4ce   :  { %v6356_v60 = vpop.eup %6355 }
 0x4cf   :  { %5666 = vmatmul.mubr.msk.bf16.vlgmr.msra.gmra.mrb[16].mxu0 %vm218_vm2, %v707_v57  ;;  %v698_v62 = vmul.f32 %v6356_v60, %v6792_v19 }
 0x4d0   :  { %5676 = vmatpush3.bf16.msra.mxu0 %v865_v61  ;;  %5677 = vmatprep.mubr.msk.bf16.mxu0 %vm6511_vm1, %v6510_v15  ;;  %v6293_v61 = vld [vmem:[%s7865_s22] sm:$0xff]  }
 0x4d1   :  { %v706_v63 = vpack.c.bf16 %v698_v62, %v698_v62  ;;  %5687 = vmatprep.subr.bf16.mxu0 %v6510_v15 }
 0x4d3   :  { %5660 = vmatmul.mubr.msk.bf16.vlgmr.msra.gmra.mrb[20].mxu1 %vm218_vm2, %v706_v63  ;;  %v6294_v63 = vld [vmem:[%s7865_s22 + $0x8] sm:$0xff]  }
 0x4d4   :  { %5670 = vmatpush3.bf16.msra.mxu1 %v817_v1  ;;  %5671 = vmatprep.mubr.msk.bf16.mxu1 %vm6511_vm1, %v6510_v15 }
 0x4d5   :  { %5681 = vmatprep.subr.bf16.mxu1 %v6510_v15 }
 0x4de   :  { %1051 = vrot.lane.b32.xlu0 %v6698_v59, %s6516_s29 }
 0x518   :  { %v674_v3 = vpop.xlane.xlu1 %673 }
 0x519   :  { %6357 = vrcp.f32 %v674_v3 }
 0x51c   :  { %v677_v4 = vpop.xlane.xlu0 %676 }
 0x51d   :  { %6359 = vrcp.f32 %v677_v4 }
 0x520   :  { %v680_v5 = vpop.xlane.xlu1 %679  ;;  %v956_v12 = vpop.permute.xlu0 %955 }
 0x521   :  { %6361 = vrcp.f32 %v680_v5  ;;  %v961_v18 = vsel %vm719_vm3, %v956_v12, 0 }
 0x523   :  { %v6358_v6 = vpop.eup %6357 }
 0x524   :  { %v700_v7 = vmul.f32 %v6358_v6, %v6798_v27 }
 0x526   :  { %v708_v8 = vpack.c.bf16 %v700_v7, %v700_v7 }
 0x527   :  { %v6360_v9 = vpop.eup %6359 }
 0x528   :  { %5672 = vmatmul.mubr.msk.bf16.vlgmr.msra.gmra.mrb[24].mxu1 %vm218_vm2, %v708_v8  ;;  %v701_v11 = vmul.f32 %v6360_v9, %v6802_v30  ;;  %v686_v59 = vpop.xlane.xlu1 %685 }
 0x529   :  { %5682 = vmatpush3.bf16.msra.mxu1 %v913_v10  ;;  %5683 = vmatprep.mubr.msk.bf16.mxu1 %vm6511_vm1, %v6510_v15  ;;  %6363 = vrcp.f32 %v686_v59 }
 0x52a   :  { %v709_v13 = vpack.c.bf16 %v701_v11, %v701_v11  ;;  %5693 = vmatprep.subr.bf16.mxu1 %v6510_v15 }
 0x52b   :  { %v6362_v16 = vpop.eup %6361 }
 0x52c   :  { %5678 = vmatmul.mubr.msk.bf16.vlgmr.msra.gmra.mrb[20].mxu0 %vm218_vm2, %v709_v13  ;;  %v702_v19 = vmul.f32 %v6362_v16, %v6808_v36  ;;  %v1004_v47 = vpop.permute.xlu1 %1003 }
 0x52d   :  { %5688 = vmatpush3.bf16.msra.mxu0 %v961_v18  ;;  %5689 = vmatprep.mubr.msk.bf16.mxu0 %vm6511_vm1, %v6510_v15  ;;  %v1009_v48 = vsel %vm719_vm3, %v1004_v47, 0 }
 0x52e   :  { %5699 = vmatprep.subr.bf16.mxu0 %v6510_v15  ;;  %v710_v39 = vpack.c.bf16 %v702_v19, %v702_v19 }
 0x530   :  { %5684 = vmatmul.mubr.msk.bf16.vlgmr.msra.gmra.mrb[28].mxu1 %vm218_vm2, %v710_v39 }
 0x531   :  { %5694 = vmatpush3.bf16.msra.mxu1 %v1009_v48  ;;  %5695 = vmatprep.mubr.msk.bf16.mxu1 %vm6511_vm1, %v6510_v15 }
 0x532   :  { %5705 = vmatprep.subr.bf16.mxu1 %v6510_v15 }
 0x533   :  { %v6364_v17 = vpop.eup %6363 }
 0x534   :  { %v704_v20 = vmul.f32 %v6364_v17, %v6812_v38 }
 0x536   :  { %v712_v21 = vpack.c.bf16 %v704_v20, %v704_v20 }
 0x538   :  { %5696 = vmatmul.mubr.msk.bf16.vlgmr.msra.gmra.mrb[32].mxu1 %vm218_vm2, %v712_v21 }
 0x539   :  { %5709 = vmatprep.mubr.msk.bf16.mxu1 %vm6511_vm1, %v6510_v15  ;;  %5706 = vmatpush3.bf16.msra.mxu1 %v6293_v61 }
 0x53a   :  { %5707 = vmatprep.subr.bf16.mxu1 %v6510_v15 }
 0x53d   :  { %5708 = vmatpush3.bf16.msra.mxu1 %v6294_v63  ;;  %v5254_v63 = vld [vmem:[%s7862_s2 + $0x1] ss:$0 sm:$0xff] }
 0x53e   :  { %5721 = vmatprep.subr.bf16.mxu1 %v6510_v15 }
 0x551   :  { %v683_v22 = vpop.xlane.xlu0 %682 }
 0x552   :  { %6365 = vrcp.f32 %v683_v22 }
 0x555   :  { %v689_v23 = vpop.xlane.xlu0 %688 }
 0x556   :  { %6367 = vrcp.f32 %v689_v23 }
 0x559   :  { %v1052_v26 = vpop.permute.xlu0 %1051 }
 0x55a   :  { %v1057_v29 = vsel %vm719_vm3, %v1052_v26, 0 }
 0x55c   :  { %v6366_v24 = vpop.eup %6365 }
 0x55d   :  { %v703_v25 = vmul.f32 %v6366_v24, %v6822_v51  ;;  %v5247_v24 = vld [vmem:[%s7827_s6] ss:$0 sm:$0xff] }
 0x55f   :  { %v711_v27 = vpack.c.bf16 %v703_v25, %v703_v25 }
 0x560   :  { %v6368_v28 = vpop.eup %6367 }
 0x561   :  { %5690 = vmatmul.mubr.msk.bf16.vlgmr.msra.gmra.mrb[24].mxu0 %vm218_vm2, %v711_v27  ;;  %v705_v54 = vmul.f32 %v6368_v28, %v6826_v53 }
 0x562   :  { %5700 = vmatpush3.bf16.msra.mxu0 %v1057_v29  ;;  %5701 = vmatprep.mubr.msk.bf16.mxu0 %vm6511_vm1, %v6510_v15 }
 0x563   :  { %5713 = vmatprep.subr.bf16.mxu0 %v6510_v15  ;;  %v713_v31 = vpack.c.bf16 %v705_v54, %v705_v54 }
 0x569   :  { %5702 = vmatmul.mubr.msk.bf16.vlgmr.msra.gmra.mrb[28].mxu0 %vm218_vm2, %v713_v31 }
 0x56a   :  { %5717 = vmatprep.mubr.msk.bf16.mxu0 %vm6511_vm1, %v6510_v15 }
 0x5a2   :  { %v805_v30 = vpop.f32.mrb[16].mxu0 }
 0x5a3   :  { %v5667_v32 = vpop.f32.mrb[17].mxu0 }
 0x5a4   :  { %v808_v33 = vpop.f32.mrb[18].mxu0 }
 0x5a5   :  { %v5668_v34 = vpop.f32.mrb[19].mxu0 }
 0x5a6   :  { %v757_v35 = vpop.f32.mrb[20].mxu1 }
 0x5a7   :  { %v5661_v36 = vpop.f32.mrb[21].mxu1 }
 0x5a8   :  { %v760_v37 = vpop.f32.mrb[22].mxu1 }
 0x5a9   :  { %v5662_v38 = vpop.f32.mrb[23].mxu1 }
 0x5fb   :  { %v853_v40 = vpop.f32.mrb[24].mxu1 }
 0x5fc   :  { %v5673_v41 = vpop.f32.mrb[25].mxu1 }
 0x5fd   :  { %v856_v42 = vpop.f32.mrb[26].mxu1 }
 0x5fe   :  { %v5674_v43 = vpop.f32.mrb[27].mxu1 }
 0x5ff   :  { %v901_v45 = vpop.f32.mrb[20].mxu0 }
 0x600   :  { %v6156_v46 = vpack.i.bf16 %v901_v45, %v853_v40  ;;  %v5679_v49 = vpop.f32.mrb[21].mxu0 }
 0x601   :  { %v904_v50 = vpop.f32.mrb[22].mxu0  ;;  %v6296_v49 = vld [vmem:[%s7860_s0 + $0x18] sm:$0xff]  }
 0x602   :  { %v5680_v51 = vpop.f32.mrb[23].mxu0  ;;  %6157 = vrot.lane.b32.xlu1 %v6156_v46, %s7849_s4  ;;  %s6518_s4 = smov 16   ;;  %v6295_v46 = vld [vmem:[%s7860_s0 + $0x10] sm:$0xff]   ;;  %s6520_s0 = smov [#allocation2]  }
 0x603   :  { %v949_v52 = vpop.f32.mrb[28].mxu1  ;;  %5714 = vmatpush3.bf16.msra.mxu0 %v6295_v46 }
 0x604   :  { %v5685_v55 = vpop.f32.mrb[29].mxu1  ;;  %5715 = vmatprep.subr.bf16.mxu0 %v6510_v15 }
 0x605   :  { %v952_v53 = vpop.f32.mrb[30].mxu1 }
 0x606   :  { %v5686_v58 = vpop.f32.mrb[31].mxu1 }
 0x607   :  { %5716 = vmatpush3.bf16.msra.mxu0 %v6296_v49 }
 0x608   :  { %5727 = vmatprep.subr.bf16.mxu0 %v6510_v15 }
 0x60b   :  { %v1045_v44 = vpop.f32.mrb[32].mxu1 }
 0x60c   :  { %v5697_v56 = vpop.f32.mrb[33].mxu1 }
 0x60d   :  { %v1048_v57 = vpop.f32.mrb[34].mxu1 }
 0x60e   :  { %v5698_v60 = vpop.f32.mrb[35].mxu1  ;;  %v5253_v57 = vld [vmem:[%s7861_s23 + $0x1] ss:$0 sm:$0xff]  ;;  %s7866_s23 = smov 8  }
 0x634   :  { %v997_v62 = vpop.f32.mrb[24].mxu0 }
 0x635   :  { %v6161_v1 = vpack.i.bf16 %v997_v62, %v949_v52  ;;  %v5691_v2 = vpop.f32.mrb[25].mxu0 }
 0x636   :  { %v1000_v3 = vpop.f32.mrb[26].mxu0 }
 0x637   :  { %v5692_v4 = vpop.f32.mrb[27].mxu0  ;;  %6162 = vrot.lane.b32.xlu0 %v6161_v1, %s6518_s4 }
 0x63c   :  { %v1093_v5 = vpop.f32.mrb[28].mxu0 }
 0x63d   :  { %v6166_v6 = vpack.i.bf16 %v1093_v5, %v1045_v44  ;;  %v5703_v7 = vpop.f32.mrb[29].mxu0 }
 0x63e   :  { %v1096_v8 = vpop.f32.mrb[30].mxu0 }
 0x63f   :  { %v5704_v9 = vpop.f32.mrb[31].mxu0  ;;  %6167 = vrot.lane.b32.xlu1 %v6166_v6, %s7851_s30 }
 0x674   :  { %v6158_v10 = vpop.permute.xlu1 %6157 }
 0x675   :  { %v6160_v12 = vunpack.i.h.bf16 %v6158_v10  ;;  %v6159_v59 = vunpack.i.l.bf16 %v6158_v10 }
 0x677   :  { %v1124_v19 = vsel %vm218_vm2, %v805_v30, %v6160_v12  ;;  %v1123_v47 = vsel %vm218_vm2, %v757_v35, %v6159_v59  ;;  %v6485_v30 = vld [vmem:[%s7859_s26 + $0x8] sm:$0xff] }
 0x6a9   :  { %v6163_v11 = vpop.permute.xlu0 %6162 }
 0x6aa   :  { %v6165_v13 = vunpack.i.h.bf16 %v6163_v11  ;;  %v6164_v16 = vunpack.i.l.bf16 %v6163_v11 }
 0x6ac   :  { %v1127_v17 = vsel %vm1125_vm5, %v1124_v19, %v6165_v13  ;;  %v1126_v20 = vsel %vm1125_vm5, %v1123_v47, %v6164_v16 }
 0x6b1   :  { %v6168_v18 = vpop.permute.xlu1 %6167 }
 0x6b2   :  { %v6170_v39 = vunpack.i.h.bf16 %v6168_v18  ;;  %v6169_v48 = vunpack.i.l.bf16 %v6168_v18 }
 0x6b4   :  { %v1130_v21 = vsel %vm1128_vm6, %v1127_v17, %v6170_v39  ;;  %v1129_v22 = vsel %vm1128_vm6, %v1126_v20, %v6169_v48 }
 0x6b5   :  { %v1131_v23 = vpack.c.bf16 %v1130_v21, %v1129_v22 }
 0x6b7   :  { %5710 = vmatmul.mubr.msk.bf16.vlgmr.msra.gmra.mrb[36].mxu1 %vm82_vm0, %v1131_v23 }
 0x6b8   :  { %5723 = vmatprep.mubr.msk.bf16.mxu1 %vm6511_vm1, %v6510_v15 }
 0x78a   :  { %v1192_v25 = vpop.f32.mrb[36].mxu1 }
 0x78b   :  { %v1193_v26 = vadd.f32 %v5247_v24, %v1192_v25  ;;  %v5711_v27 = vpop.f32.mrb[37].mxu1 }
 0x78c   :  { %v1195_v28 = vpop.f32.mrb[38].mxu1 }
 0x78d   :  { %v6899_v29 = vadd.f32 %v1193_v26, %v6635_v0  ;;  %v1196_v54 = vadd.f32 %v5247_v24, %v1195_v28  ;;  %v5712_v31 = vpop.f32.mrb[39].mxu1 }
 0x78f   :  { %v6904_v32 = vadd.f32 %v6485_v30, %v1196_v54  ;;  %v1205_v33 = vsel %vm82_vm0, %v6899_v29, 0.0 }
 0x790   :  { %1206 = vadd.xlane.f32.xlu0 %v1205_v33 }
 0x791   :  { %v1208_v34 = vsel %vm82_vm0, %v6904_v32, 0.0 }
 0x792   :  { %1209 = vadd.xlane.f32.xlu1 %v1208_v34 }
 0x81d   :  { %v1207_v35 = vpop.xlane.xlu0 %1206 }
 0x81e   :  { %v1211_v36 = vmul.f32 0.03125, %v1207_v35 }
 0x81f   :  { %v1210_v0 = vpop.xlane.xlu1 %1209 }
 0x820   :  { %v1213_v37 = vsub.f32 %v6899_v29, %v1211_v36  ;;  %v1212_v38 = vmul.f32 0.03125, %v1210_v0 }
 0x822   :  { %v1214_v40 = vsub.f32 %v6904_v32, %v1212_v38  ;;  %v1215_v41 = vmul.f32 %v1213_v37, %v1213_v37 }
 0x824   :  { %v1217_v42 = vsel %vm82_vm0, %v1215_v41, 0.0  ;;  %v1216_v43 = vmul.f32 %v1214_v40, %v1214_v40 }
 0x825   :  { %1218 = vadd.xlane.f32.xlu0 %v1217_v42 }
 0x826   :  { %v1220_v45 = vsel %vm82_vm0, %v1216_v43, 0.0 }
 0x829   :  { %1221 = vadd.xlane.f32.xlu0 %v1220_v45 }
 0x8b2   :  { %v1219_v50 = vpop.xlane.xlu0 %1218 }
 0x8b3   :  { %v1223_v51 = vmul.f32 0.03125, %v1219_v50 }
 0x8b5   :  { %v1225_v52 = vadd.f32 1e-05, %v1223_v51 }
 0x8b6   :  { %v1222_v55 = vpop.xlane.xlu0 %1221 }
 0x8b7   :  { %6369 = vrsqrt.f32 %v1225_v52  ;;  %v1224_v53 = vmul.f32 0.03125, %v1222_v55 }
 0x8b9   :  { %v1226_v58 = vadd.f32 1e-05, %v1224_v53 }
 0x8bb   :  { %6371 = vrsqrt.f32 %v1226_v58 }
 0x8c1   :  { %v6370_v44 = vpop.eup %6369 }
 0x8c2   :  { %v1229_v56 = vmul.f32 %v6370_v44, %v1213_v37 }
 0x8c4   :  { %v1237_v61 = vmul.f32 %v5253_v57, %v1229_v56 }
 0x8c5   :  { %v6372_v60 = vpop.eup %6371 }
 0x8c6   :  { %v1230_v62 = vmul.f32 %v6372_v60, %v1214_v40  ;;  %v1245_v2 = vadd.f32 %v5254_v63, %v1237_v61 }
 0x8c8   :  { %v1238_v1 = vmul.f32 %v5253_v57, %v1230_v62 }
 0x8ca   :  { %v1246_v3 = vadd.f32 %v5254_v63, %v1238_v1 }
 0x8cc   :  { %v1247_v4 = vpack.c.bf16 %v1246_v3, %v1245_v2 }
 0x8ce   :  { %5718 = vmatmul.mubr.msk.bf16.vlgmr.msra.gmra.mrb[32].mxu0 %vm82_vm0, %v1247_v4 }
 0x8cf   :  { %5729 = vmatprep.mubr.msk.bf16.mxu0 %vm6511_vm1, %v6510_v15 }
 0x9a1   :  { %v1302_v5 = vpop.f32.mrb[32].mxu0 }
 0x9a2   :  { %v5719_v6 = vpop.f32.mrb[33].mxu0  ;;  %v1329_v11 = vpack.c.bf16 %v1302_v5, %v1302_v5 }
 0x9a3   :  { %v1305_v7 = vpop.f32.mrb[34].mxu0 }
 0x9a4   :  { %v5720_v8 = vpop.f32.mrb[35].mxu0  ;;  %v6176_v9 = vpack.i.bf16 %v1305_v7, %v1302_v5  ;;  %v6933_v10 = vpack.c.bf16 %v1305_v7, %v1305_v7 }
 0x9a6   :  { %6177 = vrot.lane.b32.xlu1 %v6176_v9, %s6512_s25  ;;  %6172 = vrot.lane.b32.xlu0 %v6176_v9, %s6513_s27 }
 0x9aa   :  { %6182 = vrot.lane.b32.xlu1 %v6176_v9, %s6514_s3  ;;  %1387 = vrot.lane.b32.xlu0 %v6933_v10, %s6515_s28 }
 0x9ae   :  { %1338 = vrot.lane.b32.xlu1 %v1329_v11, %s6515_s28 }
 0xa18   :  { %v6178_v12 = vpop.permute.xlu1 %6177  ;;  %v6173_v59 = vpop.permute.xlu0 %6172 }
 0xa19   :  { %v6175_v13 = vunpack.i.h.bf16 %v6173_v59  ;;  %v6174_v16 = vunpack.i.l.bf16 %v6173_v59  ;;  %v6180_v18 = vunpack.i.h.bf16 %v6178_v12  ;;  %v6179_v19 = vunpack.i.l.bf16 %v6178_v12 }
 0xa1b   :  { %v6939_v47 = vpack.c.bf16 %v6174_v16, %v6174_v16  ;;  %v6941_v39 = vpack.c.bf16 %v6175_v13, %v6175_v13  ;;  %v6948_v23 = vpack.c.bf16 %v6179_v19, %v6179_v19  ;;  %v6950_v24 = vpack.c.bf16 %v6180_v18, %v6180_v18 }
 0xa1c   :  { %v6183_v48 = vpop.permute.xlu1 %6182  ;;  %v1388_v17 = vpop.permute.xlu0 %1387 }
 0xa1d   :  { %v1393_v20 = vsel %vm218_vm2, %v1388_v17, 0  ;;  %1436 = vrot.lane.b32.xlu1 %v6939_v47, %s6515_s28  ;;  %1485 = vrot.lane.b32.xlu0 %v6941_v39, %s6515_s28  ;;  %v6185_v21 = vunpack.i.h.bf16 %v6183_v48  ;;  %v6184_v22 = vunpack.i.l.bf16 %v6183_v48 }
 0xa1e   :  { %5728 = vmatpush3.bf16.xpose.msra.mxu0 %v1393_v20 }
 0xa1f   :  { %5739 = vmatprep.subr.bf16.mxu0 %v6510_v15  ;;  %v6958_v27 = vpack.c.bf16 %v6184_v22, %v6184_v22  ;;  %v6960_v28 = vpack.c.bf16 %v6185_v21, %v6185_v21 }
 0xa20   :  { %v1339_v25 = vpop.permute.xlu1 %1338 }
 0xa21   :  { %v1344_v26 = vsel %vm218_vm2, %v1339_v25, 0  ;;  %1534 = vrot.lane.b32.xlu1 %v6948_v23, %s6515_s28  ;;  %1583 = vrot.lane.b32.xlu0 %v6950_v24, %s6515_s28 }
 0xa22   :  { %5722 = vmatpush3.bf16.xpose.msra.mxu1 %v1344_v26 }
 0xa23   :  { %5733 = vmatprep.subr.bf16.mxu1 %v6510_v15 }
 0xa25   :  { %1632 = vrot.lane.b32.xlu1 %v6958_v27, %s6515_s28  ;;  %1681 = vrot.lane.b32.xlu0 %v6960_v28, %s6515_s28 }
 0xa26   :  { %5730 = vmatmul.mubr.msk.bf16.vlgmr.msra.gmra.mrb[36].mxu0 %vm218_vm2, %v6933_v10 }
 0xa27   :  { %5741 = vmatprep.mubr.msk.bf16.mxu0 %vm6511_vm1, %v6510_v15 }
 0xa29   :  { %5724 = vmatmul.mubr.msk.bf16.vlgmr.msra.gmra.mrb[40].mxu1 %vm218_vm2, %v1329_v11  ;;  %1833 = vrot.lane.b32.xlu1 %v1329_v11, %s6516_s29 }
 0xa2a   :  { %5735 = vmatprep.mubr.msk.bf16.mxu1 %vm6511_vm1, %v6510_v15 }
 0xa8f   :  { %v1437_v54 = vpop.permute.xlu1 %1436  ;;  %v1486_v31 = vpop.permute.xlu0 %1485 }
 0xa90   :  { %v1442_v30 = vsel %vm218_vm2, %v1437_v54, 0  ;;  %v1491_v33 = vsel %vm218_vm2, %v1486_v31, 0 }
 0xa91   :  { %5734 = vmatpush3.bf16.xpose.msra.mxu1 %v1442_v30  ;;  %5740 = vmatpush3.bf16.xpose.msra.mxu0 %v1491_v33 }
 0xa92   :  { %5745 = vmatprep.subr.bf16.mxu1 %v6510_v15  ;;  %5751 = vmatprep.subr.bf16.mxu0 %v6510_v15 }
 0xa93   :  { %v1535_v34 = vpop.permute.xlu1 %1534  ;;  %v1584_v35 = vpop.permute.xlu0 %1583 }
 0xa94   :  { %v1540_v36 = vsel %vm218_vm2, %v1535_v34, 0  ;;  %v1589_v0 = vsel %vm218_vm2, %v1584_v35, 0 }
 0xa97   :  { %v1633_v37 = vpop.permute.xlu1 %1632  ;;  %v1682_v38 = vpop.permute.xlu0 %1681 }
 0xa98   :  { %5736 = vmatmul.mubr.msk.bf16.vlgmr.msra.gmra.mrb[44].mxu1 %vm218_vm2, %v6939_v47  ;;  %5742 = vmatmul.mubr.msk.bf16.vlgmr.msra.gmra.mrb[40].mxu0 %vm218_vm2, %v6941_v39  ;;  %v1638_v40 = vsel %vm218_vm2, %v1633_v37, 0  ;;  %v1687_v41 = vsel %vm218_vm2, %v1682_v38, 0 }
 0xa99   :  { %5746 = vmatpush3.bf16.xpose.msra.mxu1 %v1540_v36  ;;  %5752 = vmatpush3.bf16.xpose.msra.mxu0 %v1589_v0 }
 0xa9a   :  { %5747 = vmatprep.mubr.msk.bf16.mxu1 %vm6511_vm1, %v6510_v15  ;;  %5753 = vmatprep.mubr.msk.bf16.mxu0 %vm6511_vm1, %v6510_v15 }
 0xa9b   :  { %5757 = vmatprep.subr.bf16.mxu1 %v6510_v15  ;;  %5763 = vmatprep.subr.bf16.mxu0 %v6510_v15  ;;  %v1834_v42 = vpop.permute.xlu1 %1833 }
 0xa9c   :  { %v1839_v43 = vsel %vm719_vm3, %v1834_v42, 0 }
 0xaa0   :  { %5748 = vmatmul.mubr.msk.bf16.vlgmr.msra.gmra.mrb[48].mxu1 %vm218_vm2, %v6948_v23  ;;  %5754 = vmatmul.mubr.msk.bf16.vlgmr.msra.gmra.mrb[44].mxu0 %vm218_vm2, %v6950_v24 }
 0xaa1   :  { %5758 = vmatpush3.bf16.xpose.msra.mxu1 %v1638_v40  ;;  %5764 = vmatpush3.bf16.xpose.msra.mxu0 %v1687_v41 }
 0xaa2   :  { %5759 = vmatprep.mubr.msk.bf16.mxu1 %vm6511_vm1, %v6510_v15  ;;  %5765 = vmatprep.mubr.msk.bf16.mxu0 %vm6511_vm1, %v6510_v15 }
 0xaa3   :  { %5769 = vmatprep.subr.bf16.mxu1 %v6510_v15  ;;  %5775 = vmatprep.subr.bf16.mxu0 %v6510_v15 }
 0xaa8   :  { %5760 = vmatmul.mubr.msk.bf16.vlgmr.msra.gmra.mrb[52].mxu1 %vm218_vm2, %v6958_v27  ;;  %5766 = vmatmul.mubr.msk.bf16.vlgmr.msra.gmra.mrb[48].mxu0 %vm218_vm2, %v6960_v28 }
 0xaa9   :  { %5770 = vmatpush3.bf16.msra.mxu1 %v1839_v43  ;;  %5777 = vmatprep.mubr.msk.bf16.mxu0 %vm6511_vm1, %v6510_v15 }
 0xaaa   :  { %5771 = vmatprep.mubr.msk.bf16.mxu1 %vm6511_vm1, %v6510_v15  ;;  %5781 = vmatprep.subr.bf16.mxu1 %v6510_v15 }
 0xaf9   :  { %v1429_v45 = vpop.f32.mrb[36].mxu0 }
 0xafa   :  { %v1730_v46 = vsel %vm6751_vm4, %v1429_v45, -inf  ;;  %v5731_v49 = vpop.f32.mrb[37].mxu0 }
 0xafb   :  { %v1432_v50 = vpop.f32.mrb[38].mxu0  ;;  %v1740_v51 = vsel %vm218_vm2, %v1730_v46, -inf }
 0xafc   :  { %1741 = vmax.xlane.f32.xlu0 %v1740_v51  ;;  %v5732_v52 = vpop.f32.mrb[39].mxu0  ;;  %v1380_v55 = vpop.f32.mrb[40].mxu1 }
 0xafd   :  { %v1729_v53 = vsel %vm6751_vm4, %v1380_v55, -inf  ;;  %v5725_v58 = vpop.f32.mrb[41].mxu1 }
 0xafe   :  { %v1383_v44 = vpop.f32.mrb[42].mxu1  ;;  %v1737_v56 = vsel %vm218_vm2, %v1729_v53, -inf }
 0xaff   :  { %1738 = vmax.xlane.f32.xlu1 %v1737_v56  ;;  %v5726_v57 = vpop.f32.mrb[43].mxu1 }
 0xb6b   :  { %v1478_v60 = vpop.f32.mrb[44].mxu1  ;;  %v1527_v61 = vpop.f32.mrb[40].mxu0 }
 0xb6c   :  { %v1731_v62 = vsel %vm6751_vm4, %v1478_v60, -inf  ;;  %v5737_v63 = vpop.f32.mrb[45].mxu1  ;;  %v5743_v1 = vpop.f32.mrb[41].mxu0  ;;  %v1732_v5 = vsel %vm6751_vm4, %v1527_v61, -inf }
 0xb6d   :  { %v1481_v2 = vpop.f32.mrb[46].mxu1  ;;  %v1530_v3 = vpop.f32.mrb[42].mxu0  ;;  %v1743_v4 = vsel %vm218_vm2, %v1731_v62, -inf  ;;  %v1746_v8 = vsel %vm218_vm2, %v1732_v5, -inf }
 0xb6e   :  { %v5744_v6 = vpop.f32.mrb[43].mxu0  ;;  %1744 = vmax.xlane.f32.xlu0 %v1743_v4  ;;  %v5738_v7 = vpop.f32.mrb[47].mxu1 }
 0xb72   :  { %1747 = vmax.xlane.f32.xlu0 %v1746_v8 }
 0xb73   :  { %v1576_v9 = vpop.f32.mrb[48].mxu1  ;;  %v1625_v11 = vpop.f32.mrb[44].mxu0 }
 0xb74   :  { %v1733_v12 = vsel %vm6751_vm4, %v1576_v9, -inf  ;;  %v7029_v59 = vsel %vm6751_vm4, %v1625_v11, -inf  ;;  %v5749_v13 = vpop.f32.mrb[49].mxu1  ;;  %v5755_v16 = vpop.f32.mrb[45].mxu0 }
 0xb75   :  { %v1579_v18 = vpop.f32.mrb[50].mxu1  ;;  %v1628_v19 = vpop.f32.mrb[46].mxu0  ;;  %v1752_v48 = vsel %vm218_vm2, %v7029_v59, -inf  ;;  %v1749_v17 = vsel %vm218_vm2, %v1733_v12, -inf }
 0xb76   :  { %v5756_v20 = vpop.f32.mrb[47].mxu0  ;;  %1753 = vmax.xlane.f32.xlu0 %v1752_v48  ;;  %1750 = vmax.xlane.f32.xlu1 %v1749_v17  ;;  %v5750_v21 = vpop.f32.mrb[51].mxu1 }
 0xb7b   :  { %v1674_v22 = vpop.f32.mrb[52].mxu1  ;;  %v1723_v25 = vpop.f32.mrb[48].mxu0 }
 0xb7c   :  { %v1735_v26 = vsel %vm6751_vm4, %v1674_v22, -inf  ;;  %v7038_v54 = vsel %vm6751_vm4, %v1723_v25, -inf  ;;  %v5761_v31 = vpop.f32.mrb[53].mxu1  ;;  %v5767_v30 = vpop.f32.mrb[49].mxu0 }
 0xb7d   :  { %v1677_v33 = vpop.f32.mrb[54].mxu1  ;;  %v1726_v34 = vpop.f32.mrb[50].mxu0  ;;  %v1758_v35 = vsel %vm218_vm2, %v7038_v54, -inf  ;;  %v1755_v36 = vsel %vm218_vm2, %v1735_v26, -inf }
 0xb7e   :  { %v5768_v0 = vpop.f32.mrb[51].mxu0  ;;  %1759 = vmax.xlane.f32.xlu0 %v1758_v35  ;;  %1756 = vmax.xlane.f32.xlu1 %v1755_v36  ;;  %v5762_v37 = vpop.f32.mrb[55].mxu1 }
 0xb89   :  { %v1742_v14 = vpop.xlane.xlu0 %1741 }
 0xb8a   :  { %v1762_v38 = vsub.f32 %v1730_v46, %v1742_v14 }
 0xb8c   :  { %v1739_v40 = vpop.xlane.xlu1 %1738  ;;  %v1771_v41 = vmul.f32 1.442695, %v1762_v38 }
 0xb8d   :  { %v1761_v42 = vsub.f32 %v1729_v53, %v1739_v40 }
 0xb8e   :  { %6373 = vpow2.f32 %v1771_v41 }
 0xb8f   :  { %1929 = vrot.lane.b32.xlu1 %v6939_v47, %s6516_s29  ;;  %v1769_v43 = vmul.f32 1.442695, %v1761_v42 }
 0xb91   :  { %6375 = vpow2.f32 %v1769_v43 }
 0xb93   :  { %1977 = vrot.lane.b32.xlu1 %v6941_v39, %s6516_s29 }
 0xb94   :  { %1881 = vrot.lane.b32.xlu0 %v6933_v10, %s6516_s29 }
 0xb98   :  { %v6374_v45 = vpop.eup %6373 }
 0xb99   :  { %v1788_v49 = vsel %vm218_vm2, %v6374_v45, 0.0 }
 0xb9b   :  { %v7050_v50 = vpop.eup %6375 }
 0xb9c   :  { %v1785_v47 = vsel %vm218_vm2, %v7050_v50, 0.0 }
 0xbb3   :  { %1789 = vadd.xlane.f32.xlu0 %v1788_v49 }
 0xbb7   :  { %1786 = vadd.xlane.f32.xlu1 %v1785_v47 }
 0xbc8   :  { %2025 = vrot.lane.b32.xlu1 %v6948_v23, %s6516_s29 }
 0xbfb   :  { %v1745_v10 = vpop.xlane.xlu0 %1744 }
 0xbfc   :  { %v1763_v39 = vsub.f32 %v1731_v62, %v1745_v10 }
 0xbfe   :  { %v1773_v46 = vmul.f32 1.442695, %v1763_v39 }
 0xbff   :  { %v1748_v51 = vpop.xlane.xlu0 %1747 }
 0xc00   :  { %6377 = vpow2.f32 %v1773_v46  ;;  %v1764_v52 = vsub.f32 %v1732_v5, %v1748_v51 }
 0xc02   :  { %v1775_v55 = vmul.f32 1.442695, %v1764_v52 }
 0xc03   :  { %v1751_v53 = vpop.xlane.xlu1 %1750  ;;  %v1754_v56 = vpop.xlane.xlu0 %1753 }
 0xc04   :  { %6379 = vpow2.f32 %v1775_v55  ;;  %v1765_v58 = vsub.f32 %v1733_v12, %v1751_v53  ;;  %v1766_v9 = vsub.f32 %v7029_v59, %v1754_v56 }
 0xc06   :  { %v1777_v44 = vmul.f32 1.442695, %v1765_v58  ;;  %v1779_v11 = vmul.f32 1.442695, %v1766_v9 }
 0xc08   :  { %6381 = vpow2.f32 %v1777_v44 }
 0xc0a   :  { %v7056_v57 = vpop.eup %6377 }
 0xc0b   :  { %v1760_v60 = vpop.xlane.xlu0 %1759  ;;  %v1757_v61 = vpop.xlane.xlu1 %1756  ;;  %v1791_v23 = vsel %vm218_vm2, %v7056_v57, 0.0 }
 0xc0c   :  { %v1767_v63 = vsub.f32 %v1735_v26, %v1757_v61  ;;  %1792 = vadd.xlane.f32.xlu1 %v1791_v23  ;;  %v1768_v12 = vsub.f32 %v7038_v54, %v1760_v60 }
 0xc0e   :  { %v7060_v62 = vpop.eup %6379  ;;  %v1781_v1 = vmul.f32 1.442695, %v1767_v63  ;;  %v1783_v13 = vmul.f32 1.442695, %v1768_v12 }
 0xc0f   :  { %v1882_v2 = vpop.permute.xlu0 %1881  ;;  %v1794_v3 = vsel %vm218_vm2, %v7060_v62, 0.0  ;;  %v1930_v16 = vpop.permute.xlu1 %1929 }
 0xc10   :  { %v1887_v4 = vsel %vm719_vm3, %v1882_v2, 0  ;;  %1795 = vadd.xlane.f32.xlu0 %v1794_v3  ;;  %6383 = vpow2.f32 %v1781_v1  ;;  %v1935_v30 = vsel %vm719_vm3, %v1930_v16, 0 }
 0xc11   :  { %5776 = vmatpush3.bf16.msra.mxu0 %v1887_v4  ;;  %6385 = vpow2.f32 %v1779_v11 }
 0xc12   :  { %5787 = vmatprep.subr.bf16.mxu0 %v6510_v15  ;;  %v7066_v5 = vpop.eup %6381  ;;  %6387 = vpow2.f32 %v1783_v13 }
 0xc13   :  { %v1797_v6 = vsel %vm218_vm2, %v7066_v5, 0.0  ;;  %v1978_v18 = vpop.permute.xlu1 %1977 }
 0xc14   :  { %1798 = vadd.xlane.f32.xlu1 %v1797_v6  ;;  %v1983_v26 = vsel %vm719_vm3, %v1978_v18, 0 }
 0xc1a   :  { %v7070_v7 = vpop.eup %6383 }
 0xc1b   :  { %v1803_v8 = vsel %vm218_vm2, %v7070_v7, 0.0  ;;  %v7080_v48 = vpop.eup %6385 }
 0xc1c   :  { %1804 = vadd.xlane.f32.xlu1 %v1803_v8  ;;  %v7084_v20 = vpop.eup %6387 }
 0xc26   :  { %2073 = vrot.lane.b32.xlu0 %v6950_v24, %s6516_s29  ;;  %v1800_v24 = vsel %vm218_vm2, %v7080_v48, 0.0 }
 0xc2d   :  { %2121 = vrot.lane.b32.xlu1 %v6958_v27, %s6516_s29  ;;  %v1806_v27 = vsel %vm218_vm2, %v7084_v20, 0.0 }
 0xc40   :  { %v1790_v19 = vpop.xlane.xlu0 %1789 }
 0xc41   :  { %6389 = vrcp.f32 %v1790_v19 }
 0xc44   :  { %v1787_v17 = vpop.xlane.xlu1 %1786 }
 0xc45   :  { %6391 = vrcp.f32 %v1787_v17  ;;  %1801 = vadd.xlane.f32.xlu0 %v1800_v24 }
 0xc48   :  { %v2026_v33 = vpop.permute.xlu1 %2025 }
 0xc49   :  { %1807 = vadd.xlane.f32.xlu0 %v1806_v27  ;;  %v2031_v40 = vsel %vm719_vm3, %v2026_v33, 0 }
 0xc4b   :  { %v6390_v59 = vpop.eup %6389 }
 0xc4c   :  { %v1818_v21 = vmul.f32 %v6390_v59, %v6374_v45 }
 0xc4e   :  { %v1826_v22 = vpack.c.bf16 %v1818_v21, %v1818_v21 }
 0xc4f   :  { %v6392_v25 = vpop.eup %6391 }
 0xc50   :  { %v1817_v54 = vmul.f32 %v6392_v25, %v7050_v50  ;;  %5778 = vmatmul.mubr.msk.bf16.vlgmr.msra.gmra.mrb[52].mxu0 %vm218_vm2, %v1826_v22 }
 0xc51   :  { %5788 = vmatpush3.bf16.msra.mxu0 %v1983_v26  ;;  %5789 = vmatprep.mubr.msk.bf16.mxu0 %vm6511_vm1, %v6510_v15  ;;  %v6297_v26 = vld [vmem:[%s7865_s22 + $0x10] sm:$0xff]  }
 0xc52   :  { %v1825_v31 = vpack.c.bf16 %v1817_v54, %v1817_v54  ;;  %5799 = vmatprep.subr.bf16.mxu0 %v6510_v15 }
 0xc54   :  { %5772 = vmatmul.mubr.msk.bf16.vlgmr.msra.gmra.mrb[56].mxu1 %vm218_vm2, %v1825_v31  ;;  %v6298_v31 = vld [vmem:[%s7865_s22 + $0x18] sm:$0xff]  }
 0xc55   :  { %5782 = vmatpush3.bf16.msra.mxu1 %v1935_v30  ;;  %5783 = vmatprep.mubr.msk.bf16.mxu1 %vm6511_vm1, %v6510_v15 }
 0xc56   :  { %5793 = vmatprep.subr.bf16.mxu1 %v6510_v15 }
 0xc5f   :  { %2169 = vrot.lane.b32.xlu0 %v6960_v28, %s6516_s29 }
 0xc99   :  { %v1793_v34 = vpop.xlane.xlu1 %1792 }
 0xc9a   :  { %6393 = vrcp.f32 %v1793_v34 }
 0xc9d   :  { %v1796_v35 = vpop.xlane.xlu0 %1795 }
 0xc9e   :  { %6395 = vrcp.f32 %v1796_v35 }
 0xca1   :  { %v1799_v36 = vpop.xlane.xlu1 %1798  ;;  %v2074_v42 = vpop.permute.xlu0 %2073 }
 0xca2   :  { %6397 = vrcp.f32 %v1799_v36  ;;  %v2079_v49 = vsel %vm719_vm3, %v2074_v42, 0 }
 0xca4   :  { %v6394_v0 = vpop.eup %6393 }
 0xca5   :  { %v1819_v37 = vmul.f32 %v6394_v0, %v7056_v57 }
 0xca7   :  { %v1827_v14 = vpack.c.bf16 %v1819_v37, %v1819_v37 }
 0xca8   :  { %v6396_v38 = vpop.eup %6395 }
 0xca9   :  { %v1820_v41 = vmul.f32 %v6396_v38, %v7060_v62  ;;  %5784 = vmatmul.mubr.msk.bf16.vlgmr.msra.gmra.mrb[60].mxu1 %vm218_vm2, %v1827_v14  ;;  %v1805_v28 = vpop.xlane.xlu1 %1804 }
 0xcaa   :  { %5794 = vmatpush3.bf16.msra.mxu1 %v2031_v40  ;;  %5795 = vmatprep.mubr.msk.bf16.mxu1 %vm6511_vm1, %v6510_v15  ;;  %6399 = vrcp.f32 %v1805_v28 }
 0xcab   :  { %v1828_v43 = vpack.c.bf16 %v1820_v41, %v1820_v41  ;;  %5805 = vmatprep.subr.bf16.mxu1 %v6510_v15 }
 0xcac   :  { %v6398_v45 = vpop.eup %6397 }
 0xcad   :  { %5790 = vmatmul.mubr.msk.bf16.vlgmr.msra.gmra.mrb[56].mxu0 %vm218_vm2, %v1828_v43  ;;  %v1821_v50 = vmul.f32 %v6398_v45, %v7066_v5  ;;  %v2122_v47 = vpop.permute.xlu1 %2121 }
 0xcae   :  { %5800 = vmatpush3.bf16.msra.mxu0 %v2079_v49  ;;  %5801 = vmatprep.mubr.msk.bf16.mxu0 %vm6511_vm1, %v6510_v15  ;;  %v2127_v39 = vsel %vm719_vm3, %v2122_v47, 0 }
 0xcaf   :  { %5811 = vmatprep.subr.bf16.mxu0 %v6510_v15  ;;  %v1829_v10 = vpack.c.bf16 %v1821_v50, %v1821_v50 }
 0xcb1   :  { %5796 = vmatmul.mubr.msk.bf16.vlgmr.msra.gmra.mrb[64].mxu1 %vm218_vm2, %v1829_v10 }
 0xcb2   :  { %5806 = vmatpush3.bf16.msra.mxu1 %v2127_v39  ;;  %5807 = vmatprep.mubr.msk.bf16.mxu1 %vm6511_vm1, %v6510_v15 }
 0xcb3   :  { %5817 = vmatprep.subr.bf16.mxu1 %v6510_v15 }
 0xcb4   :  { %v6400_v46 = vpop.eup %6399 }
 0xcb5   :  { %v1823_v51 = vmul.f32 %v6400_v46, %v7070_v7 }
 0xcb7   :  { %v1831_v52 = vpack.c.bf16 %v1823_v51, %v1823_v51 }
 0xcb9   :  { %5808 = vmatmul.mubr.msk.bf16.vlgmr.msra.gmra.mrb[68].mxu1 %vm218_vm2, %v1831_v52 }
 0xcba   :  { %5821 = vmatprep.mubr.msk.bf16.mxu1 %vm6511_vm1, %v6510_v15  ;;  %5818 = vmatpush3.bf16.msra.mxu1 %v6297_v26 }
 0xcbb   :  { %5819 = vmatprep.subr.bf16.mxu1 %v6510_v15 }
 0xcbe   :  { %5820 = vmatpush3.bf16.msra.mxu1 %v6298_v31 }
 0xcbf   :  { %5833 = vmatprep.subr.bf16.mxu1 %v6510_v15 }
 0xcd2   :  { %v1802_v55 = vpop.xlane.xlu0 %1801 }
 0xcd3   :  { %6401 = vrcp.f32 %v1802_v55 }
 0xcd6   :  { %v1808_v53 = vpop.xlane.xlu0 %1807 }
 0xcd7   :  { %6403 = vrcp.f32 %v1808_v53 }
 0xcda   :  { %v2170_v56 = vpop.permute.xlu0 %2169 }
 0xcdb   :  { %v2175_v61 = vsel %vm719_vm3, %v2170_v56, 0 }
 0xcdd   :  { %v6402_v58 = vpop.eup %6401 }
 0xcde   :  { %v1822_v44 = vmul.f32 %v6402_v58, %v7080_v48  ;;  %v5283_v58 = vld [vmem:[%s7827_s6 + $0x1] ss:$0 sm:$0xff] }
 0xce0   :  { %v1830_v57 = vpack.c.bf16 %v1822_v44, %v1822_v44 }
 0xce1   :  { %v6404_v60 = vpop.eup %6403 }
 0xce2   :  { %5802 = vmatmul.mubr.msk.bf16.vlgmr.msra.gmra.mrb[60].mxu0 %vm218_vm2, %v1830_v57  ;;  %v1824_v23 = vmul.f32 %v6404_v60, %v7084_v20 }
 0xce3   :  { %5812 = vmatpush3.bf16.msra.mxu0 %v2175_v61  ;;  %5813 = vmatprep.mubr.msk.bf16.mxu0 %vm6511_vm1, %v6510_v15 }
 0xce4   :  { %5825 = vmatprep.subr.bf16.mxu0 %v6510_v15  ;;  %v1832_v63 = vpack.c.bf16 %v1824_v23, %v1824_v23 }
 0xcea   :  { %5814 = vmatmul.mubr.msk.bf16.vlgmr.msra.gmra.mrb[64].mxu0 %vm218_vm2, %v1832_v63 }
 0xceb   :  { %5829 = vmatprep.mubr.msk.bf16.mxu0 %vm6511_vm1, %v6510_v15 }
 0xd23   :  { %v1923_v62 = vpop.f32.mrb[52].mxu0 }
 0xd24   :  { %v5779_v1 = vpop.f32.mrb[53].mxu0 }
 0xd25   :  { %v1926_v2 = vpop.f32.mrb[54].mxu0 }
 0xd26   :  { %v5780_v3 = vpop.f32.mrb[55].mxu0 }
 0xd27   :  { %v1875_v4 = vpop.f32.mrb[56].mxu1 }
 0xd28   :  { %v5773_v5 = vpop.f32.mrb[57].mxu1 }
 0xd29   :  { %v1878_v6 = vpop.f32.mrb[58].mxu1 }
 0xd2a   :  { %v5774_v7 = vpop.f32.mrb[59].mxu1 }
 0xd7c   :  { %v1971_v8 = vpop.f32.mrb[60].mxu1 }
 0xd7d   :  { %v5785_v9 = vpop.f32.mrb[61].mxu1 }
 0xd7e   :  { %v1974_v11 = vpop.f32.mrb[62].mxu1 }
 0xd7f   :  { %v5786_v12 = vpop.f32.mrb[63].mxu1 }
 0xd80   :  { %v2019_v13 = vpop.f32.mrb[56].mxu0  ;;  %v6299_v12 = vld [vmem:[%s7831_s10] sm:$0xff]  }
 0xd81   :  { %v6186_v16 = vpack.i.bf16 %v2019_v13, %v1971_v8  ;;  %v5791_v18 = vpop.f32.mrb[57].mxu0  ;;  %v6300_v13 = vld [vmem:[%s7831_s10 + $0x8] sm:$0xff]  }
 0xd82   :  { %v2022_v19 = vpop.f32.mrb[58].mxu0  ;;  %v73_v18 = vld [vmem:[%s7868_s1 + $0x8] sm:$0xff] }
 0xd83   :  { %v5792_v48 = vpop.f32.mrb[59].mxu0  ;;  %6187 = vrot.lane.b32.xlu1 %v6186_v16, %s7866_s23  ;;  %v72_v16 = vld [vmem:[%s7868_s1] sm:$0xff] }
 0xd84   :  { %v2067_v17 = vpop.f32.mrb[64].mxu1  ;;  %v7183_v19 = vpack.c.bf16 %v73_v18, %v72_v16  ;;  %v6301_v48 = vld [vmem:[%s7830_s9] sm:$0xff]  }
 0xd85   :  { %v5797_v24 = vpop.f32.mrb[65].mxu1  ;;  %5826 = vmatpush3.bf16.msra.mxu0 %v6301_v48 }
 0xd86   :  { %v2070_v20 = vpop.f32.mrb[66].mxu1  ;;  %5827 = vmatprep.subr.bf16.mxu0 %v6510_v15 }
 0xd87   :  { %v5798_v27 = vpop.f32.mrb[67].mxu1 }
 0xd8c   :  { %v2163_v59 = vpop.f32.mrb[68].mxu1 }
 0xd8d   :  { %v5809_v21 = vpop.f32.mrb[69].mxu1 }
 0xd8e   :  { %v2166_v22 = vpop.f32.mrb[70].mxu1 }
 0xd8f   :  { %v5810_v25 = vpop.f32.mrb[71].mxu1 }
 0xdb5   :  { %v2115_v54 = vpop.f32.mrb[60].mxu0 }
 0xdb6   :  { %v6191_v30 = vpack.i.bf16 %v2115_v54, %v2067_v17  ;;  %v5803_v33 = vpop.f32.mrb[61].mxu0  ;;  %v6302_v17 = vld [vmem:[%s7830_s9 + $0x8] sm:$0xff]   ;;  %v5287_v54 = vld [vmem:[%s7828_s7] ss:$0 sm:$0xff] }
 0xdb7   :  { %v2118_v34 = vpop.f32.mrb[62].mxu0  ;;  %5828 = vmatpush3.bf16.msra.mxu0 %v6302_v17 }
 0xdb8   :  { %v5804_v35 = vpop.f32.mrb[63].mxu0  ;;  %6192 = vrot.lane.b32.xlu0 %v6191_v30, %s6518_s4  ;;  %5841 = vmatprep.subr.bf16.mxu0 %v6510_v15  ;;  %v5288_v34 = vld [vmem:[%s7829_s8] ss:$0 sm:$0xff] }
 0xdbd   :  { %v2211_v36 = vpop.f32.mrb[64].mxu0 }
 0xdbe   :  { %v6196_v0 = vpack.i.bf16 %v2211_v36, %v2163_v59  ;;  %v5815_v37 = vpop.f32.mrb[65].mxu0 }
 0xdbf   :  { %v2214_v14 = vpop.f32.mrb[66].mxu0 }
 0xdc0   :  { %v5816_v38 = vpop.f32.mrb[67].mxu0  ;;  %6197 = vrot.lane.b32.xlu1 %v6196_v0, %s7867_s24 }
 0xdf5   :  { %v6188_v40 = vpop.permute.xlu1 %6187 }
 0xdf6   :  { %v6190_v42 = vunpack.i.h.bf16 %v6188_v40  ;;  %v6189_v28 = vunpack.i.l.bf16 %v6188_v40 }
 0xdf8   :  { %v2242_v50 = vsel %vm218_vm2, %v1923_v62, %v6190_v42  ;;  %v2241_v47 = vsel %vm218_vm2, %v1875_v4, %v6189_v28 }
 0xe2a   :  { %v6193_v41 = vpop.permute.xlu0 %6192 }
 0xe2b   :  { %v6195_v43 = vunpack.i.h.bf16 %v6193_v41  ;;  %v6194_v45 = vunpack.i.l.bf16 %v6193_v41 }
 0xe2d   :  { %v2244_v46 = vsel %vm1125_vm5, %v2242_v50, %v6195_v43  ;;  %v2243_v51 = vsel %vm1125_vm5, %v2241_v47, %v6194_v45 }
 0xe32   :  { %v6198_v49 = vpop.permute.xlu1 %6197 }
 0xe33   :  { %v6200_v10 = vunpack.i.h.bf16 %v6198_v49  ;;  %v6199_v39 = vunpack.i.l.bf16 %v6198_v49 }
 0xe35   :  { %v2246_v52 = vsel %vm1128_vm6, %v2244_v46, %v6200_v10  ;;  %v2245_v55 = vsel %vm1128_vm6, %v2243_v51, %v6199_v39 }
 0xe36   :  { %v2247_v53 = vpack.c.bf16 %v2246_v52, %v2245_v55 }
 0xe38   :  { %5822 = vmatmul.mubr.msk.bf16.vlgmr.msra.gmra.mrb[72].mxu1 %vm82_vm0, %v2247_v53 }
 0xe39   :  { %5837 = vmatprep.mubr.msk.bf16.mxu1 %vm6511_vm1, %v6510_v15  ;;  %5834 = vmatpush3.bf16.msra.mxu1 %v6299_v12 }
 0xe3a   :  { %5835 = vmatprep.subr.bf16.mxu1 %v6510_v15 }
 0xe3d   :  { %5836 = vmatpush3.bf16.msra.mxu1 %v6300_v13 }
 0xe3e   :  { %5847 = vmatprep.subr.bf16.mxu1 %v6510_v15 }
 0xe40   :  { %5838 = vmatmul.mubr.msk.bf16.vlgmr.msra.gmra.mrb[76].mxu1 %vm82_vm0, %v7183_v19 }
 0xe41   :  { %5849 = vmatprep.mubr.msk.bf16.mxu1 %vm6511_vm1, %v6510_v15 }
 0xf0b   :  { %v2310_v44 = vpop.f32.mrb[72].mxu1 }
 0xf0c   :  { %v2311_v56 = vadd.f32 %v5283_v58, %v2310_v44  ;;  %v5823_v57 = vpop.f32.mrb[73].mxu1 }
 0xf0d   :  { %v2313_v60 = vpop.f32.mrb[74].mxu1 }
 0xf0e   :  { %v7157_v61 = vadd.f32 %v2311_v56, %v6899_v29  ;;  %v2314_v23 = vadd.f32 %v5283_v58, %v2313_v60  ;;  %v5824_v63 = vpop.f32.mrb[75].mxu1 }
 0xf10   :  { %v7160_v62 = vadd.f32 %v2314_v23, %v6904_v32  ;;  %v2321_v1 = vsel %vm82_vm0, %v7157_v61, 0.0 }
 0xf11   :  { %2322 = vadd.xlane.f32.xlu0 %v2321_v1 }
 0xf12   :  { %v2324_v2 = vsel %vm82_vm0, %v7160_v62, 0.0 }
 0xf13   :  { %2325 = vadd.xlane.f32.xlu1 %v2324_v2  ;;  %v2505_v14 = vpop.f32.mrb[76].mxu1 }
 0xf14   :  { %v5839_v38 = vpop.f32.mrb[77].mxu1  ;;  %v7207_v40 = vpack.c.bf16 %v2505_v14, %v2505_v14 }
 0xf15   :  { %v2508_v41 = vpop.f32.mrb[78].mxu1 }
 0xf16   :  { %v6201_v42 = vpack.i.bf16 %v2508_v41, %v2505_v14  ;;  %v5840_v28 = vpop.f32.mrb[79].mxu1  ;;  %v2544_v43 = vsel %vm218_vm2, %v7207_v40, 0  ;;  %v7211_v45 = vpack.c.bf16 %v2508_v41, %v2508_v41 }
 0xf18   :  { %v2590_v49 = vsel %vm218_vm2, %v7211_v45, 0 }
 0xf19   :  { %5848 = vmatpush3.bf16.xpose.msra.mxu1 %v2590_v49 }
 0xf1a   :  { %5859 = vmatprep.subr.bf16.mxu1 %v6510_v15 }
 0xf9e   :  { %v2323_v3 = vpop.xlane.xlu0 %2322 }
 0xf9f   :  { %v2327_v4 = vmul.f32 0.03125, %v2323_v3 }
 0xfa0   :  { %v2326_v5 = vpop.xlane.xlu1 %2325 }
 0xfa1   :  { %v2329_v6 = vsub.f32 %v7157_v61, %v2327_v4  ;;  %v2328_v29 = vmul.f32 0.03125, %v2326_v5 }
 0xfa3   :  { %v2330_v7 = vsub.f32 %v7160_v62, %v2328_v29  ;;  %v2331_v8 = vmul.f32 %v2329_v6, %v2329_v6 }
 0xfa5   :  { %v2333_v32 = vsel %vm82_vm0, %v2331_v8, 0.0  ;;  %v2332_v9 = vmul.f32 %v2330_v7, %v2330_v7 }
 0xfa6   :  { %2334 = vadd.xlane.f32.xlu0 %v2333_v32 }
 0xfa7   :  { %v2336_v11 = vsel %vm82_vm0, %v2332_v9, 0.0 }
 0xfaa   :  { %2337 = vadd.xlane.f32.xlu0 %v2336_v11 }
 0xfc0   :  { %6202 = vrot.lane.b32.xlu0 %v6201_v42, %s6513_s27 }
 0xfc4   :  { %6222 = vrot.lane.b32.xlu0 %v6201_v42, %s6514_s3 }
0x1033   :  { %v2335_v24 = vpop.xlane.xlu0 %2334 }
0x1034   :  { %v2339_v20 = vmul.f32 0.03125, %v2335_v24 }
0x1036   :  { %v2341_v27 = vadd.f32 1e-05, %v2339_v20 }
0x1037   :  { %v2338_v59 = vpop.xlane.xlu0 %2337 }
0x1038   :  { %6405 = vrsqrt.f32 %v2341_v27  ;;  %v2340_v21 = vmul.f32 0.03125, %v2338_v59 }
0x103a   :  { %v2342_v22 = vadd.f32 1e-05, %v2340_v21 }
0x103b   :  { %v6203_v50 = vpop.permute.xlu0 %6202 }
0x103c   :  { %6407 = vrsqrt.f32 %v2342_v22  ;;  %v6204_v47 = vunpack.i.l.bf16 %v6203_v50  ;;  %v6205_v10 = vunpack.i.h.bf16 %v6203_v50 }
0x103e   :  { %v7219_v39 = vpack.c.bf16 %v6204_v47, %v6204_v47  ;;  %v7221_v46 = vpack.c.bf16 %v6205_v10, %v6205_v10 }
0x103f   :  { %v6223_v29 = vpop.permute.xlu0 %6222 }
0x1040   :  { %v2636_v53 = vsel %vm218_vm2, %v7219_v39, 0  ;;  %v2682_v44 = vsel %vm218_vm2, %v7221_v46, 0  ;;  %v6225_v9 = vunpack.i.h.bf16 %v6223_v29  ;;  %v6224_v11 = vunpack.i.l.bf16 %v6223_v29 }
0x1042   :  { %v6406_v25 = vpop.eup %6405  ;;  %v7255_v48 = vpack.c.bf16 %v6225_v9, %v6225_v9  ;;  %v7257_v17 = vpack.c.bf16 %v6224_v11, %v6224_v11 }
0x1043   :  { %v2345_v26 = vmul.f32 %v6406_v25, %v2329_v6 }
0x1044   :  { %v2820_v59 = vsel %vm218_vm2, %v7257_v17, 0  ;;  %v2866_v21 = vsel %vm218_vm2, %v7255_v48, 0 }
0x1045   :  { %v2353_v30 = vmul.f32 %v5287_v54, %v2345_v26 }
0x1046   :  { %v6408_v31 = vpop.eup %6407 }
0x1047   :  { %v2346_v33 = vmul.f32 %v6408_v31, %v2330_v7  ;;  %v2361_v36 = vadd.f32 %v5288_v34, %v2353_v30 }
0x1049   :  { %v2354_v35 = vmul.f32 %v5287_v54, %v2346_v33 }
0x104b   :  { %v2362_v0 = vadd.f32 %v5288_v34, %v2354_v35 }
0x104d   :  { %v2363_v37 = vpack.c.bf16 %v2362_v0, %v2361_v36 }
0x104f   :  { %5830 = vmatmul.mubr.msk.bf16.vlgmr.msra.gmra.mrb[68].mxu0 %vm82_vm0, %v2363_v37 }
0x1050   :  { %5843 = vmatprep.mubr.msk.bf16.mxu0 %vm6511_vm1, %v6510_v15  ;;  %5842 = vmatpush3.bf16.xpose.msra.mxu0 %v2544_v43 }
0x1051   :  { %5853 = vmatprep.subr.bf16.mxu0 %v6510_v15 }
0x1122   :  { %v2417_v51 = vpop.f32.mrb[68].mxu0 }
0x1123   :  { %v2444_v52 = vpack.c.bf16 %v2417_v51, %v2417_v51  ;;  %v5831_v55 = vpop.f32.mrb[69].mxu0 }
0x1124   :  { %v2420_v58 = vpop.f32.mrb[70].mxu0 }
0x1125   :  { %v2445_v56 = vpack.c.bf16 %v2420_v58, %v2420_v58  ;;  %v5832_v57 = vpop.f32.mrb[71].mxu0  ;;  %5844 = vmatmul.mubr.msk.bf16.vlgmr.msra.gmra.mrb[72].mxu0 %vm218_vm2, %v2444_v52  ;;  %v6206_v60 = vpack.i.bf16 %v2420_v58, %v2417_v51 }
0x1126   :  { %5854 = vmatpush3.bf16.xpose.msra.mxu0 %v2636_v53  ;;  %5855 = vmatprep.mubr.msk.bf16.mxu0 %vm6511_vm1, %v6510_v15 }
0x1127   :  { %6207 = vrot.lane.b32.xlu1 %v6206_v60, %s6513_s27  ;;  %5850 = vmatmul.mubr.msk.bf16.vlgmr.msra.gmra.mrb[80].mxu1 %vm218_vm2, %v2445_v56 }
0x1128   :  { %5860 = vmatpush3.bf16.xpose.msra.mxu1 %v2682_v44  ;;  %5861 = vmatprep.mubr.msk.bf16.mxu1 %vm6511_vm1, %v6510_v15 }
0x1129   :  { %5865 = vmatprep.subr.bf16.mxu0 %v6510_v15  ;;  %5871 = vmatprep.subr.bf16.mxu1 %v6510_v15 }
0x112b   :  { %6212 = vrot.lane.b32.xlu1 %v6201_v42, %s6512_s25 }
0x112f   :  { %6217 = vrot.lane.b32.xlu1 %v6206_v60, %s6512_s25 }
0x1133   :  { %6227 = vrot.lane.b32.xlu1 %v6206_v60, %s6514_s3 }
0x1199   :  { %v6208_v23 = vpop.permute.xlu1 %6207 }
0x119a   :  { %v6210_v63 = vunpack.i.h.bf16 %v6208_v23  ;;  %v6209_v1 = vunpack.i.l.bf16 %v6208_v23 }
0x119c   :  { %v2447_v2 = vpack.c.bf16 %v6210_v63, %v6210_v63  ;;  %v2446_v3 = vpack.c.bf16 %v6209_v1, %v6209_v1 }
0x119d   :  { %v6213_v4 = vpop.permute.xlu1 %6212 }
0x119e   :  { %v6215_v5 = vunpack.i.h.bf16 %v6213_v4  ;;  %v6214_v6 = vunpack.i.l.bf16 %v6213_v4  ;;  %5856 = vmatmul.mubr.msk.bf16.vlgmr.msra.gmra.mrb[76].mxu0 %vm218_vm2, %v2446_v3  ;;  %5862 = vmatmul.mubr.msk.bf16.vlgmr.msra.gmra.mrb[84].mxu1 %vm218_vm2, %v2447_v2 }
0x119f   :  { %5867 = vmatprep.mubr.msk.bf16.mxu0 %vm6511_vm1, %v6510_v15  ;;  %5873 = vmatprep.mubr.msk.bf16.mxu1 %vm6511_vm1, %v6510_v15 }
0x11a0   :  { %v7245_v7 = vpack.c.bf16 %v6215_v5, %v6215_v5  ;;  %v7247_v8 = vpack.c.bf16 %v6214_v6, %v6214_v6 }
0x11a1   :  { %v6218_v32 = vpop.permute.xlu1 %6217 }
0x11a2   :  { %v2728_v12 = vsel %vm218_vm2, %v7247_v8, 0  ;;  %v2774_v13 = vsel %vm218_vm2, %v7245_v7, 0  ;;  %v6220_v16 = vunpack.i.h.bf16 %v6218_v32  ;;  %v6219_v18 = vunpack.i.l.bf16 %v6218_v32 }
0x11a3   :  { %5866 = vmatpush3.bf16.xpose.msra.mxu0 %v2728_v12  ;;  %5872 = vmatpush3.bf16.xpose.msra.mxu1 %v2774_v13 }
0x11a4   :  { %5877 = vmatprep.subr.bf16.mxu0 %v6510_v15  ;;  %5883 = vmatprep.subr.bf16.mxu1 %v6510_v15  ;;  %v2449_v24 = vpack.c.bf16 %v6220_v16, %v6220_v16  ;;  %v2448_v20 = vpack.c.bf16 %v6219_v18, %v6219_v18 }
0x11a5   :  { %v6228_v27 = vpop.permute.xlu1 %6227 }
0x11a6   :  { %v6230_v22 = vunpack.i.h.bf16 %v6228_v27  ;;  %v6229_v25 = vunpack.i.l.bf16 %v6228_v27 }
0x11a8   :  { %v2451_v26 = vpack.c.bf16 %v6230_v22, %v6230_v22  ;;  %v2450_v54 = vpack.c.bf16 %v6229_v25, %v6229_v25 }
0x11aa   :  { %5868 = vmatmul.mubr.msk.bf16.vlgmr.msra.gmra.mrb[80].mxu0 %vm218_vm2, %v2448_v20  ;;  %5874 = vmatmul.mubr.msk.bf16.vlgmr.msra.gmra.mrb[88].mxu1 %vm218_vm2, %v2449_v24 }
0x11ab   :  { %5878 = vmatpush3.bf16.xpose.msra.mxu0 %v2820_v59  ;;  %5884 = vmatpush3.bf16.xpose.msra.mxu1 %v2866_v21 }
0x11ac   :  { %5879 = vmatprep.mubr.msk.bf16.mxu0 %vm6511_vm1, %v6510_v15  ;;  %5885 = vmatprep.mubr.msk.bf16.mxu1 %vm6511_vm1, %v6510_v15 }
0x11ad   :  { %5895 = vmatprep.subr.bf16.mxu1 %v6510_v15  ;;  %5889 = vmatprep.subr.bf16.mxu0 %v6510_v15 }
0x11b2   :  { %5880 = vmatmul.mubr.msk.bf16.vlgmr.msra.gmra.mrb[84].mxu0 %vm218_vm2, %v2450_v54  ;;  %5886 = vmatmul.mubr.msk.bf16.vlgmr.msra.gmra.mrb[92].mxu1 %vm218_vm2, %v2451_v26 }
0x11b3   :  { %5891 = vmatprep.mubr.msk.bf16.mxu0 %vm6511_vm1, %v6510_v15  ;;  %5897 = vmatprep.mubr.msk.bf16.mxu1 %vm6511_vm1, %v6510_v15 }
0x11f8   :  { %v2580_v31 = vpop.f32.mrb[72].mxu0 }
0x11f9   :  { %v5845_v30 = vpop.f32.mrb[73].mxu0  ;;  %v2908_v33 = vsel %vm218_vm2, %v2580_v31, -inf }
0x11fa   :  { %v2583_v34 = vpop.f32.mrb[74].mxu0  ;;  %2909 = vmax.xlane.f32.xlu0 %v2908_v33  ;;  %v2626_v35 = vpop.f32.mrb[80].mxu1 }
0x11fb   :  { %v5846_v36 = vpop.f32.mrb[75].mxu0  ;;  %v5851_v0 = vpop.f32.mrb[81].mxu1  ;;  %v2911_v37 = vsel %vm218_vm2, %v2626_v35, -inf }
0x11fc   :  { %2912 = vmax.xlane.f32.xlu1 %v2911_v37  ;;  %v2629_v14 = vpop.f32.mrb[82].mxu1 }
0x11fd   :  { %v5852_v38 = vpop.f32.mrb[83].mxu1 }
0x1271   :  { %v2672_v41 = vpop.f32.mrb[76].mxu0  ;;  %v2718_v42 = vpop.f32.mrb[84].mxu1 }
0x1272   :  { %v5857_v28 = vpop.f32.mrb[77].mxu0  ;;  %v5863_v43 = vpop.f32.mrb[85].mxu1  ;;  %v2914_v49 = vsel %vm218_vm2, %v2672_v41, -inf  ;;  %v2917_v52 = vsel %vm218_vm2, %v2718_v42, -inf }
0x1273   :  { %2915 = vmax.xlane.f32.xlu0 %v2914_v49  ;;  %v2675_v50 = vpop.f32.mrb[78].mxu0  ;;  %v2721_v47 = vpop.f32.mrb[86].mxu1 }
0x1274   :  { %v5858_v10 = vpop.f32.mrb[79].mxu0  ;;  %v5864_v51 = vpop.f32.mrb[87].mxu1 }
0x1277   :  { %2918 = vmax.xlane.f32.xlu0 %v2917_v52 }
0x127d   :  { %v7281_v55 = vpop.f32.mrb[80].mxu0  ;;  %v2810_v53 = vpop.f32.mrb[88].mxu1 }
0x127e   :  { %v5869_v58 = vpop.f32.mrb[81].mxu0  ;;  %v5875_v44 = vpop.f32.mrb[89].mxu1  ;;  %v2920_v56 = vsel %vm218_vm2, %v7281_v55, -inf  ;;  %v2923_v57 = vsel %vm218_vm2, %v2810_v53, -inf }
0x127f   :  { %v2767_v60 = vpop.f32.mrb[82].mxu0  ;;  %2921 = vmax.xlane.f32.xlu0 %v2920_v56  ;;  %2924 = vmax.xlane.f32.xlu1 %v2923_v57  ;;  %v2813_v23 = vpop.f32.mrb[90].mxu1 }
0x1280   :  { %v5870_v63 = vpop.f32.mrb[83].mxu0  ;;  %v5876_v1 = vpop.f32.mrb[91].mxu1 }
0x1285   :  { %v7286_v2 = vpop.f32.mrb[84].mxu0  ;;  %v7288_v3 = vpop.f32.mrb[92].mxu1 }
0x1286   :  { %v5881_v4 = vpop.f32.mrb[85].mxu0  ;;  %v5887_v5 = vpop.f32.mrb[93].mxu1  ;;  %v2926_v6 = vsel %vm218_vm2, %v7286_v2, -inf  ;;  %v2929_v18 = vsel %vm218_vm2, %v7288_v3, -inf }
0x1287   :  { %v2859_v29 = vpop.f32.mrb[86].mxu0  ;;  %2927 = vmax.xlane.f32.xlu0 %v2926_v6  ;;  %v2905_v32 = vpop.f32.mrb[94].mxu1 }
0x1288   :  { %v5882_v9 = vpop.f32.mrb[87].mxu0  ;;  %v5888_v11 = vpop.f32.mrb[95].mxu1 }
0x1289   :  { %v2910_v12 = vpop.xlane.xlu0 %2909 }
0x128a   :  { %v2932_v13 = vsub.f32 %v2580_v31, %v2910_v12 }
0x128c   :  { %v2940_v16 = vmul.f32 1.442695, %v2932_v13 }
0x128e   :  { %6409 = vpow2.f32 %v2940_v16 }
0x1290   :  { %3054 = vrot.lane.b32.xlu1 %v7211_v45, %s6515_s28  ;;  %v2913_v45 = vpop.xlane.xlu1 %2912 }
0x1294   :  { %3103 = vrot.lane.b32.xlu1 %v7219_v39, %s6515_s28  ;;  %v2933_v39 = vsub.f32 %v2626_v35, %v2913_v45 }
0x1298   :  { %v7300_v24 = vpop.eup %6409 }
0x1299   :  { %v2956_v20 = vsel %vm218_vm2, %v7300_v24, 0.0 }
0x129d   :  { %3005 = vrot.lane.b32.xlu0 %v7207_v40, %s6515_s28  ;;  %v2942_v40 = vmul.f32 1.442695, %v2933_v39 }
0x129f   :  { %6411 = vpow2.f32 %v2942_v40 }
0x12a9   :  { %v7306_v27 = vpop.eup %6411 }
0x12aa   :  { %v2959_v59 = vsel %vm218_vm2, %v7306_v27, 0.0 }
0x12b8   :  { %2930 = vmax.xlane.f32.xlu1 %v2929_v18 }
0x12bc   :  { %2957 = vadd.xlane.f32.xlu0 %v2956_v20 }
0x12c9   :  { %3152 = vrot.lane.b32.xlu1 %v7221_v46, %s6515_s28 }
0x12ed   :  { %2960 = vadd.xlane.f32.xlu1 %v2959_v59 }
0x12fe   :  { %3250 = vrot.lane.b32.xlu1 %v7245_v7, %s6515_s28 }
0x1300   :  { %v2916_v21 = vpop.xlane.xlu0 %2915 }
0x1301   :  { %v2934_v22 = vsub.f32 %v2672_v41, %v2916_v21 }
0x1303   :  { %v2944_v25 = vmul.f32 1.442695, %v2934_v22 }
0x1304   :  { %v2919_v26 = vpop.xlane.xlu0 %2918 }
0x1305   :  { %6413 = vpow2.f32 %v2944_v25  ;;  %v2935_v54 = vsub.f32 %v2718_v42, %v2919_v26 }
0x1307   :  { %v2946_v30 = vmul.f32 1.442695, %v2935_v54 }
0x1309   :  { %6415 = vpow2.f32 %v2946_v30 }
0x130c   :  { %v2925_v46 = vpop.xlane.xlu1 %2924  ;;  %v2922_v33 = vpop.xlane.xlu0 %2921 }
0x130d   :  { %v2937_v34 = vsub.f32 %v2810_v53, %v2925_v46  ;;  %v2936_v49 = vsub.f32 %v7281_v55, %v2922_v33 }
0x130f   :  { %v7312_v31 = vpop.eup %6413  ;;  %v2950_v7 = vmul.f32 1.442695, %v2937_v34  ;;  %v2948_v50 = vmul.f32 1.442695, %v2936_v49 }
0x1310   :  { %v3055_v35 = vpop.permute.xlu1 %3054  ;;  %v2962_v36 = vsel %vm218_vm2, %v7312_v31, 0.0 }
0x1311   :  { %v3060_v0 = vsel %vm719_vm3, %v3055_v35, 0  ;;  %2963 = vadd.xlane.f32.xlu0 %v2962_v36  ;;  %6417 = vpow2.f32 %v2950_v7 }
0x1312   :  { %5896 = vmatpush3.bf16.msra.mxu1 %v3060_v0  ;;  %6419 = vpow2.f32 %v2948_v50 }
0x1313   :  { %5907 = vmatprep.subr.bf16.mxu1 %v6510_v15  ;;  %v7320_v41 = vpop.eup %6415 }
0x1314   :  { %v2928_v37 = vpop.xlane.xlu0 %2927  ;;  %v2965_v42 = vsel %vm218_vm2, %v7320_v41, 0.0  ;;  %v3104_v51 = vpop.permute.xlu1 %3103 }
0x1315   :  { %v2938_v47 = vsub.f32 %v7286_v2, %v2928_v37 }
0x1317   :  { %v2952_v10 = vmul.f32 1.442695, %v2938_v47 }
0x1318   :  { %v3006_v14 = vpop.permute.xlu0 %3005 }
0x1319   :  { %v3011_v38 = vsel %vm719_vm3, %v3006_v14, 0  ;;  %6421 = vpow2.f32 %v2952_v10 }
0x131a   :  { %5890 = vmatpush3.bf16.msra.mxu0 %v3011_v38 }
0x131b   :  { %5901 = vmatprep.subr.bf16.mxu0 %v6510_v15  ;;  %v7324_v28 = vpop.eup %6417 }
0x131c   :  { %v2971_v43 = vsel %vm218_vm2, %v7324_v28, 0.0  ;;  %v7332_v52 = vpop.eup %6419 }
0x131d   :  { %v2968_v58 = vsel %vm218_vm2, %v7332_v52, 0.0 }
0x1322   :  { %2966 = vadd.xlane.f32.xlu1 %v2965_v42 }
0x1323   :  { %v7336_v44 = vpop.eup %6421 }
0x1324   :  { %v2974_v57 = vsel %vm218_vm2, %v7336_v44, 0.0 }
0x1326   :  { %2972 = vadd.xlane.f32.xlu1 %v2971_v43 }
0x1327   :  { %3201 = vrot.lane.b32.xlu0 %v7247_v8, %s6515_s28 }
0x1345   :  { %v2931_v53 = vpop.xlane.xlu1 %2930 }
0x1346   :  { %v2939_v56 = vsub.f32 %v7288_v3, %v2931_v53  ;;  %2969 = vadd.xlane.f32.xlu0 %v2968_v58  ;;  %v3109_v3 = vsel %vm719_vm3, %v3104_v51, 0 }
0x1348   :  { %v2954_v8 = vmul.f32 1.442695, %v2939_v56 }
0x1349   :  { %v2958_v55 = vpop.xlane.xlu0 %2957  ;;  %v3153_v4 = vpop.permute.xlu1 %3152 }
0x134a   :  { %6423 = vpow2.f32 %v2954_v8  ;;  %2975 = vadd.xlane.f32.xlu0 %v2974_v57  ;;  %v3158_v9 = vsel %vm719_vm3, %v3153_v4, 0 }
0x134b   :  { %6425 = vrcp.f32 %v2958_v55 }
0x1354   :  { %v7341_v60 = vpop.eup %6423 }
0x1355   :  { %v6426_v23 = vpop.eup %6425  ;;  %v2977_v63 = vsel %vm218_vm2, %v7341_v60, 0.0 }
0x1356   :  { %v2988_v1 = vmul.f32 %v6426_v23, %v7300_v24  ;;  %2978 = vadd.xlane.f32.xlu1 %v2977_v63 }
0x1358   :  { %v2996_v2 = vpack.c.bf16 %v2988_v1, %v2988_v1 }
0x135a   :  { %5892 = vmatmul.mubr.msk.bf16.vlgmr.msra.gmra.mrb[88].mxu0 %vm218_vm2, %v2996_v2 }
0x135b   :  { %5902 = vmatpush3.bf16.msra.mxu0 %v3109_v3  ;;  %5903 = vmatprep.mubr.msk.bf16.mxu0 %vm6511_vm1, %v6510_v15  ;;  %v6303_v3 = vld [vmem:[%s7832_s11] sm:$0xff]  }
0x135c   :  { %5913 = vmatprep.subr.bf16.mxu0 %v6510_v15 }
0x1360   :  { %3299 = vrot.lane.b32.xlu0 %v7257_v17, %s6515_s28 }
0x1367   :  { %3348 = vrot.lane.b32.xlu1 %v7255_v48, %s6515_s28 }
0x137a   :  { %v2961_v5 = vpop.xlane.xlu1 %2960 }
0x137b   :  { %6427 = vrcp.f32 %v2961_v5 }
0x137e   :  { %v3251_v12 = vpop.permute.xlu1 %3250 }
0x137f   :  { %v3256_v59 = vsel %vm719_vm3, %v3251_v12, 0 }
0x1385   :  { %v6428_v6 = vpop.eup %6427 }
0x1386   :  { %v2989_v29 = vmul.f32 %v6428_v6, %v7306_v27 }
0x1388   :  { %v2997_v32 = vpack.c.bf16 %v2989_v29, %v2989_v29 }
0x138a   :  { %5898 = vmatmul.mubr.msk.bf16.vlgmr.msra.gmra.mrb[96].mxu1 %vm218_vm2, %v2997_v32 }
0x138b   :  { %5908 = vmatpush3.bf16.msra.mxu1 %v3158_v9  ;;  %5909 = vmatprep.mubr.msk.bf16.mxu1 %vm6511_vm1, %v6510_v15 }
0x138c   :  { %5919 = vmatprep.subr.bf16.mxu1 %v6510_v15 }
0x139e   :  { %v2964_v17 = vpop.xlane.xlu0 %2963 }
0x139f   :  { %6429 = vrcp.f32 %v2964_v17  ;;  %v6304_v17 = vld [vmem:[%s7832_s11 + $0x8] sm:$0xff]  }
0x13a2   :  { %v3202_v13 = vpop.permute.xlu0 %3201 }
0x13a3   :  { %v3207_v18 = vsel %vm719_vm3, %v3202_v13, 0 }
0x13a9   :  { %v6430_v48 = vpop.eup %6429 }
0x13aa   :  { %v2990_v11 = vmul.f32 %v6430_v48, %v7312_v31 }
0x13ac   :  { %v2998_v16 = vpack.c.bf16 %v2990_v11, %v2990_v11 }
0x13ae   :  { %5904 = vmatmul.mubr.msk.bf16.vlgmr.msra.gmra.mrb[92].mxu0 %vm218_vm2, %v2998_v16 }
0x13af   :  { %5914 = vmatpush3.bf16.msra.mxu0 %v3207_v18  ;;  %v2967_v24 = vpop.xlane.xlu1 %2966  ;;  %5915 = vmatprep.mubr.msk.bf16.mxu0 %vm6511_vm1, %v6510_v15 }
0x13b0   :  { %6431 = vrcp.f32 %v2967_v24  ;;  %5925 = vmatprep.subr.bf16.mxu0 %v6510_v15 }
0x13b3   :  { %v2973_v20 = vpop.xlane.xlu1 %2972 }
0x13b4   :  { %6433 = vrcp.f32 %v2973_v20 }
0x13ba   :  { %v6432_v45 = vpop.eup %6431 }
0x13bb   :  { %v2991_v39 = vmul.f32 %v6432_v45, %v7320_v41 }
0x13bd   :  { %v2999_v40 = vpack.c.bf16 %v2991_v39, %v2991_v39 }
0x13be   :  { %v6434_v27 = vpop.eup %6433 }
0x13bf   :  { %5910 = vmatmul.mubr.msk.bf16.vlgmr.msra.gmra.mrb[100].mxu1 %vm218_vm2, %v2999_v40  ;;  %v2993_v21 = vmul.f32 %v6434_v27, %v7324_v28 }
0x13c0   :  { %5920 = vmatpush3.bf16.msra.mxu1 %v3256_v59  ;;  %5921 = vmatprep.mubr.msk.bf16.mxu1 %vm6511_vm1, %v6510_v15 }
0x13c1   :  { %5931 = vmatprep.subr.bf16.mxu1 %v6510_v15  ;;  %v3001_v22 = vpack.c.bf16 %v2993_v21, %v2993_v21 }
0x13c7   :  { %5922 = vmatmul.mubr.msk.bf16.vlgmr.msra.gmra.mrb[104].mxu1 %vm218_vm2, %v3001_v22 }
0x13c8   :  { %5933 = vmatprep.mubr.msk.bf16.mxu1 %vm6511_vm1, %v6510_v15 }
0x13d3   :  { %v2970_v25 = vpop.xlane.xlu0 %2969 }
0x13d4   :  { %6435 = vrcp.f32 %v2970_v25 }
0x13d7   :  { %v2976_v26 = vpop.xlane.xlu0 %2975 }
0x13d8   :  { %6437 = vrcp.f32 %v2976_v26 }
0x13db   :  { %v3300_v31 = vpop.permute.xlu0 %3299 }
0x13dc   :  { %v3305_v34 = vsel %vm719_vm3, %v3300_v31, 0 }
0x13de   :  { %v6436_v54 = vpop.eup %6435 }
0x13df   :  { %v2992_v46 = vmul.f32 %v6436_v54, %v7332_v52 }
0x13e1   :  { %v3000_v30 = vpack.c.bf16 %v2992_v46, %v2992_v46 }
0x13e2   :  { %v6438_v33 = vpop.eup %6437 }
0x13e3   :  { %5916 = vmatmul.mubr.msk.bf16.vlgmr.msra.gmra.mrb[96].mxu0 %vm218_vm2, %v3000_v30  ;;  %v2979_v35 = vpop.xlane.xlu1 %2978  ;;  %v2994_v36 = vmul.f32 %v6438_v33, %v7336_v44 }
0x13e4   :  { %5926 = vmatpush3.bf16.msra.mxu0 %v3305_v34  ;;  %6439 = vrcp.f32 %v2979_v35  ;;  %5927 = vmatprep.mubr.msk.bf16.mxu0 %vm6511_vm1, %v6510_v15 }
0x13e5   :  { %5937 = vmatprep.subr.bf16.mxu0 %v6510_v15  ;;  %v3002_v37 = vpack.c.bf16 %v2994_v36, %v2994_v36  ;;  %v5311_v36 = vld [vmem:[%s7833_s12] ss:$0 sm:$0xff] }
0x13e7   :  { %v3349_v0 = vpop.permute.xlu1 %3348 }
0x13e8   :  { %v3354_v7 = vsel %vm719_vm3, %v3349_v0, 0 }
0x13e9   :  { %5932 = vmatpush3.bf16.msra.mxu1 %v3354_v7 }
0x13ea   :  { %5945 = vmatprep.subr.bf16.mxu1 %v6510_v15 }
0x13eb   :  { %5928 = vmatmul.mubr.msk.bf16.vlgmr.msra.gmra.mrb[100].mxu0 %vm218_vm2, %v3002_v37 }
0x13ec   :  { %5941 = vmatprep.mubr.msk.bf16.mxu0 %vm6511_vm1, %v6510_v15  ;;  %5938 = vmatpush3.bf16.msra.mxu0 %v6303_v3 }
0x13ed   :  { %5939 = vmatprep.subr.bf16.mxu0 %v6510_v15 }
0x13ee   :  { %v6440_v14 = vpop.eup %6439 }
0x13ef   :  { %v2995_v38 = vmul.f32 %v6440_v14, %v7341_v60 }
0x13f0   :  { %5940 = vmatpush3.bf16.msra.mxu0 %v6304_v17  ;;  %v5315_v17 = vld [vmem:[%s7834_s13] ss:$0 sm:$0xff] }
0x13f1   :  { %v3003_v41 = vpack.c.bf16 %v2995_v38, %v2995_v38  ;;  %5953 = vmatprep.subr.bf16.mxu0 %v6510_v15 }
0x13f3   :  { %5934 = vmatmul.mubr.msk.bf16.vlgmr.msra.gmra.mrb[108].mxu1 %vm218_vm2, %v3003_v41 }
0x13f4   :  { %5949 = vmatprep.mubr.msk.bf16.mxu1 %vm6511_vm1, %v6510_v15 }
0x142d   :  { %v3047_v42 = vpop.f32.mrb[88].mxu0 }
0x142e   :  { %v5893_v28 = vpop.f32.mrb[89].mxu0 }
0x142f   :  { %v3050_v43 = vpop.f32.mrb[90].mxu0 }
0x1430   :  { %v5894_v49 = vpop.f32.mrb[91].mxu0 }
0x145d   :  { %v3096_v50 = vpop.f32.mrb[96].mxu1 }
0x145e   :  { %v5899_v47 = vpop.f32.mrb[97].mxu1 }
0x145f   :  { %v3099_v10 = vpop.f32.mrb[98].mxu1 }
0x1460   :  { %v5900_v51 = vpop.f32.mrb[99].mxu1 }
0x1481   :  { %v3145_v52 = vpop.f32.mrb[92].mxu0 }
0x1482   :  { %v5905_v53 = vpop.f32.mrb[93].mxu0 }
0x1483   :  { %v3148_v58 = vpop.f32.mrb[94].mxu0 }
0x1484   :  { %v5906_v44 = vpop.f32.mrb[95].mxu0 }
0x1492   :  { %v3194_v56 = vpop.f32.mrb[100].mxu1 }
0x1493   :  { %v6231_v8 = vpack.i.bf16 %v3194_v56, %v3145_v52  ;;  %v5911_v55 = vpop.f32.mrb[101].mxu1  ;;  %v6305_v56 = vld [vmem:[%s7836_s15] sm:$0xff]  }
0x1494   :  { %v3197_v57 = vpop.f32.mrb[102].mxu1  ;;  %5946 = vmatpush3.bf16.msra.mxu1 %v6305_v56  ;;  %v6307_v55 = vld [vmem:[%s7838_s17] sm:$0xff]  }
0x1495   :  { %6232 = vrot.lane.b32.xlu0 %v6231_v8, %s7866_s23  ;;  %v5912_v60 = vpop.f32.mrb[103].mxu1  ;;  %v6306_v8 = vld [vmem:[%s7836_s15 + $0x8] sm:$0xff]   ;;  %5947 = vmatprep.subr.bf16.mxu1 %v6510_v15 }
0x1496   :  { %v6308_v57 = vld [vmem:[%s7838_s17 + $0x8] sm:$0xff]   ;;  %v6309_v60 = vld [vmem:[%s7838_s17 + $0x10] sm:$0xff]  }
0x1498   :  { %5948 = vmatpush3.bf16.msra.mxu1 %v6306_v8 }
0x1499   :  { %5973 = vmatprep.subr.bf16.mxu1 %v6510_v15 }
0x149a   :  { %v3292_v23 = vpop.f32.mrb[104].mxu1 }
0x149b   :  { %v5923_v63 = vpop.f32.mrb[105].mxu1 }
0x149c   :  { %v3295_v1 = vpop.f32.mrb[106].mxu1  ;;  %v6311_v63 = vld [vmem:[%s7838_s17 + $0x20] sm:$0xff]  }
0x149d   :  { %v5924_v2 = vpop.f32.mrb[107].mxu1  ;;  %v6312_v1 = vld [vmem:[%s7838_s17 + $0x28] sm:$0xff]  }
0x14b6   :  { %v3243_v4 = vpop.f32.mrb[96].mxu0 }
0x14b7   :  { %v6236_v5 = vpack.i.bf16 %v3292_v23, %v3243_v4  ;;  %v5917_v6 = vpop.f32.mrb[97].mxu0  ;;  %v6310_v23 = vld [vmem:[%s7838_s17 + $0x18] sm:$0xff]  }
0x14b8   :  { %v3246_v29 = vpop.f32.mrb[98].mxu0 }
0x14b9   :  { %v5918_v32 = vpop.f32.mrb[99].mxu0  ;;  %6237 = vrot.lane.b32.xlu1 %v6236_v5, %s6518_s4 }
0x14be   :  { %v3341_v9 = vpop.f32.mrb[100].mxu0 }
0x14bf   :  { %v5929_v48 = vpop.f32.mrb[101].mxu0 }
0x14c0   :  { %v3344_v11 = vpop.f32.mrb[102].mxu0 }
0x14c1   :  { %v5930_v12 = vpop.f32.mrb[103].mxu0 }
0x14c6   :  { %v3390_v13 = vpop.f32.mrb[108].mxu1 }
0x14c7   :  { %v6241_v16 = vpack.i.bf16 %v3390_v13, %v3341_v9  ;;  %v5935_v18 = vpop.f32.mrb[109].mxu1  ;;  %v5316_v13 = vld [vmem:[%s7835_s14] ss:$0 sm:$0xff] }
0x14c8   :  { %v3393_v24 = vpop.f32.mrb[110].mxu1 }
0x14c9   :  { %6242 = vrot.lane.b32.xlu0 %v6241_v16, %s7867_s24  ;;  %v5936_v20 = vpop.f32.mrb[111].mxu1 }
0x1507   :  { %v6233_v45 = vpop.permute.xlu0 %6232 }
0x1508   :  { %v6235_v40 = vunpack.i.h.bf16 %v6233_v45  ;;  %v6234_v27 = vunpack.i.l.bf16 %v6233_v45  ;;  %v6313_v45 = vld [vmem:[%s7838_s17 + $0x30] sm:$0xff]  }
0x150a   :  { %v3421_v25 = vsel %vm218_vm2, %v3096_v50, %v6235_v40  ;;  %v3420_v26 = vsel %vm218_vm2, %v3047_v42, %v6234_v27  ;;  %v5317_v40 = vld [vmem:[%s7837_s16] ss:$0 sm:$0xff] }
0x152b   :  { %v6238_v39 = vpop.permute.xlu1 %6237 }
0x152c   :  { %v6240_v59 = vunpack.i.h.bf16 %v6238_v39  ;;  %v6239_v21 = vunpack.i.l.bf16 %v6238_v39  ;;  %v6314_v39 = vld [vmem:[%s7838_s17 + $0x38] sm:$0xff]  }
0x152e   :  { %v3423_v31 = vsel %vm1125_vm5, %v3421_v25, %v6240_v59  ;;  %v3422_v30 = vsel %vm1125_vm5, %v3420_v26, %v6239_v21 }
0x153b   :  { %v6243_v22 = vpop.permute.xlu0 %6242 }
0x153c   :  { %v6245_v54 = vunpack.i.h.bf16 %v6243_v22  ;;  %v6244_v46 = vunpack.i.l.bf16 %v6243_v22 }
0x153e   :  { %v3425_v33 = vsel %vm1128_vm6, %v3423_v31, %v6245_v54  ;;  %v3424_v34 = vsel %vm1128_vm6, %v3422_v30, %v6244_v46  ;;  %v5321_v30 = vld [vmem:[%s7839_s18] ss:$0 sm:$0xff] }
0x153f   :  { %v3426_v35 = vpack.c.bf16 %v3425_v33, %v3424_v34 }
0x1541   :  { %5942 = vmatmul.mubr.msk.bf16.vlgmr.msra.gmra.mrb[104].mxu0 %vm82_vm0, %v3426_v35 }
0x1542   :  { %5969 = vmatprep.mubr.msk.bf16.mxu0 %vm6511_vm1, %v6510_v15  ;;  %5954 = vmatpush3.bf16.msra.mxu0 %v6307_v55 }
0x1543   :  { %5955 = vmatprep.subr.bf16.mxu0 %v6510_v15 }
0x1546   :  { %5956 = vmatpush3.bf16.msra.mxu0 %v6308_v57 }
0x1547   :  { %5957 = vmatprep.subr.bf16.mxu0 %v6510_v15 }
0x154a   :  { %5958 = vmatpush3.bf16.msra.mxu0 %v6309_v60 }
0x154b   :  { %5959 = vmatprep.subr.bf16.mxu0 %v6510_v15 }
0x154e   :  { %5960 = vmatpush3.bf16.msra.mxu0 %v6310_v23  ;;  %v5332_v23 = vld [vmem:[%s7828_s7 + $0x1] ss:$0 sm:$0xff] }
0x154f   :  { %5961 = vmatprep.subr.bf16.mxu0 %v6510_v15 }
0x1552   :  { %5962 = vmatpush3.bf16.msra.mxu0 %v6311_v63 }
0x1553   :  { %5963 = vmatprep.subr.bf16.mxu0 %v6510_v15 }
0x1556   :  { %5964 = vmatpush3.bf16.msra.mxu0 %v6312_v1 }
0x1557   :  { %5965 = vmatprep.subr.bf16.mxu0 %v6510_v15 }
0x155a   :  { %5966 = vmatpush3.bf16.msra.mxu0 %v6313_v45 }
0x155b   :  { %5967 = vmatprep.subr.bf16.mxu0 %v6510_v15 }
0x155e   :  { %5968 = vmatpush3.bf16.msra.mxu0 %v6314_v39 }
0x155f   :  { %6001 = vmatprep.subr.bf16.mxu0 %v6510_v15 }
0x1614   :  { %v3487_v0 = vpop.f32.mrb[104].mxu0 }
0x1615   :  { %v3488_v7 = vadd.f32 %v5311_v36, %v3487_v0  ;;  %v5943_v37 = vpop.f32.mrb[105].mxu0 }
0x1616   :  { %v3490_v14 = vpop.f32.mrb[106].mxu0 }
0x1617   :  { %v7417_v38 = vadd.f32 %v3488_v7, %v7157_v61  ;;  %v3491_v41 = vadd.f32 %v5311_v36, %v3490_v14  ;;  %v5944_v42 = vpop.f32.mrb[107].mxu0 }
0x1619   :  { %v7420_v28 = vadd.f32 %v3491_v41, %v7160_v62  ;;  %v3498_v43 = vsel %vm82_vm0, %v7417_v38, 0.0 }
0x161a   :  { %3499 = vadd.xlane.f32.xlu1 %v3498_v43 }
0x161b   :  { %v3501_v49 = vsel %vm82_vm0, %v7420_v28, 0.0 }
0x161c   :  { %3502 = vadd.xlane.f32.xlu0 %v3501_v49 }
0x16a7   :  { %v3500_v50 = vpop.xlane.xlu1 %3499 }
0x16a8   :  { %v3504_v47 = vmul.f32 0.03125, %v3500_v50 }
0x16a9   :  { %v3503_v10 = vpop.xlane.xlu0 %3502 }
0x16aa   :  { %v3506_v51 = vsub.f32 %v7417_v38, %v3504_v47  ;;  %v3505_v61 = vmul.f32 0.03125, %v3503_v10 }
0x16ac   :  { %v3507_v52 = vsub.f32 %v7420_v28, %v3505_v61  ;;  %v3508_v53 = vmul.f32 %v3506_v51, %v3506_v51 }
0x16ae   :  { %v3510_v62 = vsel %vm82_vm0, %v3508_v53, 0.0  ;;  %v3509_v58 = vmul.f32 %v3507_v52, %v3507_v52  ;;  %v6315_v53 = vld [vmem:[%s7830_s9 + $0x10] sm:$0xff]  }
0x16af   :  { %3511 = vadd.xlane.f32.xlu0 %v3510_v62  ;;  %v6316_v62 = vld [vmem:[%s7830_s9 + $0x18] sm:$0xff]  }
0x16b0   :  { %v3513_v44 = vsel %vm82_vm0, %v3509_v58, 0.0 }
0x16b3   :  { %3514 = vadd.xlane.f32.xlu0 %v3513_v44 }
0x173c   :  { %v3512_v2 = vpop.xlane.xlu0 %3511 }
0x173d   :  { %v3516_v3 = vmul.f32 0.03125, %v3512_v2 }
0x173f   :  { %v3518_v4 = vadd.f32 1e-05, %v3516_v3 }
0x1740   :  { %v3515_v5 = vpop.xlane.xlu0 %3514 }
0x1741   :  { %6441 = vrsqrt.f32 %v3518_v4  ;;  %v3517_v6 = vmul.f32 0.03125, %v3515_v5  ;;  %v5333_v4 = vld [vmem:[%s7829_s8 + $0x1] ss:$0 sm:$0xff] }
0x1743   :  { %v3519_v29 = vadd.f32 1e-05, %v3517_v6 }
0x1745   :  { %6443 = vrsqrt.f32 %v3519_v29 }
0x174b   :  { %v6442_v32 = vpop.eup %6441 }
0x174c   :  { %v3522_v9 = vmul.f32 %v6442_v32, %v3506_v51  ;;  %v6317_v32 = vld [vmem:[%s7831_s10 + $0x10] sm:$0xff]  }
0x174e   :  { %v3530_v11 = vmul.f32 %v5315_v17, %v3522_v9 }
0x174f   :  { %v6444_v48 = vpop.eup %6443 }
0x1750   :  { %v3523_v12 = vmul.f32 %v6444_v48, %v3507_v52  ;;  %v3538_v18 = vadd.f32 %v5316_v13, %v3530_v11 }
0x1752   :  { %v3531_v16 = vmul.f32 %v5315_v17, %v3523_v12  ;;  %v6318_v17 = vld [vmem:[%s7831_s10 + $0x18] sm:$0xff]  }
0x1754   :  { %v3539_v24 = vadd.f32 %v5316_v13, %v3531_v16 }
0x1756   :  { %v3540_v20 = vpack.c.bf16 %v3539_v24, %v3538_v18 }
0x1758   :  { %5950 = vmatmul.mubr.msk.bf16.vlgmr.msra.gmra.mrb[112].mxu1 %vm82_vm0, %v3540_v20 }
0x1759   :  { %5977 = vmatprep.mubr.msk.bf16.mxu1 %vm6511_vm1, %v6510_v15  ;;  %5974 = vmatpush3.bf16.msra.mxu1 %v6315_v53 }
0x175a   :  { %5975 = vmatprep.subr.bf16.mxu1 %v6510_v15 }
0x175d   :  { %5976 = vmatpush3.bf16.msra.mxu1 %v6316_v62 }
0x175e   :  { %5981 = vmatprep.subr.bf16.mxu1 %v6510_v15 }
0x182b   :  { %v3601_v27 = vpop.f32.mrb[112].mxu1 }
0x182c   :  { %v3602_v59 = vadd.f32 %v5317_v40, %v3601_v27  ;;  %v5951_v21 = vpop.f32.mrb[113].mxu1 }
0x182d   :  { %v3604_v22 = vpop.f32.mrb[114].mxu1 }
0x182e   :  { %v3605_v25 = vadd.f32 %v5317_v40, %v3604_v22  ;;  %v5952_v26 = vpop.f32.mrb[115].mxu1  ;;  %v3608_v54 = vmax.f32 %v3602_v59, 0.0 }
0x1830   :  { %v3609_v46 = vmax.f32 %v3605_v25, 0.0 }
0x1832   :  { %v3610_v31 = vpack.c.bf16 %v3609_v46, %v3608_v54 }
0x1834   :  { %5970 = vmatmul.mubr.bf16.vlgmr.msra.gmra.mrb[108].mxu0 %v3610_v31 }
0x1835   :  { %6003 = vmatprep.mubr.msk.bf16.mxu0 %vm6511_vm1, %v6510_v15 }
0x1907   :  { %v3716_v33 = vpop.f32.mrb[108].mxu0 }
0x1908   :  { %v3717_v34 = vadd.f32 %v5321_v30, %v3716_v33  ;;  %v5971_v35 = vpop.f32.mrb[109].mxu0 }
0x1909   :  { %v3719_v36 = vpop.f32.mrb[110].mxu0 }
0x190a   :  { %v7488_v0 = vadd.f32 %v3717_v34, %v7417_v38  ;;  %v3720_v7 = vadd.f32 %v5321_v30, %v3719_v36  ;;  %v5972_v37 = vpop.f32.mrb[111].mxu0 }
0x190c   :  { %v7491_v14 = vadd.f32 %v3720_v7, %v7420_v28  ;;  %v3729_v41 = vsel %vm82_vm0, %v7488_v0, 0.0 }
0x190d   :  { %3730 = vadd.xlane.f32.xlu1 %v3729_v41 }
0x190e   :  { %v3732_v42 = vsel %vm82_vm0, %v7491_v14, 0.0 }
0x190f   :  { %3733 = vadd.xlane.f32.xlu0 %v3732_v42 }
0x199a   :  { %v3731_v43 = vpop.xlane.xlu1 %3730 }
0x199b   :  { %v3735_v49 = vmul.f32 0.03125, %v3731_v43 }
0x199c   :  { %v3734_v50 = vpop.xlane.xlu0 %3733 }
0x199d   :  { %v3737_v47 = vsub.f32 %v7488_v0, %v3735_v49  ;;  %v3736_v38 = vmul.f32 0.03125, %v3734_v50 }
0x199f   :  { %v3738_v10 = vsub.f32 %v7491_v14, %v3736_v38  ;;  %v3739_v51 = vmul.f32 %v3737_v47, %v3737_v47 }
0x19a1   :  { %v3741_v28 = vsel %vm82_vm0, %v3739_v51, 0.0  ;;  %v3740_v61 = vmul.f32 %v3738_v10, %v3738_v10 }
0x19a2   :  { %3742 = vadd.xlane.f32.xlu1 %v3741_v28 }
0x19a3   :  { %v3744_v52 = vsel %vm82_vm0, %v3740_v61, 0.0 }
0x19a4   :  { %3745 = vadd.xlane.f32.xlu0 %v3744_v52 }
0x1a2f   :  { %v3743_v58 = vpop.xlane.xlu1 %3742 }
0x1a30   :  { %v3747_v44 = vmul.f32 0.03125, %v3743_v58 }
0x1a31   :  { %v3746_v56 = vpop.xlane.xlu0 %3745 }
0x1a32   :  { %v3749_v8 = vadd.f32 1e-05, %v3747_v44  ;;  %v3748_v55 = vmul.f32 0.03125, %v3746_v56 }
0x1a34   :  { %6445 = vrsqrt.f32 %v3749_v8  ;;  %v3750_v57 = vadd.f32 1e-05, %v3748_v55 }
0x1a36   :  { %6447 = vrsqrt.f32 %v3750_v57 }
0x1a3e   :  { %v6446_v60 = vpop.eup %6445 }
0x1a3f   :  { %v3753_v63 = vmul.f32 %v6446_v60, %v3737_v47 }
0x1a40   :  { %v6448_v1 = vpop.eup %6447 }
0x1a41   :  { %v3761_v2 = vmul.f32 %v5332_v23, %v3753_v63  ;;  %v3754_v3 = vmul.f32 %v6448_v1, %v3738_v10 }
0x1a43   :  { %v3762_v5 = vmul.f32 %v5332_v23, %v3754_v3  ;;  %v3769_v6 = vadd.f32 %v5333_v4, %v3761_v2 }
0x1a45   :  { %v3770_v29 = vadd.f32 %v5333_v4, %v3762_v5 }
0x1a47   :  { %v3771_v9 = vpack.c.bf16 %v3770_v29, %v3769_v6 }
0x1a49   :  { %5978 = vmatmul.mubr.msk.bf16.vlgmr.msra.gmra.mrb[116].mxu1 %vm82_vm0, %v3771_v9 }
0x1a4a   :  { %5982 = vmatpush3.bf16.msra.mxu1 %v6317_v32  ;;  %5985 = vmatprep.mubr.msk.bf16.mxu1 %vm6511_vm1, %v6510_v15 }
0x1a4b   :  { %5983 = vmatprep.subr.bf16.mxu1 %v6510_v15 }
0x1a4e   :  { %5984 = vmatpush3.bf16.msra.mxu1 %v6318_v17 }
0x1a4f   :  { %5989 = vmatprep.subr.bf16.mxu1 %v6510_v15 }
0x1a51   :  { %5986 = vmatmul.mubr.msk.bf16.vlgmr.msra.gmra.mrb[120].mxu1 %vm82_vm0, %v7183_v19 }
0x1a52   :  { %5991 = vmatprep.mubr.msk.bf16.mxu1 %vm6511_vm1, %v6510_v15 }
0x1b1c   :  { %v3826_v48 = vpop.f32.mrb[116].mxu1 }
0x1b1d   :  { %v5979_v11 = vpop.f32.mrb[117].mxu1  ;;  %v3853_v59 = vpack.c.bf16 %v3826_v48, %v3826_v48 }
0x1b1e   :  { %v3829_v12 = vpop.f32.mrb[118].mxu1 }
0x1b1f   :  { %v6271_v13 = vpack.i.bf16 %v3829_v12, %v3826_v48  ;;  %v5980_v16 = vpop.f32.mrb[119].mxu1  ;;  %v3854_v22 = vpack.c.bf16 %v3829_v12, %v3829_v12 }
0x1b21   :  { %6252 = vrot.lane.b32.xlu0 %v6271_v13, %s6513_s27 }
0x1b24   :  { %v3912_v18 = vpop.f32.mrb[120].mxu1 }
0x1b25   :  { %6272 = vrot.lane.b32.xlu0 %v6271_v13, %s6514_s3  ;;  %v5987_v24 = vpop.f32.mrb[121].mxu1  ;;  %v3939_v20 = vpack.c.bf16 %v3912_v18, %v3912_v18 }
0x1b26   :  { %v3915_v45 = vpop.f32.mrb[122].mxu1 }
0x1b27   :  { %v6266_v39 = vpack.i.bf16 %v3915_v45, %v3912_v18  ;;  %v5988_v40 = vpop.f32.mrb[123].mxu1  ;;  %v3951_v19 = vsel %vm218_vm2, %v3939_v20, 0  ;;  %v7535_v27 = vpack.c.bf16 %v3915_v45, %v3915_v45 }
0x1b28   :  { %5990 = vmatpush3.bf16.xpose.msra.mxu1 %v3951_v19 }
0x1b29   :  { %6247 = vrot.lane.b32.xlu1 %v6266_v39, %s6513_s27  ;;  %5995 = vmatprep.subr.bf16.mxu1 %v6510_v15  ;;  %v3997_v21 = vsel %vm218_vm2, %v7535_v27, 0 }
0x1b2d   :  { %6257 = vrot.lane.b32.xlu1 %v6266_v39, %s6512_s25 }
0x1b2f   :  { %5992 = vmatmul.mubr.msk.bf16.vlgmr.msra.gmra.mrb[124].mxu1 %vm218_vm2, %v3853_v59 }
0x1b30   :  { %5996 = vmatpush3.bf16.xpose.msra.mxu1 %v3997_v21  ;;  %5997 = vmatprep.mubr.msk.bf16.mxu1 %vm6511_vm1, %v6510_v15 }
0x1b31   :  { %6262 = vrot.lane.b32.xlu1 %v6271_v13, %s6512_s25  ;;  %6007 = vmatprep.subr.bf16.mxu1 %v6510_v15 }
0x1b35   :  { %6267 = vrot.lane.b32.xlu1 %v6266_v39, %s6514_s3 }
0x1b37   :  { %5998 = vmatmul.mubr.msk.bf16.vlgmr.msra.gmra.mrb[128].mxu1 %vm218_vm2, %v3854_v22 }
0x1b38   :  { %6009 = vmatprep.mubr.msk.bf16.mxu1 %vm6511_vm1, %v6510_v15 }
0x1b39   :  { %4412 = vrot.lane.b32.xlu1 %v3939_v20, %s6515_s28 }
0x1b93   :  { %v6253_v30 = vpop.permute.xlu0 %6252 }
0x1b94   :  { %v6255_v37 = vunpack.i.h.bf16 %v6253_v30  ;;  %v6254_v41 = vunpack.i.l.bf16 %v6253_v30 }
0x1b96   :  { %v3856_v50 = vpack.c.bf16 %v6255_v37, %v6255_v37  ;;  %v3855_v47 = vpack.c.bf16 %v6254_v41, %v6254_v41 }
0x1b97   :  { %v6273_v8 = vpop.permute.xlu0 %6272 }
0x1b98   :  { %v6275_v60 = vunpack.i.h.bf16 %v6273_v8  ;;  %v6274_v23 = vunpack.i.l.bf16 %v6273_v8 }
0x1b9a   :  { %v3860_v1 = vpack.c.bf16 %v6275_v60, %v6275_v60  ;;  %v3859_v2 = vpack.c.bf16 %v6274_v23, %v6274_v23 }
0x1b9b   :  { %v6248_v25 = vpop.permute.xlu1 %6247 }
0x1b9c   :  { %v6250_v26 = vunpack.i.h.bf16 %v6248_v25  ;;  %v6249_v54 = vunpack.i.l.bf16 %v6248_v25 }
0x1b9e   :  { %v7550_v46 = vpack.c.bf16 %v6250_v26, %v6250_v26  ;;  %v7552_v31 = vpack.c.bf16 %v6249_v54, %v6249_v54 }
0x1b9f   :  { %v6258_v33 = vpop.permute.xlu1 %6257 }
0x1ba0   :  { %v6260_v34 = vunpack.i.h.bf16 %v6258_v33  ;;  %v6259_v35 = vunpack.i.l.bf16 %v6258_v33  ;;  %v4043_v36 = vsel %vm218_vm2, %v7552_v31, 0  ;;  %v4089_v7 = vsel %vm218_vm2, %v7550_v46, 0 }
0x1ba1   :  { %6002 = vmatpush3.bf16.xpose.msra.mxu0 %v4043_v36  ;;  %6008 = vmatpush3.bf16.xpose.msra.mxu1 %v4089_v7 }
0x1ba2   :  { %6013 = vmatprep.subr.bf16.mxu0 %v6510_v15  ;;  %6019 = vmatprep.subr.bf16.mxu1 %v6510_v15  ;;  %v7560_v43 = vpack.c.bf16 %v6260_v34, %v6260_v34  ;;  %v7562_v49 = vpack.c.bf16 %v6259_v35, %v6259_v35 }
0x1ba3   :  { %v6263_v42 = vpop.permute.xlu1 %6262 }
0x1ba4   :  { %v4135_v28 = vsel %vm218_vm2, %v7562_v49, 0  ;;  %v4181_v61 = vsel %vm218_vm2, %v7560_v43, 0  ;;  %v6265_v52 = vunpack.i.h.bf16 %v6263_v42  ;;  %v6264_v53 = vunpack.i.l.bf16 %v6263_v42 }
0x1ba6   :  { %v3858_v44 = vpack.c.bf16 %v6265_v52, %v6265_v52  ;;  %v3857_v56 = vpack.c.bf16 %v6264_v53, %v6264_v53 }
0x1ba7   :  { %v6268_v38 = vpop.permute.xlu1 %6267 }
0x1ba8   :  { %v6270_v10 = vunpack.i.h.bf16 %v6268_v38  ;;  %v6269_v51 = vunpack.i.l.bf16 %v6268_v38  ;;  %6004 = vmatmul.mubr.msk.bf16.vlgmr.msra.gmra.mrb[112].mxu0 %vm218_vm2, %v3855_v47  ;;  %6010 = vmatmul.mubr.msk.bf16.vlgmr.msra.gmra.mrb[132].mxu1 %vm218_vm2, %v3856_v50 }
0x1ba9   :  { %6014 = vmatpush3.bf16.xpose.msra.mxu0 %v4135_v28  ;;  %6020 = vmatpush3.bf16.xpose.msra.mxu1 %v4181_v61 }
0x1baa   :  { %6015 = vmatprep.mubr.msk.bf16.mxu0 %vm6511_vm1, %v6510_v15  ;;  %6021 = vmatprep.mubr.msk.bf16.mxu1 %vm6511_vm1, %v6510_v15  ;;  %v7576_v62 = vpack.c.bf16 %v6270_v10, %v6270_v10  ;;  %v7578_v58 = vpack.c.bf16 %v6269_v51, %v6269_v51 }
0x1bab   :  { %6025 = vmatprep.subr.bf16.mxu0 %v6510_v15  ;;  %6031 = vmatprep.subr.bf16.mxu1 %v6510_v15  ;;  %v4413_v63 = vpop.permute.xlu1 %4412 }
0x1bac   :  { %v4227_v55 = vsel %vm218_vm2, %v7578_v58, 0  ;;  %v4273_v57 = vsel %vm218_vm2, %v7576_v62, 0  ;;  %v4418_v3 = vsel %vm719_vm3, %v4413_v63, 0 }
0x1bb0   :  { %6016 = vmatmul.mubr.msk.bf16.vlgmr.msra.gmra.mrb[116].mxu0 %vm218_vm2, %v3857_v56  ;;  %6022 = vmatmul.mubr.msk.bf16.vlgmr.msra.gmra.mrb[136].mxu1 %vm218_vm2, %v3858_v44 }
0x1bb1   :  { %6026 = vmatpush3.bf16.xpose.msra.mxu0 %v4227_v55  ;;  %6032 = vmatpush3.bf16.xpose.msra.mxu1 %v4273_v57 }
0x1bb2   :  { %6027 = vmatprep.mubr.msk.bf16.mxu0 %vm6511_vm1, %v6510_v15  ;;  %6033 = vmatprep.mubr.msk.bf16.mxu1 %vm6511_vm1, %v6510_v15 }
0x1bb3   :  { %6037 = vmatprep.subr.bf16.mxu0 %v6510_v15  ;;  %6043 = vmatprep.subr.bf16.mxu1 %v6510_v15 }
0x1bb8   :  { %6028 = vmatmul.mubr.msk.bf16.vlgmr.msra.gmra.mrb[120].mxu0 %vm218_vm2, %v3859_v2  ;;  %6034 = vmatmul.mubr.msk.bf16.vlgmr.msra.gmra.mrb[140].mxu1 %vm218_vm2, %v3860_v1 }
0x1bb9   :  { %6038 = vmatpush3.bf16.msra.mxu0 %v4418_v3  ;;  %6045 = vmatprep.mubr.msk.bf16.mxu1 %vm6511_vm1, %v6510_v15 }
0x1bba   :  { %6039 = vmatprep.mubr.msk.bf16.mxu0 %vm6511_vm1, %v6510_v15  ;;  %6049 = vmatprep.subr.bf16.mxu0 %v6510_v15 }
0x1c02   :  { %v3987_v4 = vpop.f32.mrb[124].mxu1 }
0x1c03   :  { %v5993_v5 = vpop.f32.mrb[125].mxu1  ;;  %v4315_v6 = vsel %vm218_vm2, %v3987_v4, -inf }
0x1c04   :  { %4316 = vmax.xlane.f32.xlu1 %v4315_v6  ;;  %v3990_v29 = vpop.f32.mrb[126].mxu1 }
0x1c05   :  { %v5994_v32 = vpop.f32.mrb[127].mxu1 }
0x1c0a   :  { %v4033_v9 = vpop.f32.mrb[128].mxu1 }
0x1c0b   :  { %v5999_v17 = vpop.f32.mrb[129].mxu1  ;;  %v4318_v48 = vsel %vm218_vm2, %v4033_v9, -inf }
0x1c0c   :  { %4319 = vmax.xlane.f32.xlu0 %v4318_v48  ;;  %v4036_v11 = vpop.f32.mrb[130].mxu1 }
0x1c0d   :  { %v6000_v12 = vpop.f32.mrb[131].mxu1 }
0x1c7b   :  { %v4079_v13 = vpop.f32.mrb[112].mxu0  ;;  %v4125_v16 = vpop.f32.mrb[132].mxu1 }
0x1c7c   :  { %v6005_v18 = vpop.f32.mrb[113].mxu0  ;;  %v6011_v24 = vpop.f32.mrb[133].mxu1  ;;  %v4321_v20 = vsel %vm218_vm2, %v4079_v13, -inf  ;;  %v4324_v59 = vsel %vm218_vm2, %v4125_v16, -inf }
0x1c7d   :  { %v4082_v45 = vpop.f32.mrb[114].mxu0  ;;  %4322 = vmax.xlane.f32.xlu0 %v4321_v20  ;;  %v4128_v39 = vpop.f32.mrb[134].mxu1 }
0x1c7e   :  { %v6006_v40 = vpop.f32.mrb[115].mxu0  ;;  %v6012_v19 = vpop.f32.mrb[135].mxu1 }
0x1c81   :  { %4325 = vmax.xlane.f32.xlu0 %v4324_v59 }
0x1c83   :  { %v4171_v21 = vpop.f32.mrb[116].mxu0  ;;  %v7604_v22 = vpop.f32.mrb[136].mxu1 }
0x1c84   :  { %v6017_v25 = vpop.f32.mrb[117].mxu0  ;;  %v6023_v26 = vpop.f32.mrb[137].mxu1  ;;  %v4327_v54 = vsel %vm218_vm2, %v4171_v21, -inf  ;;  %v4330_v30 = vsel %vm218_vm2, %v7604_v22, -inf }
0x1c85   :  { %v4174_v33 = vpop.f32.mrb[118].mxu0  ;;  %4328 = vmax.xlane.f32.xlu1 %v4327_v54  ;;  %4331 = vmax.xlane.f32.xlu0 %v4330_v30  ;;  %v4220_v34 = vpop.f32.mrb[138].mxu1 }
0x1c86   :  { %v6018_v35 = vpop.f32.mrb[119].mxu0  ;;  %v6024_v36 = vpop.f32.mrb[139].mxu1 }
0x1c8b   :  { %v4263_v7 = vpop.f32.mrb[120].mxu0  ;;  %v7609_v37 = vpop.f32.mrb[140].mxu1 }
0x1c8c   :  { %v6029_v41 = vpop.f32.mrb[121].mxu0  ;;  %v6035_v42 = vpop.f32.mrb[141].mxu1  ;;  %v4333_v50 = vsel %vm218_vm2, %v4263_v7, -inf  ;;  %v4336_v47 = vsel %vm218_vm2, %v7609_v37, -inf }
0x1c8d   :  { %v4266_v38 = vpop.f32.mrb[122].mxu0  ;;  %4334 = vmax.xlane.f32.xlu1 %v4333_v50  ;;  %4337 = vmax.xlane.f32.xlu0 %v4336_v47  ;;  %v4312_v10 = vpop.f32.mrb[142].mxu1 }
0x1c8e   :  { %v6030_v51 = vpop.f32.mrb[123].mxu0  ;;  %v6036_v28 = vpop.f32.mrb[143].mxu1 }
0x1c91   :  { %v4317_v53 = vpop.xlane.xlu1 %4316 }
0x1c92   :  { %v4339_v44 = vsub.f32 %v3987_v4, %v4317_v53 }
0x1c94   :  { %v4347_v8 = vmul.f32 1.442695, %v4339_v44 }
0x1c99   :  { %v4320_v61 = vpop.xlane.xlu0 %4319 }
0x1c9a   :  { %v4340_v52 = vsub.f32 %v4033_v9, %v4320_v61 }
0x1c9c   :  { %v4349_v56 = vmul.f32 1.442695, %v4340_v52 }
0x1c9e   :  { %4510 = vrot.lane.b32.xlu1 %v7552_v31, %s6515_s28  ;;  %6449 = vpow2.f32 %v4349_v56 }
0x1c9f   :  { %6451 = vpow2.f32 %v4347_v8 }
0x1ca2   :  { %4559 = vrot.lane.b32.xlu1 %v7550_v46, %s6515_s28 }
0x1ca3   :  { %4461 = vrot.lane.b32.xlu0 %v7535_v27, %s6515_s28 }
0x1ca8   :  { %v6450_v55 = vpop.eup %6449 }
0x1ca9   :  { %v4366_v57 = vsel %vm218_vm2, %v6450_v55, 0.0  ;;  %v7621_v60 = vpop.eup %6451 }
0x1caa   :  { %v4363_v46 = vsel %vm218_vm2, %v7621_v60, 0.0 }
0x1cc2   :  { %4367 = vadd.xlane.f32.xlu0 %v4366_v57 }
0x1cc6   :  { %4364 = vadd.xlane.f32.xlu1 %v4363_v46 }
0x1cd7   :  { %4608 = vrot.lane.b32.xlu1 %v7562_v49, %s6515_s28 }
0x1d0a   :  { %v4323_v27 = vpop.xlane.xlu0 %4322 }
0x1d0b   :  { %v4341_v31 = vsub.f32 %v4079_v13, %v4323_v27 }
0x1d0d   :  { %v4351_v23 = vmul.f32 1.442695, %v4341_v31 }
0x1d0e   :  { %v4326_v63 = vpop.xlane.xlu0 %4325 }
0x1d0f   :  { %6453 = vpow2.f32 %v4351_v23  ;;  %v4342_v1 = vsub.f32 %v4125_v16, %v4326_v63 }
0x1d11   :  { %v4353_v2 = vmul.f32 1.442695, %v4342_v1 }
0x1d12   :  { %v4329_v3 = vpop.xlane.xlu1 %4328  ;;  %v4332_v6 = vpop.xlane.xlu0 %4331 }
0x1d13   :  { %6455 = vpow2.f32 %v4353_v2  ;;  %v4343_v4 = vsub.f32 %v4171_v21, %v4329_v3  ;;  %v4344_v39 = vsub.f32 %v7604_v22, %v4332_v6 }
0x1d15   :  { %v4355_v5 = vmul.f32 1.442695, %v4343_v4  ;;  %v4357_v40 = vmul.f32 1.442695, %v4344_v39 }
0x1d17   :  { %6457 = vpow2.f32 %v4355_v5 }
0x1d19   :  { %v7627_v29 = vpop.eup %6453 }
0x1d1a   :  { %v4335_v32 = vpop.xlane.xlu1 %4334  ;;  %v4338_v9 = vpop.xlane.xlu0 %4337  ;;  %v4369_v49 = vsel %vm218_vm2, %v7627_v29, 0.0 }
0x1d1b   :  { %v4345_v17 = vsub.f32 %v4263_v7, %v4335_v32  ;;  %4370 = vadd.xlane.f32.xlu1 %v4369_v49  ;;  %v4346_v19 = vsub.f32 %v7609_v37, %v4338_v9 }
0x1d1d   :  { %v7631_v48 = vpop.eup %6455  ;;  %v4359_v11 = vmul.f32 1.442695, %v4345_v17  ;;  %v4361_v59 = vmul.f32 1.442695, %v4346_v19 }
0x1d1e   :  { %v4462_v12 = vpop.permute.xlu0 %4461  ;;  %v4372_v13 = vsel %vm218_vm2, %v7631_v48, 0.0  ;;  %v4511_v21 = vpop.permute.xlu1 %4510 }
0x1d1f   :  { %6459 = vpow2.f32 %v4359_v11  ;;  %v4467_v16 = vsel %vm719_vm3, %v4462_v12, 0  ;;  %4373 = vadd.xlane.f32.xlu0 %v4372_v13  ;;  %v4516_v42 = vsel %vm719_vm3, %v4511_v21, 0 }
0x1d20   :  { %6044 = vmatpush3.bf16.msra.mxu1 %v4467_v16  ;;  %6461 = vpow2.f32 %v4357_v40 }
0x1d21   :  { %v7636_v18 = vpop.eup %6457  ;;  %6055 = vmatprep.subr.bf16.mxu1 %v6510_v15  ;;  %6463 = vpow2.f32 %v4361_v59 }
0x1d22   :  { %v4375_v24 = vsel %vm218_vm2, %v7636_v18, 0.0  ;;  %v4560_v25 = vpop.permute.xlu1 %4559 }
0x1d23   :  { %4376 = vadd.xlane.f32.xlu1 %v4375_v24  ;;  %v4565_v7 = vsel %vm719_vm3, %v4560_v25, 0 }
0x1d29   :  { %v7641_v20 = vpop.eup %6459 }
0x1d2a   :  { %v4381_v45 = vsel %vm218_vm2, %v7641_v20, 0.0  ;;  %v7651_v54 = vpop.eup %6461 }
0x1d2b   :  { %4382 = vadd.xlane.f32.xlu1 %v4381_v45  ;;  %v7655_v33 = vpop.eup %6463 }
0x1d35   :  { %4657 = vrot.lane.b32.xlu0 %v7560_v43, %s6515_s28  ;;  %v4378_v43 = vsel %vm218_vm2, %v7651_v54, 0.0 }
0x1d3c   :  { %4706 = vrot.lane.b32.xlu1 %v7578_v58, %s6515_s28  ;;  %v4384_v58 = vsel %vm218_vm2, %v7655_v33, 0.0 }
0x1d4f   :  { %v4368_v26 = vpop.xlane.xlu0 %4367 }
0x1d50   :  { %6465 = vrcp.f32 %v4368_v26 }
0x1d53   :  { %v4365_v30 = vpop.xlane.xlu1 %4364 }
0x1d54   :  { %6467 = vrcp.f32 %v4365_v30  ;;  %4379 = vadd.xlane.f32.xlu0 %v4378_v43 }
0x1d57   :  { %v4609_v50 = vpop.permute.xlu1 %4608 }
0x1d58   :  { %4385 = vadd.xlane.f32.xlu0 %v4384_v58  ;;  %v4614_v53 = vsel %vm719_vm3, %v4609_v50, 0 }
0x1d5a   :  { %v6466_v22 = vpop.eup %6465 }
0x1d5b   :  { %v4396_v34 = vmul.f32 %v6466_v22, %v6450_v55 }
0x1d5d   :  { %v4404_v35 = vpack.c.bf16 %v4396_v34, %v4396_v34 }
0x1d5e   :  { %v6468_v36 = vpop.eup %6467 }
0x1d5f   :  { %v4395_v37 = vmul.f32 %v6468_v36, %v7621_v60  ;;  %6046 = vmatmul.mubr.msk.bf16.vlgmr.msra.gmra.mrb[144].mxu1 %vm218_vm2, %v4404_v35 }
0x1d60   :  { %6056 = vmatpush3.bf16.msra.mxu1 %v4565_v7  ;;  %6057 = vmatprep.mubr.msk.bf16.mxu1 %vm6511_vm1, %v6510_v15  ;;  %v6319_v7 = vld [vmem:[%s7832_s11 + $0x10] sm:$0xff]  }
0x1d61   :  { %v4403_v41 = vpack.c.bf16 %v4395_v37, %v4395_v37  ;;  %6067 = vmatprep.subr.bf16.mxu1 %v6510_v15 }
0x1d63   :  { %6040 = vmatmul.mubr.msk.bf16.vlgmr.msra.gmra.mrb[124].mxu0 %vm218_vm2, %v4403_v41  ;;  %v6320_v41 = vld [vmem:[%s7832_s11 + $0x18] sm:$0xff]  }
0x1d64   :  { %6050 = vmatpush3.bf16.msra.mxu0 %v4516_v42  ;;  %6051 = vmatprep.mubr.msk.bf16.mxu0 %vm6511_vm1, %v6510_v15 }
0x1d65   :  { %6061 = vmatprep.subr.bf16.mxu0 %v6510_v15 }
0x1d6e   :  { %4755 = vrot.lane.b32.xlu0 %v7576_v62, %s6515_s28 }
0x1da8   :  { %v4371_v47 = vpop.xlane.xlu1 %4370 }
0x1da9   :  { %6469 = vrcp.f32 %v4371_v47 }
0x1dac   :  { %v4374_v38 = vpop.xlane.xlu0 %4373 }
0x1dad   :  { %6471 = vrcp.f32 %v4374_v38 }
0x1db0   :  { %v4377_v10 = vpop.xlane.xlu1 %4376  ;;  %v4658_v62 = vpop.permute.xlu0 %4657 }
0x1db1   :  { %6473 = vrcp.f32 %v4377_v10  ;;  %v4663_v60 = vsel %vm719_vm3, %v4658_v62, 0 }
0x1db3   :  { %v6470_v51 = vpop.eup %6469 }
0x1db4   :  { %v4397_v28 = vmul.f32 %v6470_v51, %v7627_v29 }
0x1db6   :  { %v4405_v61 = vpack.c.bf16 %v4397_v28, %v4397_v28 }
0x1db7   :  { %v6472_v52 = vpop.eup %6471 }
0x1db8   :  { %v4398_v44 = vmul.f32 %v6472_v52, %v7631_v48  ;;  %6052 = vmatmul.mubr.msk.bf16.vlgmr.msra.gmra.mrb[128].mxu0 %vm218_vm2, %v4405_v61  ;;  %v4383_v56 = vpop.xlane.xlu1 %4382 }
0x1db9   :  { %6062 = vmatpush3.bf16.msra.mxu0 %v4614_v53  ;;  %6475 = vrcp.f32 %v4383_v56  ;;  %6063 = vmatprep.mubr.msk.bf16.mxu0 %vm6511_vm1, %v6510_v15 }
0x1dba   :  { %v4406_v8 = vpack.c.bf16 %v4398_v44, %v4398_v44  ;;  %6073 = vmatprep.subr.bf16.mxu0 %v6510_v15 }
0x1dbb   :  { %v6474_v55 = vpop.eup %6473 }
0x1dbc   :  { %v4399_v57 = vmul.f32 %v6474_v55, %v7636_v18  ;;  %6058 = vmatmul.mubr.msk.bf16.vlgmr.msra.gmra.mrb[148].mxu1 %vm218_vm2, %v4406_v8  ;;  %v4707_v46 = vpop.permute.xlu1 %4706 }
0x1dbd   :  { %6068 = vmatpush3.bf16.msra.mxu1 %v4663_v60  ;;  %6069 = vmatprep.mubr.msk.bf16.mxu1 %vm6511_vm1, %v6510_v15  ;;  %v4712_v31 = vsel %vm719_vm3, %v4707_v46, 0 }
0x1dbe   :  { %v4407_v27 = vpack.c.bf16 %v4399_v57, %v4399_v57  ;;  %6079 = vmatprep.subr.bf16.mxu1 %v6510_v15 }
0x1dc0   :  { %6064 = vmatmul.mubr.msk.bf16.vlgmr.msra.gmra.mrb[132].mxu0 %vm218_vm2, %v4407_v27 }
0x1dc1   :  { %6074 = vmatpush3.bf16.msra.mxu0 %v4712_v31  ;;  %6075 = vmatprep.mubr.msk.bf16.mxu0 %vm6511_vm1, %v6510_v15 }
0x1dc2   :  { %6085 = vmatprep.subr.bf16.mxu0 %v6510_v15 }
0x1dc3   :  { %v6476_v23 = vpop.eup %6475 }
0x1dc4   :  { %v4401_v63 = vmul.f32 %v6476_v23, %v7641_v20 }
0x1dc6   :  { %v4409_v1 = vpack.c.bf16 %v4401_v63, %v4401_v63 }
0x1dc8   :  { %6076 = vmatmul.mubr.msk.bf16.vlgmr.msra.gmra.mrb[136].mxu0 %vm218_vm2, %v4409_v1 }
0x1dc9   :  { %6089 = vmatprep.mubr.msk.bf16.mxu0 %vm6511_vm1, %v6510_v15  ;;  %6086 = vmatpush3.bf16.msra.mxu0 %v6319_v7 }
0x1dca   :  { %6087 = vmatprep.subr.bf16.mxu0 %v6510_v15 }
0x1dcd   :  { %6088 = vmatpush3.bf16.msra.mxu0 %v6320_v41  ;;  %v5375_v41 = vld [vmem:[%s7834_s13 + $0x1] ss:$0 sm:$0xff] }
0x1dce   :  { %6101 = vmatprep.subr.bf16.mxu0 %v6510_v15 }
0x1de1   :  { %v4380_v2 = vpop.xlane.xlu0 %4379 }
0x1de2   :  { %6477 = vrcp.f32 %v4380_v2 }
0x1de5   :  { %v4386_v3 = vpop.xlane.xlu0 %4385 }
0x1de6   :  { %6479 = vrcp.f32 %v4386_v3 }
0x1de9   :  { %v4756_v6 = vpop.permute.xlu0 %4755 }
0x1dea   :  { %v4761_v9 = vsel %vm719_vm3, %v4756_v6, 0 }
0x1dec   :  { %v6478_v4 = vpop.eup %6477 }
0x1ded   :  { %v4400_v5 = vmul.f32 %v6478_v4, %v7651_v54  ;;  %v5369_v4 = vld [vmem:[%s7833_s12 + $0x1] ss:$0 sm:$0xff] }
0x1def   :  { %v4408_v29 = vpack.c.bf16 %v4400_v5, %v4400_v5 }
0x1df0   :  { %v6480_v32 = vpop.eup %6479 }
0x1df1   :  { %6070 = vmatmul.mubr.msk.bf16.vlgmr.msra.gmra.mrb[152].mxu1 %vm218_vm2, %v4408_v29  ;;  %v4402_v49 = vmul.f32 %v6480_v32, %v7655_v33 }
0x1df2   :  { %6080 = vmatpush3.bf16.msra.mxu1 %v4761_v9  ;;  %6081 = vmatprep.mubr.msk.bf16.mxu1 %vm6511_vm1, %v6510_v15 }
0x1df3   :  { %6093 = vmatprep.subr.bf16.mxu1 %v6510_v15  ;;  %v4410_v17 = vpack.c.bf16 %v4402_v49, %v4402_v49 }
0x1df9   :  { %6082 = vmatmul.mubr.msk.bf16.vlgmr.msra.gmra.mrb[156].mxu1 %vm218_vm2, %v4410_v17 }
0x1dfa   :  { %6097 = vmatprep.mubr.msk.bf16.mxu1 %vm6511_vm1, %v6510_v15 }
0x1e32   :  { %v4503_v48 = vpop.f32.mrb[144].mxu1 }
0x1e33   :  { %v6047_v11 = vpop.f32.mrb[145].mxu1 }
0x1e34   :  { %v4506_v12 = vpop.f32.mrb[146].mxu1 }
0x1e35   :  { %v6048_v13 = vpop.f32.mrb[147].mxu1 }
0x1e36   :  { %v4454_v16 = vpop.f32.mrb[124].mxu0 }
0x1e37   :  { %v6041_v18 = vpop.f32.mrb[125].mxu0 }
0x1e38   :  { %v4457_v24 = vpop.f32.mrb[126].mxu0 }
0x1e39   :  { %v6042_v20 = vpop.f32.mrb[127].mxu0 }
0x1e8b   :  { %v4552_v45 = vpop.f32.mrb[128].mxu0 }
0x1e8c   :  { %v6053_v39 = vpop.f32.mrb[129].mxu0 }
0x1e8d   :  { %v4555_v40 = vpop.f32.mrb[130].mxu0 }
0x1e8e   :  { %v6054_v19 = vpop.f32.mrb[131].mxu0 }
0x1e8f   :  { %v4601_v59 = vpop.f32.mrb[148].mxu1  ;;  %v6321_v19 = vld [vmem:[%s7836_s15 + $0x10] sm:$0xff]  }
0x1e90   :  { %v6276_v21 = vpack.i.bf16 %v4601_v59, %v4552_v45  ;;  %v6059_v25 = vpop.f32.mrb[149].mxu1  ;;  %6094 = vmatpush3.bf16.msra.mxu1 %v6321_v19  ;;  %v6322_v59 = vld [vmem:[%s7836_s15 + $0x18] sm:$0xff]  }
0x1e91   :  { %v4604_v26 = vpop.f32.mrb[150].mxu1  ;;  %6095 = vmatprep.subr.bf16.mxu1 %v6510_v15  ;;  %v6324_v25 = vld [vmem:[%s7838_s17 + $0x48] sm:$0xff]  }
0x1e92   :  { %6277 = vrot.lane.b32.xlu1 %v6276_v21, %s7866_s23  ;;  %v6060_v54 = vpop.f32.mrb[151].mxu1  ;;  %v6323_v21 = vld [vmem:[%s7838_s17 + $0x40] sm:$0xff]   ;;  %v6325_v26 = vld [vmem:[%s7838_s17 + $0x50] sm:$0xff]  }
0x1e93   :  { %v4650_v30 = vpop.f32.mrb[132].mxu0  ;;  %v6326_v54 = vld [vmem:[%s7838_s17 + $0x58] sm:$0xff]  }
0x1e94   :  { %v6065_v43 = vpop.f32.mrb[133].mxu0  ;;  %6096 = vmatpush3.bf16.msra.mxu1 %v6322_v59 }
0x1e95   :  { %v4653_v33 = vpop.f32.mrb[134].mxu0  ;;  %6121 = vmatprep.subr.bf16.mxu1 %v6510_v15  ;;  %v6328_v43 = vld [vmem:[%s7838_s17 + $0x68] sm:$0xff]  }
0x1e96   :  { %v6066_v58 = vpop.f32.mrb[135].mxu0 }
0x1e9b   :  { %v4748_v22 = vpop.f32.mrb[136].mxu0 }
0x1e9c   :  { %v6077_v34 = vpop.f32.mrb[137].mxu0 }
0x1e9d   :  { %v4751_v35 = vpop.f32.mrb[138].mxu0 }
0x1e9e   :  { %v6078_v36 = vpop.f32.mrb[139].mxu0 }
0x1ec4   :  { %v4699_v37 = vpop.f32.mrb[152].mxu1 }
0x1ec5   :  { %v6281_v42 = vpack.i.bf16 %v4699_v37, %v4650_v30  ;;  %v6071_v50 = vpop.f32.mrb[153].mxu1  ;;  %v6327_v30 = vld [vmem:[%s7838_s17 + $0x60] sm:$0xff]  }
0x1ec6   :  { %v4702_v47 = vpop.f32.mrb[154].mxu1 }
0x1ec7   :  { %6282 = vrot.lane.b32.xlu0 %v6281_v42, %s6518_s4  ;;  %v6072_v38 = vpop.f32.mrb[155].mxu1 }
0x1ec8   :  { %v5376_v38 = vld [vmem:[%s7835_s14 + $0x1] ss:$0 sm:$0xff] }
0x1ecc   :  { %v4797_v10 = vpop.f32.mrb[156].mxu1 }
0x1ecd   :  { %v6286_v51 = vpack.i.bf16 %v4797_v10, %v4748_v22  ;;  %v6083_v28 = vpop.f32.mrb[157].mxu1 }
0x1ece   :  { %v4800_v61 = vpop.f32.mrb[158].mxu1 }
0x1ecf   :  { %6287 = vrot.lane.b32.xlu1 %v6286_v51, %s7867_s24  ;;  %v6084_v52 = vpop.f32.mrb[159].mxu1 }
0x1ed0   :  { %v6329_v52 = vld [vmem:[%s7838_s17 + $0x70] sm:$0xff]  }
0x1f04   :  { %v6278_v53 = vpop.permute.xlu1 %6277 }
0x1f05   :  { %v6280_v56 = vunpack.i.h.bf16 %v6278_v53  ;;  %v6279_v62 = vunpack.i.l.bf16 %v6278_v53  ;;  %v6330_v53 = vld [vmem:[%s7838_s17 + $0x78] sm:$0xff]  }
0x1f07   :  { %v4828_v60 = vsel %vm218_vm2, %v4503_v48, %v6280_v56  ;;  %v4827_v46 = vsel %vm218_vm2, %v4454_v16, %v6279_v62 }
0x1f39   :  { %v6283_v44 = vpop.permute.xlu0 %6282 }
0x1f3a   :  { %v6285_v8 = vunpack.i.h.bf16 %v6283_v44  ;;  %v6284_v55 = vunpack.i.l.bf16 %v6283_v44  ;;  %v5382_v44 = vld [vmem:[%s7837_s16 + $0x1] ss:$0 sm:$0xff] }
0x1f3c   :  { %v4830_v23 = vsel %vm1125_vm5, %v4828_v60, %v6285_v8  ;;  %v4829_v63 = vsel %vm1125_vm5, %v4827_v46, %v6284_v55 }
0x1f41   :  { %v6288_v57 = vpop.permute.xlu1 %6287 }
0x1f42   :  { %v6290_v27 = vunpack.i.h.bf16 %v6288_v57  ;;  %v6289_v31 = vunpack.i.l.bf16 %v6288_v57 }
0x1f44   :  { %v4832_v1 = vsel %vm1128_vm6, %v4830_v23, %v6290_v27  ;;  %v4831_v2 = vsel %vm1128_vm6, %v4829_v63, %v6289_v31  ;;  %v6331_v23 = vld [vmem:[%s7840_s19] sm:$0xff]   ;;  %v6332_v63 = vld [vmem:[%s7840_s19 + $0x8] sm:$0xff]  }
0x1f45   :  { %v4833_v3 = vpack.c.bf16 %v4832_v1, %v4831_v2  ;;  %v5403_v1 = vld [vmem:[%s7839_s18 + $0x1] ss:$0 sm:$0xff]  ;;  %s5215_s18 = sshll.u32 %s6520_s0, 4  ;;  %s5216_s18 = int_to_ptr.vmem [resolvable:$true] %s5215_s18 }
0x1f46   :  { %s6486_s30 = scalar_lea.vmem %s5216_s18, 256  ;;  %p6491_p1 = scmp.lt.s32.totalorder %s5216_s18, %s5216_s18 }
0x1f47   :  { %6090 = vmatmul.mubr.msk.bf16.vlgmr.msra.gmra.mrb[140].mxu0 %vm82_vm0, %v4833_v3  ;;  %p6487_p0 = scmp.ne.s32.totalorder %s5216_s18, %s6486_s30  ;;  %p6492_p2 = scmp.lt.s32.totalorder %s6486_s30, %s6486_s30 }
0x1f48   :  { %6117 = vmatprep.mubr.msk.bf16.mxu0 %vm6511_vm1, %v6510_v15  ;;  %6102 = vmatpush3.bf16.msra.mxu0 %v6323_v21 }
0x1f49   :  { %6103 = vmatprep.subr.bf16.mxu0 %v6510_v15  ;;  %p6493_p3 = por %p6492_p2, %p6491_p1 }
0x1f4b   :  { %p6494_p4 = pnand %p6493_p3, %p6487_p0 }
0x1f4c   :  { %6104 = vmatpush3.bf16.msra.mxu0 %v6324_v25 }
0x1f4d   :  { %6105 = vmatprep.subr.bf16.mxu0 %v6510_v15 }
0x1f50   :  { %6106 = vmatpush3.bf16.msra.mxu0 %v6325_v26 }
0x1f51   :  { %6107 = vmatprep.subr.bf16.mxu0 %v6510_v15 }
0x1f54   :  { %6108 = vmatpush3.bf16.msra.mxu0 %v6326_v54 }
0x1f55   :  { %6109 = vmatprep.subr.bf16.mxu0 %v6510_v15 }
0x1f58   :  { %6110 = vmatpush3.bf16.msra.mxu0 %v6327_v30 }
0x1f59   :  { %6111 = vmatprep.subr.bf16.mxu0 %v6510_v15 }
0x1f5c   :  { %6112 = vmatpush3.bf16.msra.mxu0 %v6328_v43 }
0x1f5d   :  { %6113 = vmatprep.subr.bf16.mxu0 %v6510_v15 }
0x1f60   :  { %6114 = vmatpush3.bf16.msra.mxu0 %v6329_v52 }
0x1f61   :  { %6115 = vmatprep.subr.bf16.mxu0 %v6510_v15 }
0x1f64   :  { %6116 = vmatpush3.bf16.msra.mxu0 %v6330_v53 }
0x201a   :  { %v4896_v5 = vpop.f32.mrb[140].mxu0 }
0x201b   :  { %v4897_v6 = vadd.f32 %v5369_v4, %v4896_v5  ;;  %v6091_v29 = vpop.f32.mrb[141].mxu0 }
0x201c   :  { %v4899_v32 = vpop.f32.mrb[142].mxu0 }
0x201d   :  { %v7728_v9 = vadd.f32 %v4897_v6, %v7488_v0  ;;  %v4900_v49 = vadd.f32 %v5369_v4, %v4899_v32  ;;  %v6092_v17 = vpop.f32.mrb[143].mxu0 }
0x201e   :  { %v5412_v17 = vld [vmem:[%s7841_s20] ss:$0 sm:$0xff] }
0x201f   :  { %v7731_v48 = vadd.f32 %v4900_v49, %v7491_v14  ;;  %v4909_v11 = vsel %vm82_vm0, %v7728_v9, 0.0 }
0x2020   :  { %4910 = vadd.xlane.f32.xlu0 %v4909_v11 }
0x2021   :  { %v4912_v12 = vsel %vm82_vm0, %v7731_v48, 0.0 }
0x2022   :  { %4913 = vadd.xlane.f32.xlu1 %v4912_v12 }
0x20ad   :  { %v4911_v13 = vpop.xlane.xlu0 %4910 }
0x20ae   :  { %v4915_v16 = vmul.f32 0.03125, %v4911_v13 }
0x20af   :  { %v4914_v18 = vpop.xlane.xlu1 %4913 }
0x20b0   :  { %v4917_v24 = vsub.f32 %v7728_v9, %v4915_v16  ;;  %v4916_v0 = vmul.f32 0.03125, %v4914_v18 }
0x20b2   :  { %v4918_v20 = vsub.f32 %v7731_v48, %v4916_v0  ;;  %v4919_v45 = vmul.f32 %v4917_v24, %v4917_v24 }
0x20b4   :  { %v4921_v14 = vsel %vm82_vm0, %v4919_v45, 0.0  ;;  %v4920_v39 = vmul.f32 %v4918_v20, %v4918_v20 }
0x20b5   :  { %4922 = vadd.xlane.f32.xlu0 %v4921_v14 }
0x20b6   :  { %v4924_v40 = vsel %vm82_vm0, %v4920_v39, 0.0 }
0x20b9   :  { %4925 = vadd.xlane.f32.xlu0 %v4924_v40 }
0x2142   :  { %v4923_v33 = vpop.xlane.xlu0 %4922 }
0x2143   :  { %v4927_v58 = vmul.f32 0.03125, %v4923_v33 }
0x2145   :  { %v4929_v22 = vadd.f32 1e-05, %v4927_v58 }
0x2146   :  { %v4926_v34 = vpop.xlane.xlu0 %4925 }
0x2147   :  { %6481 = vrsqrt.f32 %v4929_v22  ;;  %v4928_v35 = vmul.f32 0.03125, %v4926_v34 }
0x2149   :  { %v4930_v36 = vadd.f32 1e-05, %v4928_v35 }
0x214b   :  { %6483 = vrsqrt.f32 %v4930_v36 }
0x2151   :  { %v6482_v7 = vpop.eup %6481 }
0x2152   :  { %v4933_v37 = vmul.f32 %v6482_v7, %v4917_v24 }
0x2154   :  { %v4941_v50 = vmul.f32 %v5375_v41, %v4933_v37 }
0x2155   :  { %v6484_v42 = vpop.eup %6483 }
0x2156   :  { %v4934_v47 = vmul.f32 %v6484_v42, %v4918_v20  ;;  %v4949_v51 = vadd.f32 %v5376_v38, %v4941_v50 }
0x2158   :  { %v4942_v10 = vmul.f32 %v5375_v41, %v4934_v47 }
0x215a   :  { %v4950_v28 = vadd.f32 %v5376_v38, %v4942_v10 }
0x215c   :  { %v4951_v61 = vpack.c.bf16 %v4950_v28, %v4949_v51 }
0x215e   :  { %6098 = vmatmul.mubr.msk.bf16.vlgmr.msra.gmra.mrb[160].mxu1 %vm82_vm0, %v4951_v61 }
0x215f   :  { %6125 = vmatprep.mubr.msk.bf16.mxu1 %vm6511_vm1, %v6510_v15  ;;  %6122 = vmatpush3.bf16.msra.mxu1 %v6331_v23 }
0x2160   :  { %6123 = vmatprep.subr.bf16.mxu1 %v6510_v15 }
0x2163   :  { %6124 = vmatpush3.bf16.msra.mxu1 %v6332_v63 }
0x2231   :  { %v5014_v56 = vpop.f32.mrb[160].mxu1 }
0x2232   :  { %v5015_v62 = vadd.f32 %v5382_v44, %v5014_v56  ;;  %v6099_v8 = vpop.f32.mrb[161].mxu1 }
0x2233   :  { %v5017_v55 = vpop.f32.mrb[162].mxu1 }
0x2234   :  { %v5018_v57 = vadd.f32 %v5382_v44, %v5017_v55  ;;  %v6100_v60 = vpop.f32.mrb[163].mxu1  ;;  %v5021_v46 = vmax.f32 %v5015_v62, 0.0 }
0x2236   :  { %v5022_v27 = vmax.f32 %v5018_v57, 0.0 }
0x2238   :  { %v5023_v31 = vpack.c.bf16 %v5022_v27, %v5021_v46 }
0x223a   :  { %6118 = vmatmul.mubr.bf16.vlgmr.msra.gmra.mrb[144].mxu0 %v5023_v31 }
0x230d   :  { %v5131_v2 = vpop.f32.mrb[144].mxu0 }
0x230e   :  { %v5132_v3 = vadd.f32 %v5403_v1, %v5131_v2  ;;  %v6119_v4 = vpop.f32.mrb[145].mxu0 }
0x230f   :  { %v5134_v5 = vpop.f32.mrb[146].mxu0 }
0x2310   :  { %v5135_v6 = vadd.f32 %v5403_v1, %v5134_v5  ;;  %v6120_v29 = vpop.f32.mrb[147].mxu0  ;;  %v5138_v32 = vadd.f32 %v5132_v3, %v7728_v9 }
0x2312   :  { %v5139_v49 = vadd.f32 %v5135_v6, %v7731_v48 }
0x2314   :  { %v5140_v15 = vpack.c.bf16 %v5139_v49, %v5138_v32 }
0x2316   :  { %6126 = vmatmul.mubr.msk.bf16.vlgmr.msra.gmra.mrb[164].mxu1 %vm82_vm0, %v5140_v15 }
0x23e9   :  { %v5201_v11 = vpop.f32.mrb[164].mxu1 }
0x23ea   :  { %v5202_v12 = vadd.f32 %v5412_v17, %v5201_v11  ;;  %v6127_v13 = vpop.f32.mrb[165].mxu1 }
0x23eb   :  { %v5204_v16 = vpop.f32.mrb[166].mxu1 }
0x23ec   :  { %5208 = vst [vmem:[#allocation2] sm:$0xff] %v5202_v12  ;;  %v5205_v18 = vadd.f32 %v5412_v17, %v5204_v16  ;;  %v6128_v24 = vpop.f32.mrb[167].mxu1 }
0x23ee   :  { %5209 = vst [vmem:[#allocation2 + $0x8] sm:$0xff] %v5205_v18 }
0x23ef   :  { %6497 = shalt.err (!%p6494_p4)
}
0x23f0   :  { %s6498_s15 = scalar_lea.hbm %s7842_s21, 256 }
0x23f1   :  { %p6499_p5 = scmp.ne.s32.totalorder %s7842_s21, %s6498_s15  ;;  %p6502_p6 = scmp.lt.u32.totalorder %s6498_s15, %s7842_s21 }
0x23f3   :  { %p6504_p7 = pnand %p6502_p6, %p6499_p5 }
0x23f5   :  { %6507 = shalt.err (!%p6504_p7)
}
0x23f6   :  { %s6521_s1 = smov 128  }
0x23f7   :  { %5221 = dma.vmem_to_hbm [thread:$0]  %s5216_s18, 256, %s7842_s21, [#allocation3], %s6521_s1, %s6521_s1, %s7866_s23  }
0x23f8   :  { %6508 = dma.done.wait [#allocation3], 256  }
0x23f9   :  { %6509 = vsyncadd [#allocation3], 4294967040 }
0x23fa   :  { %5225 = vsyncpa [#allocation3], 1 }

</bundles_post_ra>
